<compile_context>
chip_gen: v7x
topology: tpu7x:2x2x1
jax: 0.10.0
libtpu: 0.0.40
codegen_flags: <defaults>
</compile_context>

<pallas_src>
import math

import numpy as np
import jax
import jax.numpy as jnp
from jax import lax
from jax.experimental import pallas as pl
from jax.experimental.pallas import tpu as pltpu

TWO_PI = 2.0 * math.pi
CP = 8  # padded channel count shared by every conv stage


# --------------------------------------------------------------------------
# Host-side (numpy) mask construction — pure parameter setup / glue.
# --------------------------------------------------------------------------
def _single_stripes(shape, mu, off):
    h, w = shape
    m = np.zeros((h, w), dtype=np.float64)
    if mu == 0:
        m[:, 0::4] = 1.0
    else:
        m[0::4, :] = 1.0
    return np.roll(m, off, axis=1 - mu)


def _double_stripes(shape, mu, off):
    h, w = shape
    m = np.zeros((h, w), dtype=np.float64)
    if mu == 0:
        m[:, 0::4] = 1.0
        m[:, 1::4] = 1.0
    else:
        m[0::4, :] = 1.0
        m[1::4, :] = 1.0
    return np.roll(m, off, axis=1 - mu)


def plaquette_masks(lat_shape, mu, off):
    # TODO(synk): single_stripes/double_stripes are not included in the
    # reference source; using the standard width-4 stripe masks of the U(1)
    # flow papers.
    frozen = _double_stripes(lat_shape, mu, off + 1)
    active = _single_stripes(lat_shape, mu, off)
    passive = 1.0 - frozen - active
    return (active.astype(np.float32), passive.astype(np.float32),
            frozen.astype(np.float32))


def active_link_mask(lat_shape, mu, off):
    h, w = lat_shape
    m = np.zeros((2, h, w), dtype=np.float64)
    if mu == 0:
        m[0, :, 0::4] = 1.0
    else:
        m[1, 0::4, :] = 1.0
    nu = 1 - mu
    m = np.roll(m, off, axis=nu + 1)
    return m.astype(np.float32)


def _flatten_hw(m_hw, batch):
    # [H, W] -> [H*B*W] in (h, b, w) lane order (tiled over batch).
    h, w = m_hw.shape
    return np.broadcast_to(m_hw[:, None, :], (h, batch, w)).reshape(-1)


# --------------------------------------------------------------------------
# In-kernel math helpers (pure jnp on VMEM-resident values).
# --------------------------------------------------------------------------
def _mod_2pi(x):
    # torch.remainder(x, 2*pi) for a positive divisor.
    # TODO(synk): can return exactly 2*pi for tiny negative f32 inputs whereas
    # torch guarantees [0, 2*pi); harmless here (all downstream use periodic).
    return x - TWO_PI * jnp.floor(x * (1.0 / TWO_PI))


def _atan(y):
    # float32 arctan (Cephes atanf range reduction + polynomial); the two
    # range-reduction divides are routed through the EUP approx reciprocal.
    a = jnp.abs(y)
    big = a > 2.414213562373095          # tan(3*pi/8)
    mid = a > 0.4142135623730951         # tan(pi/8)
    inv = -pl.reciprocal(jnp.where(big, a, 1.0), approx=True)
    frac = (a - 1.0) * pl.reciprocal(a + 1.0, approx=True)
    xr = jnp.where(big, inv, jnp.where(mid, frac, a))
    off = jnp.where(big, 0.5 * math.pi, jnp.where(mid, 0.25 * math.pi, 0.0))
    z = xr * xr
    p = (((8.05374449538e-2 * z - 1.38776856032e-1) * z
          + 1.99777106478e-1) * z - 3.33329491539e-1)
    r = off + (p * z * xr + xr)
    return jnp.where(y < 0.0, -r, r)


# --------------------------------------------------------------------------
# Fused full-flow kernel: one invocation, in-kernel loop over all layers.
# --------------------------------------------------------------------------
def build_flow_call(B, H, W, n_layers, n_mix):
    N = H * B * W                     # lane axis, (h, b, w) flattened
    BW = B * W
    assert N % 128 == 0, "lane axis must be a multiple of 128"
    ln_nmix = math.log(float(n_mix))
    inv_nmix = 1.0 / float(n_mix)

    def kernel(u_in_ref, mask_ref, w_ref, b_ref, u_ref, lj_ref):
        # ---- layer-invariant geometry, hoisted out of the layer loop ------
        lane = lax.broadcasted_iota(jnp.int32, (CP, N), 1)
        wpos = lane % W
        sel_last8 = wpos == (W - 1)   # lanes with w == W-1 (wrap for +w shift)
        sel_first8 = wpos == 0        # lanes with w == 0   (wrap for -w shift)
        sel_last1 = sel_last8[0:1]
        sel_first1 = sel_first8[0:1]
        zeros_pad = jnp.zeros((CP - 2, N), jnp.float32)

        def shift_h(x, dh):
            # result[.., h, b, w] = x[.., (h+dh)%H, b, w]; h is outermost in
            # the flattened lane index -> one circular lane rotate (XLU).
            return pltpu.roll(x, (-dh * BW) % N, axis=1)

        def shift_w(x, dw, sel_last, sel_first):
            # result[.., h, b, w] = x[.., h, b, (w+dw)%W]; segmented rotate:
            # full-axis roll + boundary fix-up selected by a hoisted mask.
            interior = pltpu.roll(x, (-dw) % N, axis=1)
            if dw > 0:
                fix = pltpu.roll(x, (W - dw) % N, axis=1)
                sel = sel_last
            else:
                fix = pltpu.roll(x, (-(dw + W)) % N, axis=1)
                sel = sel_first
            return jnp.where(sel, fix, interior)

        def conv3x3(x, wt, bias, leaky):
            # PyTorch Conv2d(3x3, padding=1, padding_mode='circular') as nine
            # per-tap MXU dots accumulated in f32 (no im2col slab / concat).
            #   x:    [CP, N]      activations, channels on sublanes
            #   wt:   [9, CP, CP]  per-tap weight matrices, tap = ky*3 + kx
            #   bias: [CP, 1]
            xl = shift_w(x, -1, sel_last8, sel_first8)    # kx = 0 column
            xr = shift_w(x, 1, sel_last8, sel_first8)     # kx = 2 column
            cols = (xl, x, xr)
            acc = jnp.broadcast_to(bias, (CP, N))
            for ky, dy in enumerate((-1, 0, 1)):
                for kx in range(3):
                    blk = cols[kx] if dy == 0 else shift_h(cols[kx], dy)
                    acc = acc + jnp.dot(wt[ky * 3 + kx], blk,
                                        preferred_element_type=jnp.float32)
            if leaky:
                acc = jnp.where(acc > 0.0, acc, 0.01 * acc)   # LeakyReLU(0.01)
            return acc

        def layer(l, carry):
            u_all, lj = carry
            mk = mask_ref[l]               # [4, N]: m_active, m_frozen, lm0, lm1
            ma = mk[0:1]
            mf = mk[1:2]
            lm = mk[2:4]
            wl = w_ref[l]                  # [3, 9, CP, CP]
            bl = b_ref[l]                  # [3, CP, 1]

            u0 = u_all[0:1]
            u1 = u_all[1:2]

            # plaquette P(x) = mod(th0(x) + th1(x+e0) - th0(x+e1) - th1(x), 2pi)
            # TODO(synk): `plaquette` is not in the reference file; standard U(1) def.
            plaq = _mod_2pi(u0 + shift_h(u1, 1)
                            - shift_w(u0, 1, sel_last1, sel_first1) - u1)

            frozen = mf * plaq
            active = ma * plaq
            xh = 0.5 * active

            # cos/sin of frozen and active/2 on one stacked tensor.
            ang = jnp.concatenate([frozen, xh], axis=0)          # [2, N]
            cs = jnp.cos(ang)
            sn = jnp.sin(ang)
            ch = cs[1:2]
            sh = sn[1:2]

            # _frozen_preproc -> ConvNet (Conv->LeakyReLU->Conv->LeakyReLU->Conv)
            # TODO(synk): ConvNet is not in the reference file; using the
            # standard 3x3 circular conv stack of the U(1) flow papers.
            x1 = jnp.concatenate([cs[0:1], sn[0:1], zeros_pad], axis=0)  # [CP,N]
            h1 = conv3x3(x1, wl[0], bl[0], True)
            h2 = conv3x3(h1, wl[1], bl[1], True)
            net = conv3x3(h2, wl[2], bl[2], False)

            s = net[0:n_mix]               # [n_mix, N] mixture log-scales
            t = net[n_mix:n_mix + 1]       # [1, N]     shift channel

            es = jnp.exp(s)
            ens = pl.reciprocal(es, approx=True)
            cos2 = ch * ch
            sin2 = sh * sh

            # mixture_tan_transform_logJ = logsumexp_i(-log d_i) - log(n_mix)
            #                            = log(sum_i 1/d_i)      - log(n_mix)
            d = ens * cos2 + es * sin2                       # [n_mix, N]
            rd = pl.reciprocal(d, approx=True)
            dens = ma * (jnp.log(jnp.sum(rd, axis=0, keepdims=True)) - ln_nmix)

            # mixture_tan_transform: mean_i mod(2*atan(exp(s_i)*tan(x/2)), 2pi)
            tan_half = sh * pl.reciprocal(ch, approx=True)
            tt = _mod_2pi(2.0 * _atan(es * tan_half))        # [n_mix, N]
            mean_tt = jnp.sum(tt, axis=0, keepdims=True) * inv_nmix
            p_prime = ma * mean_tt
            # passive + frozen == (1 - ma) * plaq (masks partition unity)
            new_plaq = ma * _mod_2pi(p_prime + t) + (1.0 - ma) * plaq

            # U1Coupling._update_links (alt=False): delta_links = (delta, -delta)
            delta = new_plaq - plaq
            delta_links = jnp.concatenate([delta, -delta], axis=0)   # [2, N]
            u_new = lm * _mod_2pi(delta_links + u_all) + (1.0 - lm) * u_all
            return (u_new, lj + dens)

        u_start = u_in_ref[...]                     # [2, N]
        lj_start = jnp.zeros((1, N), jnp.float32)
        u_fin, lj_fin = lax.fori_loop(0, n_layers, layer, (u_start, lj_start))
        u_ref[...] = u_fin
        lj_ref[...] = lj_fin

    out_shape = (
        jax.ShapeDtypeStruct((2, N), jnp.float32),   # updated links
        jax.ShapeDtypeStruct((1, N), jnp.float32),   # per-site sum_l logJ density
    )
    # No grid, no BlockSpecs: every operand is a whole-array VMEM block
    # (total resident footprint ~2 MiB, far under any generation's VMEM).
    return pl.pallas_call(kernel, out_shape=out_shape)


def build_forward(B, H, W, n_layers, n_mix):
    flow_call = build_flow_call(B, H, W, n_layers, n_mix)
    N = H * B * W

    @jax.jit
    def forward(u, masks_all, w_all, b_all):
        # [B, 2, H, W] -> [2, N] with lanes flattened in (h, b, w) order.
        u_flat = jnp.transpose(u, (1, 2, 0, 3)).reshape(2, N)
        u_out_flat, lj_site = flow_call(u_flat, masks_all, w_all, b_all)
        u_out = jnp.transpose(u_out_flat.reshape(2, H, B, W), (2, 0, 1, 3))
        # U1Flow.forward: logq = -sum_layers sum_sites logJ density (per batch)
        logq = -jnp.sum(lj_site.reshape(H, B, W), axis=(0, 2))
        return u_out, logq

    return forward


# --------------------------------------------------------------------------
# Parameter init (deterministic, synthetic) packed for per-tap MXU dots.
# --------------------------------------------------------------------------
def init_layer_params(rng, n_mix, hidden):
    c_h1, c_h2 = hidden
    c_out = n_mix + 1

    def conv(cout, cin):
        scale = 1.0 / math.sqrt(cin * 9)
        w = (scale * rng.standard_normal((cout, cin, 3, 3))).astype(np.float32)
        b = (0.1 * rng.standard_normal((cout,))).astype(np.float32)
        return w, b

    convs = [conv(c_h1, 2), conv(c_h2, c_h1), conv(c_out, c_h2)]
    w_taps = np.zeros((3, 9, CP, CP), np.float32)   # [conv, tap, cout_p, cin_p]
    biases = np.zeros((3, CP, 1), np.float32)
    for c, (w, b) in enumerate(convs):
        cout, cin = w.shape[:2]
        for ky in range(3):
            for kx in range(3):
                w_taps[c, ky * 3 + kx, :cout, :cin] = w[:, :, ky, kx]
        biases[c, :cout, 0] = b
    return w_taps, biases


# --------------------------------------------------------------------------
if __name__ == "__main__":
    B = 2
    lat_shape = (16, 16)
    H, W = lat_shape
    n_layers = 16
    n_mix = 2
    hidden = (8, 8)
    assert max(hidden) <= CP and (n_mix + 1) <= CP
    N = H * B * W

    forward = build_forward(B, H, W, n_layers, n_mix)

    rng = np.random.default_rng(0)
    mask_rows, w_list, b_list = [], [], []
    for i in range(n_layers):
        mu = i % 2
        off = (i // 2) % 4
        ma, _mp, mf = plaquette_masks(lat_shape, mu, off)
        lm = active_link_mask(lat_shape, mu, off)
        mask_rows.append(np.stack(
            [_flatten_hw(ma, B), _flatten_hw(mf, B),
             _flatten_hw(lm[0], B), _flatten_hw(lm[1], B)], axis=0))
        w_taps, biases = init_layer_params(rng, n_mix, hidden)
        w_list.append(w_taps)
        b_list.append(biases)

    masks_all = jnp.asarray(np.stack(mask_rows, 0), jnp.float32)  # [L, 4, N]
    w_all = jnp.asarray(np.stack(w_list, 0), jnp.float32)         # [L, 3, 9, 8, 8]
    b_all = jnp.asarray(np.stack(b_list, 0), jnp.float32)         # [L, 3, 8, 1]

    # base sample z ~ Uniform(0, 2*pi) over links [B, 2, H, W]
    key = jax.random.PRNGKey(0)
    z = jax.random.uniform(key, (B, 2, H, W), dtype=jnp.float32,
                           minval=0.0, maxval=TWO_PI)

    x, logq = forward(z, masks_all, w_all, b_all)
    x = jax.block_until_ready(x)
    logq = jax.block_until_ready(logq)

    assert x.shape == (B, 2, H, W), x.shape
    assert logq.shape == (B,), logq.shape
    assert bool(jnp.all(jnp.isfinite(x)))
    assert bool(jnp.all(jnp.isfinite(logq)))
    print("KERNEL_OK")
</pallas_src>

<mosaic_0001>
module attributes {stable_mosaic.version = 11 : i64} {
  func.func @kernel(%arg0: memref<2x512xf32, #tpu.memory_space<vmem>>, %arg1: memref<16x4x512xf32, #tpu.memory_space<vmem>>, %arg2: memref<16x3x9x8x8xf32, #tpu.memory_space<vmem>>, %arg3: memref<16x3x8x1xf32, #tpu.memory_space<vmem>>, %arg4: memref<2x512xf32, #tpu.memory_space<vmem>>, %arg5: memref<1x512xf32, #tpu.memory_space<vmem>>) attributes {dimension_semantics = [], scalar_prefetch = 0 : i64, scratch_operands = 0 : i64, tpu.core_type = #tpu.core_type<tc>} {
    %0 = tpu.iota {dimensions = array<i32: 1>} : vector<8x512xi32>
    %c16_i32 = arith.constant 16 : i32
    %c0_i32 = arith.constant 0 : i32
    %1 = arith.cmpi eq, %c16_i32, %c0_i32 : i32
    %c1_i32 = arith.constant 1 : i32
    %2 = arith.select %1, %c1_i32, %c16_i32 : i32
    %3 = vector.broadcast %2 : i32 to vector<8x512xi32>
    %4 = arith.remsi %0, %3 : vector<8x512xi32>
    %c0_i32_0 = arith.constant 0 : i32
    %5 = vector.broadcast %c0_i32_0 : i32 to vector<8x512xi32>
    %6 = arith.cmpi ne, %4, %5 : vector<8x512xi32>
    %c0_i32_1 = arith.constant 0 : i32
    %7 = vector.broadcast %c0_i32_1 : i32 to vector<8x512xi32>
    %8 = arith.cmpi slt, %4, %7 : vector<8x512xi32>
    %c0_i32_2 = arith.constant 0 : i32
    %9 = arith.cmpi slt, %2, %c0_i32_2 : i32
    %10 = vector.broadcast %9 : i1 to vector<8x512xi1>
    %11 = vector.broadcast %10 : vector<8x512xi1> to vector<8x512xi1>
    %12 = arith.xori %8, %11 : vector<8x512xi1>
    %13 = arith.andi %12, %6 : vector<8x512xi1>
    %14 = vector.broadcast %2 : i32 to vector<8x512xi32>
    %15 = arith.addi %4, %14 : vector<8x512xi32>
    %16 = arith.select %13, %15, %4 : vector<8x512xi1>, vector<8x512xi32>
    %c15_i32 = arith.constant 15 : i32
    %17 = vector.broadcast %c15_i32 : i32 to vector<8x512xi32>
    %18 = arith.cmpi eq, %16, %17 : vector<8x512xi32>
    %c0_i32_3 = arith.constant 0 : i32
    %19 = vector.broadcast %c0_i32_3 : i32 to vector<8x512xi32>
    %20 = arith.cmpi eq, %16, %19 : vector<8x512xi32>
    %21 = vector.extract_strided_slice %18 {offsets = [0, 0], sizes = [1, 512], strides = [1, 1]} : vector<8x512xi1> to vector<1x512xi1>
    %cst = arith.constant 0.000000e+00 : f32
    %22 = vector.broadcast %cst : f32 to vector<6x512xf32>
    %c0 = arith.constant 0 : index
    %c0_4 = arith.constant 0 : index
    %23 = vector.load %arg0[%c0, %c0_4] : memref<2x512xf32, #tpu.memory_space<vmem>>, vector<2x512xf32>
    %cst_5 = arith.constant 0.000000e+00 : f32
    %24 = vector.broadcast %cst_5 : f32 to vector<1x512xf32>
    %c0_i32_6 = arith.constant 0 : i32
    %c16_i32_7 = arith.constant 16 : i32
    %25 = arith.addi %c0_i32_6, %c16_i32_7 : i32
    %c1_i32_8 = arith.constant 1 : i32
    %26:2 = scf.for %arg6 = %c0_i32_6 to %25 step %c1_i32_8 iter_args(%arg7 = %23, %arg8 = %24) -> (vector<2x512xf32>, vector<1x512xf32>)  : i32 {
      %29 = arith.index_cast %arg6 : i32 to index
      %c0_14 = arith.constant 0 : index
      %c0_15 = arith.constant 0 : index
      %30 = vector.load %arg1[%29, %c0_14, %c0_15] : memref<16x4x512xf32, #tpu.memory_space<vmem>>, vector<1x4x512xf32>
      %31 = vector.shape_cast %30 : vector<1x4x512xf32> to vector<4x512xf32>
      %32 = vector.extract_strided_slice %31 {offsets = [0, 0], sizes = [1, 512], strides = [1, 1]} : vector<4x512xf32> to vector<1x512xf32>
      %33 = vector.extract_strided_slice %31 {offsets = [1, 0], sizes = [1, 512], strides = [1, 1]} : vector<4x512xf32> to vector<1x512xf32>
      %34 = vector.extract_strided_slice %31 {offsets = [2, 0], sizes = [2, 512], strides = [1, 1]} : vector<4x512xf32> to vector<2x512xf32>
      %35 = arith.index_cast %arg6 : i32 to index
      %c0_16 = arith.constant 0 : index
      %c0_17 = arith.constant 0 : index
      %c0_18 = arith.constant 0 : index
      %c0_19 = arith.constant 0 : index
      %36 = vector.load %arg2[%35, %c0_16, %c0_17, %c0_18, %c0_19] : memref<16x3x9x8x8xf32, #tpu.memory_space<vmem>>, vector<1x3x9x8x8xf32>
      %37 = vector.shape_cast %36 : vector<1x3x9x8x8xf32> to vector<3x9x8x8xf32>
      %38 = arith.index_cast %arg6 : i32 to index
      %c0_20 = arith.constant 0 : index
      %c0_21 = arith.constant 0 : index
      %c0_22 = arith.constant 0 : index
      %39 = vector.load %arg3[%38, %c0_20, %c0_21, %c0_22] : memref<16x3x8x1xf32, #tpu.memory_space<vmem>>, vector<1x3x8x1xf32>
      %40 = vector.shape_cast %39 : vector<1x3x8x1xf32> to vector<3x8x1xf32>
      %41 = vector.extract_strided_slice %arg7 {offsets = [0, 0], sizes = [1, 512], strides = [1, 1]} : vector<2x512xf32> to vector<1x512xf32>
      %42 = vector.extract_strided_slice %arg7 {offsets = [1, 0], sizes = [1, 512], strides = [1, 1]} : vector<2x512xf32> to vector<1x512xf32>
      %c480_i32 = arith.constant 480 : i32
      %43 = tpu.dynamic_rotate %42 by %c480_i32 dim 1 : vector<1x512xf32>, i32 -> vector<1x512xf32>
      %44 = arith.addf %41, %43 : vector<1x512xf32>
      %c511_i32 = arith.constant 511 : i32
      %45 = tpu.dynamic_rotate %41 by %c511_i32 dim 1 : vector<1x512xf32>, i32 -> vector<1x512xf32>
      %c15_i32_23 = arith.constant 15 : i32
      %46 = tpu.dynamic_rotate %41 by %c15_i32_23 dim 1 : vector<1x512xf32>, i32 -> vector<1x512xf32>
      %47 = arith.select %21, %46, %45 : vector<1x512xi1>, vector<1x512xf32>
      %48 = arith.subf %44, %47 : vector<1x512xf32>
      %49 = arith.subf %48, %42 : vector<1x512xf32>
      %cst_24 = arith.constant 0.159154937 : f32
      %50 = vector.broadcast %cst_24 : f32 to vector<1x512xf32>
      %51 = arith.mulf %49, %50 : vector<1x512xf32>
      %52 = math.floor %51 : vector<1x512xf32>
      %cst_25 = arith.constant 6.28318548 : f32
      %53 = vector.broadcast %cst_25 : f32 to vector<1x512xf32>
      %54 = arith.mulf %53, %52 : vector<1x512xf32>
      %55 = arith.subf %49, %54 : vector<1x512xf32>
      %56 = arith.mulf %33, %55 : vector<1x512xf32>
      %57 = arith.mulf %32, %55 : vector<1x512xf32>
      %cst_26 = arith.constant 5.000000e-01 : f32
      %58 = vector.broadcast %cst_26 : f32 to vector<1x512xf32>
      %59 = arith.mulf %58, %57 : vector<1x512xf32>
      %60 = tpu.concatenate %56, %59 in 0 : vector<1x512xf32>, vector<1x512xf32> -> vector<2x512xf32>
      %61 = math.cos %60 : vector<2x512xf32>
      %62 = math.sin %60 : vector<2x512xf32>
      %63 = vector.extract_strided_slice %61 {offsets = [1, 0], sizes = [1, 512], strides = [1, 1]} : vector<2x512xf32> to vector<1x512xf32>
      %64 = vector.extract_strided_slice %62 {offsets = [1, 0], sizes = [1, 512], strides = [1, 1]} : vector<2x512xf32> to vector<1x512xf32>
      %65 = vector.extract_strided_slice %61 {offsets = [0, 0], sizes = [1, 512], strides = [1, 1]} : vector<2x512xf32> to vector<1x512xf32>
      %66 = vector.extract_strided_slice %62 {offsets = [0, 0], sizes = [1, 512], strides = [1, 1]} : vector<2x512xf32> to vector<1x512xf32>
      %67 = tpu.concatenate %65, %66, %22 in 0 : vector<1x512xf32>, vector<1x512xf32>, vector<6x512xf32> -> vector<8x512xf32>
      %68 = vector.extract_strided_slice %37 {offsets = [0, 0, 0, 0], sizes = [1, 9, 8, 8], strides = [1, 1, 1, 1]} : vector<3x9x8x8xf32> to vector<1x9x8x8xf32>
      %69 = vector.shape_cast %68 : vector<1x9x8x8xf32> to vector<9x8x8xf32>
      %70 = vector.extract_strided_slice %40 {offsets = [0, 0, 0], sizes = [1, 8, 1], strides = [1, 1, 1]} : vector<3x8x1xf32> to vector<1x8x1xf32>
      %71 = vector.shape_cast %70 : vector<1x8x1xf32> to vector<8x1xf32>
      %c1_i32_27 = arith.constant 1 : i32
      %72 = tpu.dynamic_rotate %67 by %c1_i32_27 dim 1 : vector<8x512xf32>, i32 -> vector<8x512xf32>
      %c497_i32 = arith.constant 497 : i32
      %73 = tpu.dynamic_rotate %67 by %c497_i32 dim 1 : vector<8x512xf32>, i32 -> vector<8x512xf32>
      %74 = arith.select %20, %73, %72 : vector<8x512xi1>, vector<8x512xf32>
      %c511_i32_28 = arith.constant 511 : i32
      %75 = tpu.dynamic_rotate %67 by %c511_i32_28 dim 1 : vector<8x512xf32>, i32 -> vector<8x512xf32>
      %c15_i32_29 = arith.constant 15 : i32
      %76 = tpu.dynamic_rotate %67 by %c15_i32_29 dim 1 : vector<8x512xf32>, i32 -> vector<8x512xf32>
      %77 = arith.select %18, %76, %75 : vector<8x512xi1>, vector<8x512xf32>
      %78 = vector.shape_cast %71 : vector<8x1xf32> to vector<8x1xf32>
      %79 = vector.broadcast %78 : vector<8x1xf32> to vector<8x512xf32>
      %c32_i32 = arith.constant 32 : i32
      %80 = tpu.dynamic_rotate %74 by %c32_i32 dim 1 : vector<8x512xf32>, i32 -> vector<8x512xf32>
      %81 = vector.extract_strided_slice %69 {offsets = [0, 0, 0], sizes = [1, 8, 8], strides = [1, 1, 1]} : vector<9x8x8xf32> to vector<1x8x8xf32>
      %82 = vector.shape_cast %81 : vector<1x8x8xf32> to vector<8x8xf32>
      %cst_30 = arith.constant dense<0.000000e+00> : vector<8x512xf32>
      %83 = tpu.matmul %82, %80, %cst_30 {dimension_numbers = #tpu.dot_dimension_numbers<[1], [0], [0], [1], [0, 0, 1, 1], [], []>} : vector<8x8xf32>, vector<8x512xf32>, vector<8x512xf32> -> vector<8x512xf32>
      %84 = arith.addf %79, %83 : vector<8x512xf32>
      %c32_i32_31 = arith.constant 32 : i32
      %85 = tpu.dynamic_rotate %67 by %c32_i32_31 dim 1 : vector<8x512xf32>, i32 -> vector<8x512xf32>
      %86 = vector.extract_strided_slice %69 {offsets = [1, 0, 0], sizes = [1, 8, 8], strides = [1, 1, 1]} : vector<9x8x8xf32> to vector<1x8x8xf32>
      %87 = vector.shape_cast %86 : vector<1x8x8xf32> to vector<8x8xf32>
      %cst_32 = arith.constant dense<0.000000e+00> : vector<8x512xf32>
      %88 = tpu.matmul %87, %85, %cst_32 {dimension_numbers = #tpu.dot_dimension_numbers<[1], [0], [0], [1], [0, 0, 1, 1], [], []>} : vector<8x8xf32>, vector<8x512xf32>, vector<8x512xf32> -> vector<8x512xf32>
      %89 = arith.addf %84, %88 : vector<8x512xf32>
      %c32_i32_33 = arith.constant 32 : i32
      %90 = tpu.dynamic_rotate %77 by %c32_i32_33 dim 1 : vector<8x512xf32>, i32 -> vector<8x512xf32>
      %91 = vector.extract_strided_slice %69 {offsets = [2, 0, 0], sizes = [1, 8, 8], strides = [1, 1, 1]} : vector<9x8x8xf32> to vector<1x8x8xf32>
      %92 = vector.shape_cast %91 : vector<1x8x8xf32> to vector<8x8xf32>
      %cst_34 = arith.constant dense<0.000000e+00> : vector<8x512xf32>
      %93 = tpu.matmul %92, %90, %cst_34 {dimension_numbers = #tpu.dot_dimension_numbers<[1], [0], [0], [1], [0, 0, 1, 1], [], []>} : vector<8x8xf32>, vector<8x512xf32>, vector<8x512xf32> -> vector<8x512xf32>
      %94 = arith.addf %89, %93 : vector<8x512xf32>
      %95 = vector.extract_strided_slice %69 {offsets = [3, 0, 0], sizes = [1, 8, 8], strides = [1, 1, 1]} : vector<9x8x8xf32> to vector<1x8x8xf32>
      %96 = vector.shape_cast %95 : vector<1x8x8xf32> to vector<8x8xf32>
      %cst_35 = arith.constant dense<0.000000e+00> : vector<8x512xf32>
      %97 = tpu.matmul %96, %74, %cst_35 {dimension_numbers = #tpu.dot_dimension_numbers<[1], [0], [0], [1], [0, 0, 1, 1], [], []>} : vector<8x8xf32>, vector<8x512xf32>, vector<8x512xf32> -> vector<8x512xf32>
      %98 = arith.addf %94, %97 : vector<8x512xf32>
      %99 = vector.extract_strided_slice %69 {offsets = [4, 0, 0], sizes = [1, 8, 8], strides = [1, 1, 1]} : vector<9x8x8xf32> to vector<1x8x8xf32>
      %100 = vector.shape_cast %99 : vector<1x8x8xf32> to vector<8x8xf32>
      %cst_36 = arith.constant dense<0.000000e+00> : vector<8x512xf32>
      %101 = tpu.matmul %100, %67, %cst_36 {dimension_numbers = #tpu.dot_dimension_numbers<[1], [0], [0], [1], [0, 0, 1, 1], [], []>} : vector<8x8xf32>, vector<8x512xf32>, vector<8x512xf32> -> vector<8x512xf32>
      %102 = arith.addf %98, %101 : vector<8x512xf32>
      %103 = vector.extract_strided_slice %69 {offsets = [5, 0, 0], sizes = [1, 8, 8], strides = [1, 1, 1]} : vector<9x8x8xf32> to vector<1x8x8xf32>
      %104 = vector.shape_cast %103 : vector<1x8x8xf32> to vector<8x8xf32>
      %cst_37 = arith.constant dense<0.000000e+00> : vector<8x512xf32>
      %105 = tpu.matmul %104, %77, %cst_37 {dimension_numbers = #tpu.dot_dimension_numbers<[1], [0], [0], [1], [0, 0, 1, 1], [], []>} : vector<8x8xf32>, vector<8x512xf32>, vector<8x512xf32> -> vector<8x512xf32>
      %106 = arith.addf %102, %105 : vector<8x512xf32>
      %c480_i32_38 = arith.constant 480 : i32
      %107 = tpu.dynamic_rotate %74 by %c480_i32_38 dim 1 : vector<8x512xf32>, i32 -> vector<8x512xf32>
      %108 = vector.extract_strided_slice %69 {offsets = [6, 0, 0], sizes = [1, 8, 8], strides = [1, 1, 1]} : vector<9x8x8xf32> to vector<1x8x8xf32>
      %109 = vector.shape_cast %108 : vector<1x8x8xf32> to vector<8x8xf32>
      %cst_39 = arith.constant dense<0.000000e+00> : vector<8x512xf32>
      %110 = tpu.matmul %109, %107, %cst_39 {dimension_numbers = #tpu.dot_dimension_numbers<[1], [0], [0], [1], [0, 0, 1, 1], [], []>} : vector<8x8xf32>, vector<8x512xf32>, vector<8x512xf32> -> vector<8x512xf32>
      %111 = arith.addf %106, %110 : vector<8x512xf32>
      %c480_i32_40 = arith.constant 480 : i32
      %112 = tpu.dynamic_rotate %67 by %c480_i32_40 dim 1 : vector<8x512xf32>, i32 -> vector<8x512xf32>
      %113 = vector.extract_strided_slice %69 {offsets = [7, 0, 0], sizes = [1, 8, 8], strides = [1, 1, 1]} : vector<9x8x8xf32> to vector<1x8x8xf32>
      %114 = vector.shape_cast %113 : vector<1x8x8xf32> to vector<8x8xf32>
      %cst_41 = arith.constant dense<0.000000e+00> : vector<8x512xf32>
      %115 = tpu.matmul %114, %112, %cst_41 {dimension_numbers = #tpu.dot_dimension_numbers<[1], [0], [0], [1], [0, 0, 1, 1], [], []>} : vector<8x8xf32>, vector<8x512xf32>, vector<8x512xf32> -> vector<8x512xf32>
      %116 = arith.addf %111, %115 : vector<8x512xf32>
      %c480_i32_42 = arith.constant 480 : i32
      %117 = tpu.dynamic_rotate %77 by %c480_i32_42 dim 1 : vector<8x512xf32>, i32 -> vector<8x512xf32>
      %118 = vector.extract_strided_slice %69 {offsets = [8, 0, 0], sizes = [1, 8, 8], strides = [1, 1, 1]} : vector<9x8x8xf32> to vector<1x8x8xf32>
      %119 = vector.shape_cast %118 : vector<1x8x8xf32> to vector<8x8xf32>
      %cst_43 = arith.constant dense<0.000000e+00> : vector<8x512xf32>
      %120 = tpu.matmul %119, %117, %cst_43 {dimension_numbers = #tpu.dot_dimension_numbers<[1], [0], [0], [1], [0, 0, 1, 1], [], []>} : vector<8x8xf32>, vector<8x512xf32>, vector<8x512xf32> -> vector<8x512xf32>
      %121 = arith.addf %116, %120 : vector<8x512xf32>
      %cst_44 = arith.constant 0.000000e+00 : f32
      %122 = vector.broadcast %cst_44 : f32 to vector<8x512xf32>
      %123 = arith.cmpf ogt, %121, %122 : vector<8x512xf32>
      %cst_45 = arith.constant 0.00999999977 : f32
      %124 = vector.broadcast %cst_45 : f32 to vector<8x512xf32>
      %125 = arith.mulf %124, %121 : vector<8x512xf32>
      %126 = arith.select %123, %121, %125 : vector<8x512xi1>, vector<8x512xf32>
      %127 = vector.extract_strided_slice %37 {offsets = [1, 0, 0, 0], sizes = [1, 9, 8, 8], strides = [1, 1, 1, 1]} : vector<3x9x8x8xf32> to vector<1x9x8x8xf32>
      %128 = vector.shape_cast %127 : vector<1x9x8x8xf32> to vector<9x8x8xf32>
      %129 = vector.extract_strided_slice %40 {offsets = [1, 0, 0], sizes = [1, 8, 1], strides = [1, 1, 1]} : vector<3x8x1xf32> to vector<1x8x1xf32>
      %130 = vector.shape_cast %129 : vector<1x8x1xf32> to vector<8x1xf32>
      %c1_i32_46 = arith.constant 1 : i32
      %131 = tpu.dynamic_rotate %126 by %c1_i32_46 dim 1 : vector<8x512xf32>, i32 -> vector<8x512xf32>
      %c497_i32_47 = arith.constant 497 : i32
      %132 = tpu.dynamic_rotate %126 by %c497_i32_47 dim 1 : vector<8x512xf32>, i32 -> vector<8x512xf32>
      %133 = arith.select %20, %132, %131 : vector<8x512xi1>, vector<8x512xf32>
      %c511_i32_48 = arith.constant 511 : i32
      %134 = tpu.dynamic_rotate %126 by %c511_i32_48 dim 1 : vector<8x512xf32>, i32 -> vector<8x512xf32>
      %c15_i32_49 = arith.constant 15 : i32
      %135 = tpu.dynamic_rotate %126 by %c15_i32_49 dim 1 : vector<8x512xf32>, i32 -> vector<8x512xf32>
      %136 = arith.select %18, %135, %134 : vector<8x512xi1>, vector<8x512xf32>
      %137 = vector.shape_cast %130 : vector<8x1xf32> to vector<8x1xf32>
      %138 = vector.broadcast %137 : vector<8x1xf32> to vector<8x512xf32>
      %c32_i32_50 = arith.constant 32 : i32
      %139 = tpu.dynamic_rotate %133 by %c32_i32_50 dim 1 : vector<8x512xf32>, i32 -> vector<8x512xf32>
      %140 = vector.extract_strided_slice %128 {offsets = [0, 0, 0], sizes = [1, 8, 8], strides = [1, 1, 1]} : vector<9x8x8xf32> to vector<1x8x8xf32>
      %141 = vector.shape_cast %140 : vector<1x8x8xf32> to vector<8x8xf32>
      %cst_51 = arith.constant dense<0.000000e+00> : vector<8x512xf32>
      %142 = tpu.matmul %141, %139, %cst_51 {dimension_numbers = #tpu.dot_dimension_numbers<[1], [0], [0], [1], [0, 0, 1, 1], [], []>} : vector<8x8xf32>, vector<8x512xf32>, vector<8x512xf32> -> vector<8x512xf32>
      %143 = arith.addf %138, %142 : vector<8x512xf32>
      %c32_i32_52 = arith.constant 32 : i32
      %144 = tpu.dynamic_rotate %126 by %c32_i32_52 dim 1 : vector<8x512xf32>, i32 -> vector<8x512xf32>
      %145 = vector.extract_strided_slice %128 {offsets = [1, 0, 0], sizes = [1, 8, 8], strides = [1, 1, 1]} : vector<9x8x8xf32> to vector<1x8x8xf32>
      %146 = vector.shape_cast %145 : vector<1x8x8xf32> to vector<8x8xf32>
      %cst_53 = arith.constant dense<0.000000e+00> : vector<8x512xf32>
      %147 = tpu.matmul %146, %144, %cst_53 {dimension_numbers = #tpu.dot_dimension_numbers<[1], [0], [0], [1], [0, 0, 1, 1], [], []>} : vector<8x8xf32>, vector<8x512xf32>, vector<8x512xf32> -> vector<8x512xf32>
      %148 = arith.addf %143, %147 : vector<8x512xf32>
      %c32_i32_54 = arith.constant 32 : i32
      %149 = tpu.dynamic_rotate %136 by %c32_i32_54 dim 1 : vector<8x512xf32>, i32 -> vector<8x512xf32>
      %150 = vector.extract_strided_slice %128 {offsets = [2, 0, 0], sizes = [1, 8, 8], strides = [1, 1, 1]} : vector<9x8x8xf32> to vector<1x8x8xf32>
      %151 = vector.shape_cast %150 : vector<1x8x8xf32> to vector<8x8xf32>
      %cst_55 = arith.constant dense<0.000000e+00> : vector<8x512xf32>
      %152 = tpu.matmul %151, %149, %cst_55 {dimension_numbers = #tpu.dot_dimension_numbers<[1], [0], [0], [1], [0, 0, 1, 1], [], []>} : vector<8x8xf32>, vector<8x512xf32>, vector<8x512xf32> -> vector<8x512xf32>
      %153 = arith.addf %148, %152 : vector<8x512xf32>
      %154 = vector.extract_strided_slice %128 {offsets = [3, 0, 0], sizes = [1, 8, 8], strides = [1, 1, 1]} : vector<9x8x8xf32> to vector<1x8x8xf32>
      %155 = vector.shape_cast %154 : vector<1x8x8xf32> to vector<8x8xf32>
      %cst_56 = arith.constant dense<0.000000e+00> : vector<8x512xf32>
      %156 = tpu.matmul %155, %133, %cst_56 {dimension_numbers = #tpu.dot_dimension_numbers<[1], [0], [0], [1], [0, 0, 1, 1], [], []>} : vector<8x8xf32>, vector<8x512xf32>, vector<8x512xf32> -> vector<8x512xf32>
      %157 = arith.addf %153, %156 : vector<8x512xf32>
      %158 = vector.extract_strided_slice %128 {offsets = [4, 0, 0], sizes = [1, 8, 8], strides = [1, 1, 1]} : vector<9x8x8xf32> to vector<1x8x8xf32>
      %159 = vector.shape_cast %158 : vector<1x8x8xf32> to vector<8x8xf32>
      %cst_57 = arith.constant dense<0.000000e+00> : vector<8x512xf32>
      %160 = tpu.matmul %159, %126, %cst_57 {dimension_numbers = #tpu.dot_dimension_numbers<[1], [0], [0], [1], [0, 0, 1, 1], [], []>} : vector<8x8xf32>, vector<8x512xf32>, vector<8x512xf32> -> vector<8x512xf32>
      %161 = arith.addf %157, %160 : vector<8x512xf32>
      %162 = vector.extract_strided_slice %128 {offsets = [5, 0, 0], sizes = [1, 8, 8], strides = [1, 1, 1]} : vector<9x8x8xf32> to vector<1x8x8xf32>
      %163 = vector.shape_cast %162 : vector<1x8x8xf32> to vector<8x8xf32>
      %cst_58 = arith.constant dense<0.000000e+00> : vector<8x512xf32>
      %164 = tpu.matmul %163, %136, %cst_58 {dimension_numbers = #tpu.dot_dimension_numbers<[1], [0], [0], [1], [0, 0, 1, 1], [], []>} : vector<8x8xf32>, vector<8x512xf32>, vector<8x512xf32> -> vector<8x512xf32>
      %165 = arith.addf %161, %164 : vector<8x512xf32>
      %c480_i32_59 = arith.constant 480 : i32
      %166 = tpu.dynamic_rotate %133 by %c480_i32_59 dim 1 : vector<8x512xf32>, i32 -> vector<8x512xf32>
      %167 = vector.extract_strided_slice %128 {offsets = [6, 0, 0], sizes = [1, 8, 8], strides = [1, 1, 1]} : vector<9x8x8xf32> to vector<1x8x8xf32>
      %168 = vector.shape_cast %167 : vector<1x8x8xf32> to vector<8x8xf32>
      %cst_60 = arith.constant dense<0.000000e+00> : vector<8x512xf32>
      %169 = tpu.matmul %168, %166, %cst_60 {dimension_numbers = #tpu.dot_dimension_numbers<[1], [0], [0], [1], [0, 0, 1, 1], [], []>} : vector<8x8xf32>, vector<8x512xf32>, vector<8x512xf32> -> vector<8x512xf32>
      %170 = arith.addf %165, %169 : vector<8x512xf32>
      %c480_i32_61 = arith.constant 480 : i32
      %171 = tpu.dynamic_rotate %126 by %c480_i32_61 dim 1 : vector<8x512xf32>, i32 -> vector<8x512xf32>
      %172 = vector.extract_strided_slice %128 {offsets = [7, 0, 0], sizes = [1, 8, 8], strides = [1, 1, 1]} : vector<9x8x8xf32> to vector<1x8x8xf32>
      %173 = vector.shape_cast %172 : vector<1x8x8xf32> to vector<8x8xf32>
      %cst_62 = arith.constant dense<0.000000e+00> : vector<8x512xf32>
      %174 = tpu.matmul %173, %171, %cst_62 {dimension_numbers = #tpu.dot_dimension_numbers<[1], [0], [0], [1], [0, 0, 1, 1], [], []>} : vector<8x8xf32>, vector<8x512xf32>, vector<8x512xf32> -> vector<8x512xf32>
      %175 = arith.addf %170, %174 : vector<8x512xf32>
      %c480_i32_63 = arith.constant 480 : i32
      %176 = tpu.dynamic_rotate %136 by %c480_i32_63 dim 1 : vector<8x512xf32>, i32 -> vector<8x512xf32>
      %177 = vector.extract_strided_slice %128 {offsets = [8, 0, 0], sizes = [1, 8, 8], strides = [1, 1, 1]} : vector<9x8x8xf32> to vector<1x8x8xf32>
      %178 = vector.shape_cast %177 : vector<1x8x8xf32> to vector<8x8xf32>
      %cst_64 = arith.constant dense<0.000000e+00> : vector<8x512xf32>
      %179 = tpu.matmul %178, %176, %cst_64 {dimension_numbers = #tpu.dot_dimension_numbers<[1], [0], [0], [1], [0, 0, 1, 1], [], []>} : vector<8x8xf32>, vector<8x512xf32>, vector<8x512xf32> -> vector<8x512xf32>
      %180 = arith.addf %175, %179 : vector<8x512xf32>
      %cst_65 = arith.constant 0.000000e+00 : f32
      %181 = vector.broadcast %cst_65 : f32 to vector<8x512xf32>
      %182 = arith.cmpf ogt, %180, %181 : vector<8x512xf32>
      %cst_66 = arith.constant 0.00999999977 : f32
      %183 = vector.broadcast %cst_66 : f32 to vector<8x512xf32>
      %184 = arith.mulf %183, %180 : vector<8x512xf32>
      %185 = arith.select %182, %180, %184 : vector<8x512xi1>, vector<8x512xf32>
      %186 = vector.extract_strided_slice %37 {offsets = [2, 0, 0, 0], sizes = [1, 9, 8, 8], strides = [1, 1, 1, 1]} : vector<3x9x8x8xf32> to vector<1x9x8x8xf32>
      %187 = vector.shape_cast %186 : vector<1x9x8x8xf32> to vector<9x8x8xf32>
      %188 = vector.extract_strided_slice %40 {offsets = [2, 0, 0], sizes = [1, 8, 1], strides = [1, 1, 1]} : vector<3x8x1xf32> to vector<1x8x1xf32>
      %189 = vector.shape_cast %188 : vector<1x8x1xf32> to vector<8x1xf32>
      %c1_i32_67 = arith.constant 1 : i32
      %190 = tpu.dynamic_rotate %185 by %c1_i32_67 dim 1 : vector<8x512xf32>, i32 -> vector<8x512xf32>
      %c497_i32_68 = arith.constant 497 : i32
      %191 = tpu.dynamic_rotate %185 by %c497_i32_68 dim 1 : vector<8x512xf32>, i32 -> vector<8x512xf32>
      %192 = arith.select %20, %191, %190 : vector<8x512xi1>, vector<8x512xf32>
      %c511_i32_69 = arith.constant 511 : i32
      %193 = tpu.dynamic_rotate %185 by %c511_i32_69 dim 1 : vector<8x512xf32>, i32 -> vector<8x512xf32>
      %c15_i32_70 = arith.constant 15 : i32
      %194 = tpu.dynamic_rotate %185 by %c15_i32_70 dim 1 : vector<8x512xf32>, i32 -> vector<8x512xf32>
      %195 = arith.select %18, %194, %193 : vector<8x512xi1>, vector<8x512xf32>
      %196 = vector.shape_cast %189 : vector<8x1xf32> to vector<8x1xf32>
      %197 = vector.broadcast %196 : vector<8x1xf32> to vector<8x512xf32>
      %c32_i32_71 = arith.constant 32 : i32
      %198 = tpu.dynamic_rotate %192 by %c32_i32_71 dim 1 : vector<8x512xf32>, i32 -> vector<8x512xf32>
      %199 = vector.extract_strided_slice %187 {offsets = [0, 0, 0], sizes = [1, 8, 8], strides = [1, 1, 1]} : vector<9x8x8xf32> to vector<1x8x8xf32>
      %200 = vector.shape_cast %199 : vector<1x8x8xf32> to vector<8x8xf32>
      %cst_72 = arith.constant dense<0.000000e+00> : vector<8x512xf32>
      %201 = tpu.matmul %200, %198, %cst_72 {dimension_numbers = #tpu.dot_dimension_numbers<[1], [0], [0], [1], [0, 0, 1, 1], [], []>} : vector<8x8xf32>, vector<8x512xf32>, vector<8x512xf32> -> vector<8x512xf32>
      %202 = arith.addf %197, %201 : vector<8x512xf32>
      %c32_i32_73 = arith.constant 32 : i32
      %203 = tpu.dynamic_rotate %185 by %c32_i32_73 dim 1 : vector<8x512xf32>, i32 -> vector<8x512xf32>
      %204 = vector.extract_strided_slice %187 {offsets = [1, 0, 0], sizes = [1, 8, 8], strides = [1, 1, 1]} : vector<9x8x8xf32> to vector<1x8x8xf32>
      %205 = vector.shape_cast %204 : vector<1x8x8xf32> to vector<8x8xf32>
      %cst_74 = arith.constant dense<0.000000e+00> : vector<8x512xf32>
      %206 = tpu.matmul %205, %203, %cst_74 {dimension_numbers = #tpu.dot_dimension_numbers<[1], [0], [0], [1], [0, 0, 1, 1], [], []>} : vector<8x8xf32>, vector<8x512xf32>, vector<8x512xf32> -> vector<8x512xf32>
      %207 = arith.addf %202, %206 : vector<8x512xf32>
      %c32_i32_75 = arith.constant 32 : i32
      %208 = tpu.dynamic_rotate %195 by %c32_i32_75 dim 1 : vector<8x512xf32>, i32 -> vector<8x512xf32>
      %209 = vector.extract_strided_slice %187 {offsets = [2, 0, 0], sizes = [1, 8, 8], strides = [1, 1, 1]} : vector<9x8x8xf32> to vector<1x8x8xf32>
      %210 = vector.shape_cast %209 : vector<1x8x8xf32> to vector<8x8xf32>
      %cst_76 = arith.constant dense<0.000000e+00> : vector<8x512xf32>
      %211 = tpu.matmul %210, %208, %cst_76 {dimension_numbers = #tpu.dot_dimension_numbers<[1], [0], [0], [1], [0, 0, 1, 1], [], []>} : vector<8x8xf32>, vector<8x512xf32>, vector<8x512xf32> -> vector<8x512xf32>
      %212 = arith.addf %207, %211 : vector<8x512xf32>
      %213 = vector.extract_strided_slice %187 {offsets = [3, 0, 0], sizes = [1, 8, 8], strides = [1, 1, 1]} : vector<9x8x8xf32> to vector<1x8x8xf32>
      %214 = vector.shape_cast %213 : vector<1x8x8xf32> to vector<8x8xf32>
      %cst_77 = arith.constant dense<0.000000e+00> : vector<8x512xf32>
      %215 = tpu.matmul %214, %192, %cst_77 {dimension_numbers = #tpu.dot_dimension_numbers<[1], [0], [0], [1], [0, 0, 1, 1], [], []>} : vector<8x8xf32>, vector<8x512xf32>, vector<8x512xf32> -> vector<8x512xf32>
      %216 = arith.addf %212, %215 : vector<8x512xf32>
      %217 = vector.extract_strided_slice %187 {offsets = [4, 0, 0], sizes = [1, 8, 8], strides = [1, 1, 1]} : vector<9x8x8xf32> to vector<1x8x8xf32>
      %218 = vector.shape_cast %217 : vector<1x8x8xf32> to vector<8x8xf32>
      %cst_78 = arith.constant dense<0.000000e+00> : vector<8x512xf32>
      %219 = tpu.matmul %218, %185, %cst_78 {dimension_numbers = #tpu.dot_dimension_numbers<[1], [0], [0], [1], [0, 0, 1, 1], [], []>} : vector<8x8xf32>, vector<8x512xf32>, vector<8x512xf32> -> vector<8x512xf32>
      %220 = arith.addf %216, %219 : vector<8x512xf32>
      %221 = vector.extract_strided_slice %187 {offsets = [5, 0, 0], sizes = [1, 8, 8], strides = [1, 1, 1]} : vector<9x8x8xf32> to vector<1x8x8xf32>
      %222 = vector.shape_cast %221 : vector<1x8x8xf32> to vector<8x8xf32>
      %cst_79 = arith.constant dense<0.000000e+00> : vector<8x512xf32>
      %223 = tpu.matmul %222, %195, %cst_79 {dimension_numbers = #tpu.dot_dimension_numbers<[1], [0], [0], [1], [0, 0, 1, 1], [], []>} : vector<8x8xf32>, vector<8x512xf32>, vector<8x512xf32> -> vector<8x512xf32>
      %224 = arith.addf %220, %223 : vector<8x512xf32>
      %c480_i32_80 = arith.constant 480 : i32
      %225 = tpu.dynamic_rotate %192 by %c480_i32_80 dim 1 : vector<8x512xf32>, i32 -> vector<8x512xf32>
      %226 = vector.extract_strided_slice %187 {offsets = [6, 0, 0], sizes = [1, 8, 8], strides = [1, 1, 1]} : vector<9x8x8xf32> to vector<1x8x8xf32>
      %227 = vector.shape_cast %226 : vector<1x8x8xf32> to vector<8x8xf32>
      %cst_81 = arith.constant dense<0.000000e+00> : vector<8x512xf32>
      %228 = tpu.matmul %227, %225, %cst_81 {dimension_numbers = #tpu.dot_dimension_numbers<[1], [0], [0], [1], [0, 0, 1, 1], [], []>} : vector<8x8xf32>, vector<8x512xf32>, vector<8x512xf32> -> vector<8x512xf32>
      %229 = arith.addf %224, %228 : vector<8x512xf32>
      %c480_i32_82 = arith.constant 480 : i32
      %230 = tpu.dynamic_rotate %185 by %c480_i32_82 dim 1 : vector<8x512xf32>, i32 -> vector<8x512xf32>
      %231 = vector.extract_strided_slice %187 {offsets = [7, 0, 0], sizes = [1, 8, 8], strides = [1, 1, 1]} : vector<9x8x8xf32> to vector<1x8x8xf32>
      %232 = vector.shape_cast %231 : vector<1x8x8xf32> to vector<8x8xf32>
      %cst_83 = arith.constant dense<0.000000e+00> : vector<8x512xf32>
      %233 = tpu.matmul %232, %230, %cst_83 {dimension_numbers = #tpu.dot_dimension_numbers<[1], [0], [0], [1], [0, 0, 1, 1], [], []>} : vector<8x8xf32>, vector<8x512xf32>, vector<8x512xf32> -> vector<8x512xf32>
      %234 = arith.addf %229, %233 : vector<8x512xf32>
      %c480_i32_84 = arith.constant 480 : i32
      %235 = tpu.dynamic_rotate %195 by %c480_i32_84 dim 1 : vector<8x512xf32>, i32 -> vector<8x512xf32>
      %236 = vector.extract_strided_slice %187 {offsets = [8, 0, 0], sizes = [1, 8, 8], strides = [1, 1, 1]} : vector<9x8x8xf32> to vector<1x8x8xf32>
      %237 = vector.shape_cast %236 : vector<1x8x8xf32> to vector<8x8xf32>
      %cst_85 = arith.constant dense<0.000000e+00> : vector<8x512xf32>
      %238 = tpu.matmul %237, %235, %cst_85 {dimension_numbers = #tpu.dot_dimension_numbers<[1], [0], [0], [1], [0, 0, 1, 1], [], []>} : vector<8x8xf32>, vector<8x512xf32>, vector<8x512xf32> -> vector<8x512xf32>
      %239 = arith.addf %234, %238 : vector<8x512xf32>
      %240 = vector.extract_strided_slice %239 {offsets = [0, 0], sizes = [2, 512], strides = [1, 1]} : vector<8x512xf32> to vector<2x512xf32>
      %241 = vector.extract_strided_slice %239 {offsets = [2, 0], sizes = [1, 512], strides = [1, 1]} : vector<8x512xf32> to vector<1x512xf32>
      %242 = math.exp %240 : vector<2x512xf32>
      %243 = tpu.reciprocal %242 {approx = true} : vector<2x512xf32> -> vector<2x512xf32>
      %244 = arith.mulf %63, %63 : vector<1x512xf32>
      %245 = arith.mulf %64, %64 : vector<1x512xf32>
      %246 = vector.broadcast %244 : vector<1x512xf32> to vector<2x512xf32>
      %247 = arith.mulf %243, %246 : vector<2x512xf32>
      %248 = vector.broadcast %245 : vector<1x512xf32> to vector<2x512xf32>
      %249 = arith.mulf %242, %248 : vector<2x512xf32>
      %250 = arith.addf %247, %249 : vector<2x512xf32>
      %251 = tpu.reciprocal %250 {approx = true} : vector<2x512xf32> -> vector<2x512xf32>
      %cst_86 = arith.constant dense<0.000000e+00> : vector<512xf32>
      %252 = vector.multi_reduction <add>, %251, %cst_86 [0] : vector<2x512xf32> to vector<512xf32>
      %253 = vector.shape_cast %252 : vector<512xf32> to vector<1x512xf32>
      %254 = math.log %253 : vector<1x512xf32>
      %cst_87 = arith.constant 0.693147182 : f32
      %255 = vector.broadcast %cst_87 : f32 to vector<1x512xf32>
      %256 = arith.subf %254, %255 : vector<1x512xf32>
      %257 = arith.mulf %32, %256 : vector<1x512xf32>
      %258 = tpu.reciprocal %63 {approx = true} : vector<1x512xf32> -> vector<1x512xf32>
      %259 = arith.mulf %64, %258 : vector<1x512xf32>
      %260 = vector.broadcast %259 : vector<1x512xf32> to vector<2x512xf32>
      %261 = arith.mulf %242, %260 : vector<2x512xf32>
      %262 = math.absf %261 : vector<2x512xf32>
      %cst_88 = arith.constant 2.41421366 : f32
      %263 = vector.broadcast %cst_88 : f32 to vector<2x512xf32>
      %264 = arith.cmpf ogt, %262, %263 : vector<2x512xf32>
      %cst_89 = arith.constant 0.414213568 : f32
      %265 = vector.broadcast %cst_89 : f32 to vector<2x512xf32>
      %266 = arith.cmpf ogt, %262, %265 : vector<2x512xf32>
      %cst_90 = arith.constant 1.000000e+00 : f32
      %267 = vector.broadcast %cst_90 : f32 to vector<2x512xf32>
      %268 = arith.select %264, %262, %267 : vector<2x512xi1>, vector<2x512xf32>
      %269 = tpu.reciprocal %268 {approx = true} : vector<2x512xf32> -> vector<2x512xf32>
      %cst_91 = arith.constant 0.000000e+00 : f32
      %270 = vector.broadcast %cst_91 : f32 to vector<2x512xf32>
      %271 = arith.subf %270, %269 : vector<2x512xf32>
      %cst_92 = arith.constant 1.000000e+00 : f32
      %272 = vector.broadcast %cst_92 : f32 to vector<2x512xf32>
      %273 = arith.subf %262, %272 : vector<2x512xf32>
      %cst_93 = arith.constant 1.000000e+00 : f32
      %274 = vector.broadcast %cst_93 : f32 to vector<2x512xf32>
      %275 = arith.addf %262, %274 : vector<2x512xf32>
      %276 = tpu.reciprocal %275 {approx = true} : vector<2x512xf32> -> vector<2x512xf32>
      %277 = arith.mulf %273, %276 : vector<2x512xf32>
      %278 = arith.select %266, %277, %262 : vector<2x512xi1>, vector<2x512xf32>
      %279 = arith.select %264, %271, %278 : vector<2x512xi1>, vector<2x512xf32>
      %cst_94 = arith.constant 0.785398185 : f32
      %cst_95 = arith.constant 0.000000e+00 : f32
      %280 = vector.broadcast %cst_94 : f32 to vector<2x512xf32>
      %281 = vector.broadcast %cst_95 : f32 to vector<2x512xf32>
      %282 = arith.select %266, %280, %281 : vector<2x512xi1>, vector<2x512xf32>
      %cst_96 = arith.constant 1.57079637 : f32
      %283 = vector.broadcast %cst_96 : f32 to vector<2x512xf32>
      %284 = arith.select %264, %283, %282 : vector<2x512xi1>, vector<2x512xf32>
      %285 = arith.mulf %279, %279 : vector<2x512xf32>
      %cst_97 = arith.constant 0.0805374458 : f32
      %286 = vector.broadcast %cst_97 : f32 to vector<2x512xf32>
      %287 = arith.mulf %286, %285 : vector<2x512xf32>
      %cst_98 = arith.constant 0.138776854 : f32
      %288 = vector.broadcast %cst_98 : f32 to vector<2x512xf32>
      %289 = arith.subf %287, %288 : vector<2x512xf32>
      %290 = arith.mulf %289, %285 : vector<2x512xf32>
      %cst_99 = arith.constant 0.199777111 : f32
      %291 = vector.broadcast %cst_99 : f32 to vector<2x512xf32>
      %292 = arith.addf %290, %291 : vector<2x512xf32>
      %293 = arith.mulf %292, %285 : vector<2x512xf32>
      %cst_100 = arith.constant 0.333329499 : f32
      %294 = vector.broadcast %cst_100 : f32 to vector<2x512xf32>
      %295 = arith.subf %293, %294 : vector<2x512xf32>
      %296 = arith.mulf %295, %285 : vector<2x512xf32>
      %297 = arith.mulf %296, %279 : vector<2x512xf32>
      %298 = arith.addf %297, %279 : vector<2x512xf32>
      %299 = arith.addf %284, %298 : vector<2x512xf32>
      %cst_101 = arith.constant 0.000000e+00 : f32
      %300 = vector.broadcast %cst_101 : f32 to vector<2x512xf32>
      %301 = arith.cmpf olt, %261, %300 : vector<2x512xf32>
      %cst_102 = arith.constant 0.000000e+00 : f32
      %302 = vector.broadcast %cst_102 : f32 to vector<2x512xf32>
      %303 = arith.subf %302, %299 : vector<2x512xf32>
      %304 = arith.select %301, %303, %299 : vector<2x512xi1>, vector<2x512xf32>
      %cst_103 = arith.constant 2.000000e+00 : f32
      %305 = vector.broadcast %cst_103 : f32 to vector<2x512xf32>
      %306 = arith.mulf %305, %304 : vector<2x512xf32>
      %cst_104 = arith.constant 0.159154937 : f32
      %307 = vector.broadcast %cst_104 : f32 to vector<2x512xf32>
      %308 = arith.mulf %306, %307 : vector<2x512xf32>
      %309 = math.floor %308 : vector<2x512xf32>
      %cst_105 = arith.constant 6.28318548 : f32
      %310 = vector.broadcast %cst_105 : f32 to vector<2x512xf32>
      %311 = arith.mulf %310, %309 : vector<2x512xf32>
      %312 = arith.subf %306, %311 : vector<2x512xf32>
      %cst_106 = arith.constant dense<0.000000e+00> : vector<512xf32>
      %313 = vector.multi_reduction <add>, %312, %cst_106 [0] : vector<2x512xf32> to vector<512xf32>
      %314 = vector.shape_cast %313 : vector<512xf32> to vector<1x512xf32>
      %cst_107 = arith.constant 5.000000e-01 : f32
      %315 = vector.broadcast %cst_107 : f32 to vector<1x512xf32>
      %316 = arith.mulf %314, %315 : vector<1x512xf32>
      %317 = arith.mulf %32, %316 : vector<1x512xf32>
      %318 = arith.addf %317, %241 : vector<1x512xf32>
      %cst_108 = arith.constant 0.159154937 : f32
      %319 = vector.broadcast %cst_108 : f32 to vector<1x512xf32>
      %320 = arith.mulf %318, %319 : vector<1x512xf32>
      %321 = math.floor %320 : vector<1x512xf32>
      %cst_109 = arith.constant 6.28318548 : f32
      %322 = vector.broadcast %cst_109 : f32 to vector<1x512xf32>
      %323 = arith.mulf %322, %321 : vector<1x512xf32>
      %324 = arith.subf %318, %323 : vector<1x512xf32>
      %325 = arith.mulf %32, %324 : vector<1x512xf32>
      %cst_110 = arith.constant 1.000000e+00 : f32
      %326 = vector.broadcast %cst_110 : f32 to vector<1x512xf32>
      %327 = arith.subf %326, %32 : vector<1x512xf32>
      %328 = arith.mulf %327, %55 : vector<1x512xf32>
      %329 = arith.addf %325, %328 : vector<1x512xf32>
      %330 = arith.subf %329, %55 : vector<1x512xf32>
      %cst_111 = arith.constant 0.000000e+00 : f32
      %331 = vector.broadcast %cst_111 : f32 to vector<1x512xf32>
      %332 = arith.subf %331, %330 : vector<1x512xf32>
      %333 = tpu.concatenate %330, %332 in 0 : vector<1x512xf32>, vector<1x512xf32> -> vector<2x512xf32>
      %334 = arith.addf %333, %arg7 : vector<2x512xf32>
      %cst_112 = arith.constant 0.159154937 : f32
      %335 = vector.broadcast %cst_112 : f32 to vector<2x512xf32>
      %336 = arith.mulf %334, %335 : vector<2x512xf32>
      %337 = math.floor %336 : vector<2x512xf32>
      %cst_113 = arith.constant 6.28318548 : f32
      %338 = vector.broadcast %cst_113 : f32 to vector<2x512xf32>
      %339 = arith.mulf %338, %337 : vector<2x512xf32>
      %340 = arith.subf %334, %339 : vector<2x512xf32>
      %341 = arith.mulf %34, %340 : vector<2x512xf32>
      %cst_114 = arith.constant 1.000000e+00 : f32
      %342 = vector.broadcast %cst_114 : f32 to vector<2x512xf32>
      %343 = arith.subf %342, %34 : vector<2x512xf32>
      %344 = arith.mulf %343, %arg7 : vector<2x512xf32>
      %345 = arith.addf %341, %344 : vector<2x512xf32>
      %346 = arith.addf %arg8, %257 : vector<1x512xf32>
      scf.yield %345, %346 : vector<2x512xf32>, vector<1x512xf32>
    }
    %c16_i32_9 = arith.constant 16 : i32
    %c0_10 = arith.constant 0 : index
    %c0_11 = arith.constant 0 : index
    %27 = vector.load %arg4[%c0_10, %c0_11] : memref<2x512xf32, #tpu.memory_space<vmem>>, vector<2x512xf32>
    tpu.vector_store %arg4[%c0_10, %c0_11], %26#0 {strides = array<i32>} : memref<2x512xf32, #tpu.memory_space<vmem>>, vector<2x512xf32>,
    %c0_12 = arith.constant 0 : index
    %c0_13 = arith.constant 0 : index
    %28 = vector.load %arg5[%c0_12, %c0_13] : memref<1x512xf32, #tpu.memory_space<vmem>>, vector<1x512xf32>
    tpu.vector_store %arg5[%c0_12, %c0_13], %26#1 {strides = array<i32>} : memref<1x512xf32, #tpu.memory_space<vmem>>, vector<1x512xf32>,
    return
  }
}

</mosaic_0001>

<bundles_post_ra>
// kernel: neg.1
= control target key start
LH: loop header
LB: loop body
LE: loop exit
PB: predicated region body
PF: predicated region fallthrough
CT: control target
= control target key end

     0   :  { %2 = vsyncpa [#allocation1], 0  ;;  %s70_s0 = inlined_call_operand.vmem [shape: f32[2], index: 0, kind: input, shape index: {}]   ;;  %s71_s1 = inlined_call_operand.hbm [shape: f32[2], index: 1, kind: output, shape index: {}]  }
   0x1   :  { %v3_v0 = vld [vmem:[%s70_s0] sm:$0x1]  ;;  %s44_s0 = smov [#allocation0]  }
   0x2   :  { %v6_v1 = vxor.u32 2147483648, %v3_v0  ;;  %s13_s8 = sshll.u32 %s44_s0, 4  ;;  %s14_s8 = int_to_ptr.vmem [resolvable:$true] %s13_s8 }
   0x3   :  { %s20_s9 = scalar_lea.vmem %s14_s8, 16  ;;  %s24_s10 = scalar_lea.vmem %s14_s8, 32 }
   0x4   :  { %8 = vst [vmem:[#allocation0] sm:$0x1] %v6_v1  ;;  %p21_p0 = scmp.ne.s32.totalorder %s14_s8, %s20_s9  ;;  %p25_p1 = scmp.lt.s32.totalorder %s14_s8, %s14_s8 }
   0x5   :  { %p26_p2 = scmp.lt.s32.totalorder %s24_s10, %s20_s9 }
   0x7   :  { %p27_p3 = por %p26_p2, %p25_p1 }
   0x9   :  { %p28_p4 = pnand %p27_p3, %p21_p0 }
   0xb   :  { %31 = shalt.err (!%p28_p4)
}
   0xc   :  { %s32_s13 = scalar_lea.hbm %s71_s1, 16 }
   0xd   :  { %p33_p5 = scmp.ne.s32.totalorder %s71_s1, %s32_s13  ;;  %p36_p6 = scmp.lt.u32.totalorder %s32_s13, %s71_s1 }
   0xf   :  { %p38_p7 = pnand %p36_p6, %p33_p5 }
  0x11   :  { %41 = shalt.err (!%p38_p7)
}
  0x12   :  { %16 = dma.vmem_to_hbm [thread:$0]  %s14_s8, 16, %s71_s1, [#allocation1]  }
  0x13   :  { %42 = dma.done.wait [#allocation1], 16  }
  0x14   :  { %43 = vsyncadd [#allocation1], 4294967280 }
  0x15   :  { %18 = vsyncpa [#allocation1], 1 }

// kernel: forward.1
= control target key start
LH: loop header
LB: loop body
LE: loop exit
PB: predicated region body
PF: predicated region fallthrough
CT: control target
= control target key end

     0   :  { %v8267_v0 = vlaneseq  ;;  %v6591_v2 = vmov 1983009808   ;;  %v8305_v16 = vmov 0  ;;  %v8308_v17 = vmov 0  ;;  %s8261_s0 = inlined_call_operand.vmem [shape: f32[2,512], index: 0, kind: input, shape index: {}]   ;;  %s8262_s1 = inlined_call_operand.vmem [shape: f32[16,4,512], index: 1, kind: input, shape index: {}]   ;;  %s8263_s2 = inlined_call_operand.vmem [shape: f32[16,3,9,8,8], index: 2, kind: input, shape index: {}]   ;;  %s8264_s3 = inlined_call_operand.vmem [shape: f32[16,3,8,1], index: 3, kind: input, shape index: {}]   ;;  %s8265_s4 = inlined_call_operand.vmem [shape: f32[2,512], index: 4, kind: output, shape index: {0}]   ;;  %s8266_s5 = inlined_call_operand.vmem [shape: f32[1,512], index: 5, kind: output, shape index: {1}]  }
   0x1   :  { %v80_v1 = vld [vmem:[%s8261_s0] sm:$0xff]  ;;  %v84_v3 = vunpack.c.l.s4 %v6591_v2  ;;  %v8311_v20 = vmov 0  ;;  %v6687_v28 = vmov 0.0   ;;  %v6689_v29 = vmov 0.0   ;;  %s6699_s0 = smov 0  }
   0x2   :  { %v6641_v4 = vand.u32 127, %v8267_v0  ;;  %v6644_v5 = vshrl.u32 %v8267_v0, 7  ;;  %v82_v6 = vcombine.high %v80_v1, %v80_v1 }
   0x3   :  { %v85_v7 = vunpack.c.0.s8 %v84_v3 }
   0x4   :  { %8302 = vst [vmem:[#allocation2_spill] sm:$0xff] %v6641_v4  ;;  %8303 = vst [vmem:[#allocation3_spill] sm:$0xff] %v6644_v5  ;;  %v21_v8 = vadd.s32 128, %v6641_v4  ;;  %v22_v9 = vadd.s32 256, %v6641_v4  ;;  %v23_v10 = vadd.s32 384, %v6641_v4  ;;  %v28_v11 = vand.u32 15, %v6641_v4 }
   0x5   :  { %v6651_v12 = vsub.s32 %v85_v7, %v6644_v5 }
   0x6   :  { %v35_v13 = vand.u32 15, %v21_v8  ;;  %v42_v14 = vand.u32 15, %v22_v9  ;;  %v49_v15 = vand.u32 15, %v23_v10  ;;  %vm6653_vm0 = vcmp.eq.s32.totalorder %v28_v11, 15 }
   0x7   :  { %8304 = vst [vmem:[#allocation4_spill] sm:$0xff] %v6651_v12  ;;  %v8306_v16 = vsel %vm6653_vm0, 4294967295, %v8305_v16  ;;  %vm6657_vm1 = vcmp.eq.s32.totalorder %v28_v11, 0  ;;  %v89_v18 = vrot.slane %v80_v1, %v6651_v12   ;;  %v96_v19 = vrot.slane %v82_v6, %v6651_v12  }
   0x8   :  { %8307 = vst [vmem:[#allocation5_spill] sm:$0xff] %v8306_v16  ;;  %v8309_v17 = vsel %vm6657_vm1, 4294967295, %v8308_v17  ;;  %vm6663_vm2 = vcmp.eq.s32.totalorder %v35_v13, 15  ;;  %vm6667_vm3 = vcmp.eq.s32.totalorder %v42_v14, 15  ;;  %vm6671_vm4 = vcmp.eq.s32.totalorder %v49_v15, 15 }
   0x9   :  { %8310 = vst [vmem:[#allocation6_spill] sm:$0xff] %v8309_v17  ;;  %v8312_v20 = vsel %vm6663_vm2, 4294967295, %v8311_v20  ;;  %vm6675_vm5 = vcmp.eq.s32.totalorder %v35_v13, 0  ;;  %vm6679_vm6 = vcmp.eq.s32.totalorder %v42_v14, 0  ;;  %vm6683_vm7 = vcmp.eq.s32.totalorder %v49_v15, 0 }
   0xa   :  { %8313 = vst [vmem:[#allocation7_spill] sm:$0xff] %v8312_v20  ;;  %v97_v26 = vcombine.high %v89_v18, %v89_v18   ;;  %v98_v27 = vcombine.high %v96_v19, %v96_v19  }
   0xb LB: > { %v8327_v4 = vld [vmem:[#allocation2_spill] sm:$0xff]  ;;  %v8328_v5 = vld [vmem:[#allocation3_spill] sm:$0xff]  ;;  %v158_v30 = vrot.slane %v6585_v18, 1  ;;  %v160_v31 = vrot.slane %v6577_v19, 1  ;;  %s6592_s20 = smov 96   ;;  %v159_v32 = vrot.slane %v6581_v26, 1  ;;  %v6581_v26 = vphi %v97_v26, %v8448_v26   ;;  %v6577_v19 = vphi %v96_v19, %v8447_v19   ;;  %v6573_v27 = vphi %v98_v27, %v8446_v27   ;;  %v6569_v29 = vphi %v6689_v29, %v8445_v29   ;;  %v6565_v28 = vphi %v6687_v28, %v8444_v28   ;;  %s6589_s0 = sphi %s6699_s0, %s108_s0   ;;  %v6585_v18 = vphi %v89_v18, %v8449_v18  }
   0xc   : > { %v161_v33 = vrot.slane %v6573_v27, 1  ;;  %s6593_s21 = smov 127   ;;  %s6594_s22 = smov 15   ;;  %vm8270_vm8 = vcmp.lt.s32.totalorder %v8327_v4, 96  ;;  %vm8271_vm9 = vcmp.lt.s32.totalorder %v8327_v4, 15  ;;  %vm8283_vm10 = vcmp.lt.s32.totalorder %v8327_v4, 127 }
   0xd   : > { %166 = vrot.lane.b32.xlu0 %v158_v30, %s6592_s20  ;;  %170 = vrot.lane.b32.xlu1 %v160_v31, %s6592_s20  ;;  %s6261_s23 = sshll.u32 %s6589_s0, 4  ;;  %vm8284_vm11 = vcmask 1040384   ;;  %s6601_s27 = smov 1  }
   0xe   : > { %s6789_s26 = scalar_lea.vmem %s8262_s1, %s6261_s23  ;;  %s6602_s28 = smov 113  }
   0xf   : > { %s6604_s29 = smov 32   ;;  %s149_s30 = smul.u32 24, %s6589_s0 }
  0x10   : > { %s120_s9 = smul.u32 216, %s6589_s0  ;;  %s108_s0 = sadd.s32 1, %s6589_s0  }
  0x11   : > { %168 = vrot.lane.b32.xlu0 %v159_v32, %s6592_s20  ;;  %172 = vrot.lane.b32.xlu1 %v161_v33, %s6592_s20  ;;  %s7377_s8 = scalar_lea.vmem %s8264_s3, %s149_s30  ;;  %p105_p0 = scmp.ge.s32.totalorder %s108_s0, 16  }
  0x12   : > { %s7385_s12 = scalar_lea.vmem %s8263_s2, %s120_s9  ;;  %v8452_v21 = vlaneseq (%p105_p0) }
  0x15   : > { %183 = vrot.lane.b32.xlu0 %v6585_v18, %s6593_s21  ;;  %185 = vrot.lane.b32.xlu1 %v6581_v26, %s6593_s21 }
  0x19   : > { %187 = vrot.lane.b32.xlu0 %v6577_v19, %s6593_s21  ;;  %189 = vrot.lane.b32.xlu1 %v6573_v27, %s6593_s21 }
  0x1d   : > { %196 = vrot.lane.b32.xlu0 %v6585_v18, %s6594_s22  ;;  %198 = vrot.lane.b32.xlu1 %v6581_v26, %s6594_s22 }
  0x21   : > { %200 = vrot.lane.b32.xlu0 %v6577_v19, %s6594_s22  ;;  %202 = vrot.lane.b32.xlu1 %v6573_v27, %s6594_s22 }
  0x7f   : > { %v167_v34 = vpop.permute.xlu0 %166  ;;  %v171_v35 = vpop.permute.xlu1 %170 }
  0x83   : > { %v169_v36 = vpop.permute.xlu0 %168  ;;  %v173_v37 = vpop.permute.xlu1 %172 }
  0x84   : > { %v176_v42 = vsel %vm8270_vm8, %v169_v36, %v171_v35  ;;  %v177_v43 = vsel %vm8270_vm8, %v167_v34, %v169_v36  ;;  %v175_v44 = vsel %vm8270_vm8, %v171_v35, %v173_v37  ;;  %v178_v48 = vsel %vm8270_vm8, %v173_v37, %v167_v34 }
  0x85   : > { %v180_v47 = vadd.f32 %v6581_v26, %v176_v42  ;;  %v179_v52 = vadd.f32 %v6585_v18, %v177_v43  ;;  %v181_v53 = vadd.f32 %v6577_v19, %v175_v44  ;;  %v182_v55 = vadd.f32 %v6573_v27, %v178_v48 }
  0x87   : > { %v184_v38 = vpop.permute.xlu0 %183  ;;  %v186_v39 = vpop.permute.xlu1 %185 }
  0x88   : > { %v194_v56 = vsel %vm8283_vm10, %v184_v38, %v186_v39 }
  0x8b   : > { %v188_v40 = vpop.permute.xlu0 %187  ;;  %v190_v41 = vpop.permute.xlu1 %189 }
  0x8c   : > { %v193_v49 = vsel %vm8283_vm10, %v186_v39, %v188_v40  ;;  %v192_v57 = vsel %vm8283_vm10, %v188_v40, %v190_v41  ;;  %v195_v58 = vsel %vm8283_vm10, %v190_v41, %v184_v38 }
  0x8f   : > { %v197_v45 = vpop.permute.xlu0 %196  ;;  %v199_v46 = vpop.permute.xlu1 %198 }
  0x90   : > { %v207_v50 = vsel %vm8271_vm9, %v197_v45, %v199_v46 }
  0x91   : > { %v210_v51 = vsel %vm6663_vm2, %v207_v50, %v193_v49  ;;  %v119_v49 = vld [vmem:[%s6789_s26 + $0x8] sm:$0xff] }
  0x92   : > { %v214_v54 = vsub.f32 %v180_v47, %v210_v51  ;;  %v6798_v47 = vsub.s32 4, %v8328_v5 }
  0x93   : > { %v201_v59 = vpop.permute.xlu0 %200  ;;  %v203_v60 = vpop.permute.xlu1 %202 }
  0x94   : > { %v218_v61 = vsub.f32 %v214_v54, %v159_v32  ;;  %v206_v62 = vsel %vm8271_vm9, %v199_v46, %v201_v59  ;;  %v205_v63 = vsel %vm8271_vm9, %v201_v59, %v203_v60  ;;  %v208_v1 = vsel %vm8271_vm9, %v203_v60, %v197_v45  ;;  %v118_v45 = vld [vmem:[%s6789_s26] sm:$0xff] }
  0x95   : > { %v211_v2 = vsel %vm6667_vm3, %v206_v62, %v192_v57  ;;  %v209_v3 = vsel %vm6653_vm0, %v208_v1, %v194_v56  ;;  %v212_v6 = vsel %vm6671_vm4, %v205_v63, %v195_v58  ;;  %v6795_v46 = vsub.s32 0, %v8328_v5 }
  0x96   : > { %v222_v7 = vmul.f32 0.15915494, %v218_v61  ;;  %v215_v8 = vsub.f32 %v181_v53, %v211_v2  ;;  %v213_v9 = vsub.f32 %v179_v52, %v209_v3  ;;  %v216_v10 = vsub.f32 %v182_v55, %v212_v6 }
  0x97   : > { %v6806_v52 = vsub.s32 1, %v8328_v5  ;;  %v263_v53 = vsub.s32 5, %v8328_v5 }
  0x98   : > { %v226_v11 = vfloor.f32 %v222_v7  ;;  %v219_v13 = vsub.f32 %v215_v8, %v160_v31  ;;  %v217_v14 = vsub.f32 %v213_v9, %v158_v30  ;;  %v220_v15 = vsub.f32 %v216_v10, %v161_v33 }
  0x9a   : > { %v223_v32 = vmul.f32 0.15915494, %v219_v13  ;;  %v221_v34 = vmul.f32 0.15915494, %v217_v14  ;;  %v224_v35 = vmul.f32 0.15915494, %v220_v15 }
  0x9b   : > { %v230_v36 = vmul.f32 6.2831855, %v226_v11 }
  0x9c   : > { %v227_v37 = vfloor.f32 %v223_v32  ;;  %v225_v38 = vfloor.f32 %v221_v34  ;;  %v228_v39 = vfloor.f32 %v224_v35 }
  0x9d   : > { %v234_v43 = vsub.f32 %v218_v61, %v230_v36 }
  0x9e   : > { %v231_v40 = vmul.f32 6.2831855, %v227_v37  ;;  %v229_v41 = vmul.f32 6.2831855, %v225_v38  ;;  %v232_v42 = vmul.f32 6.2831855, %v228_v39 }
  0xa0   : > { %v235_v44 = vsub.f32 %v219_v13, %v231_v40  ;;  %v233_v30 = vsub.f32 %v217_v14, %v229_v41  ;;  %v236_v31 = vsub.f32 %v220_v15, %v232_v42 }
  0xa2   : > { %v6791_v33 = vcombine.low %v233_v30, %v234_v43  ;;  %v6800_v48 = vcombine.low %v235_v44, %v236_v31 }
  0xa4   : > { %v243_v50 = vrot.slane %v6791_v33, 7  ;;  %v251_v51 = vmul.f32 %v6791_v33, %v118_v45  ;;  %v244_v54 = vrot.slane %v6800_v48, 7  ;;  %v252_v55 = vmul.f32 %v6800_v48, %v119_v49 }
  0xa6   : > { %v247_v56 = vmul.f32 %v243_v50, %v118_v45  ;;  %v253_v57 = vmul.f32 0.5, %v251_v51  ;;  %v6811_v58 = vmul.f32 %v244_v54, %v119_v49  ;;  %v6813_v59 = vmul.f32 0.5, %v252_v55 }
  0xa8   : > { %v282_v60 = vrot.slane %v253_v57, %v6795_v46  ;;  %v286_v61 = vrot.slane %v253_v57, %v6798_v47  ;;  %v264_v62 = vrot.slane %v247_v56, %v263_v53  ;;  %v260_v63 = vrot.slane %v247_v56, %v6806_v52 }
  0xa9   : > { %v294_v1 = vrot.slane %v6813_v59, %v6798_v47  ;;  %v272_v2 = vrot.slane %v6811_v58, %v263_v53  ;;  %v8276_v56 = vmov 683565275  }
  0xaa   : > { %v6822_v3 = vsel %vm8284_vm11, %v264_v62, %v286_v61  ;;  %v6825_v6 = vsel %vm8284_vm11, %v260_v63, %v282_v60  ;;  %v8272_v62 = vmov 2475754826  }
  0xab   : > { %v8269_v7 = vand.u32 2147483647, %v6822_v3  ;;  %v410_v8 = vand.u32 2139095040, %v6822_v3  ;;  %v8268_v9 = vand.u32 2147483647, %v6825_v6  ;;  %v307_v10 = vand.u32 2139095040, %v6825_v6 }
  0xac   : > { %v6832_v13 = vsel %vm8284_vm11, %v272_v2, %v294_v1  ;;  %v6597_v1 = vmov 2131351028  }
  0xad   : > { %v411_v11 = vshrl.u32 %v410_v8, 23  ;;  %v414_v14 = vand.u32 8388607, %v8269_v7  ;;  %v308_v15 = vshrl.u32 %v307_v10, 23  ;;  %v311_v32 = vand.u32 8388607, %v8268_v9 }
  0xae   : > { %v616_v35 = vand.u32 2139095040, %v6832_v13  ;;  %v8274_v8 = vmov 2102212464  }
  0xaf   : > { %v6157_v34 = vadd.s32 4294967169, %v411_v11  ;;  %v6153_v36 = vadd.s32 4294967169, %v308_v15  ;;  %v415_v39 = vor.u32 8388608, %v414_v14  ;;  %v312_v40 = vor.u32 8388608, %v311_v32 }
  0xb0   : > { %v617_v38 = vshrl.u32 %v616_v35, 23  ;;  %v6599_v11 = vmov 920167782  }
  0xb1   : > { %v417_v37 = vadd.s32 1, %v6157_v34  ;;  %v314_v41 = vadd.s32 1, %v6153_v36  ;;  %v6843_v50 = vshll.u32 %v415_v39, 8  ;;  %v6845_v51 = vshll.u32 %v312_v40, 8 }
  0xb2   : > { %v6165_v42 = vadd.s32 4294967169, %v617_v38 }
  0xb3   : > { %vm418_vm12 = vcmp.gt.s32.totalorder %v417_v37, 0  ;;  %vm315_vm13 = vcmp.gt.s32.totalorder %v314_v41, 0 }
  0xb4   : > { %v419_v44 = vsel %vm418_vm12, %v417_v37, 0  ;;  %v316_v45 = vsel %vm315_vm13, %v314_v41, 0  ;;  %v6848_v54 = vadd.s32 1, %v6165_v42  ;;  %v8278_v37 = vmov 1326507024  }
  0xb5   : > { %v420_v30 = vshrl.u32 %v419_v44, 5  ;;  %v421_v31 = vand.u32 31, %v419_v44  ;;  %v6851_v60 = vshrl.u32 %v316_v45, 5  ;;  %v318_v61 = vand.u32 31, %v316_v45 }
  0xb6   : > { %vm624_vm9 = vcmp.gt.s32.totalorder %v6848_v54, 0 }
  0xb7   : > { %v422_v55 = vsub.s32 32, %v421_v31  ;;  %v424_v57 = vshll.u32 %v8276_v56, %v421_v31  ;;  %v427_v63 = vshll.u32 %v8272_v62, %v421_v31  ;;  %v430_v2 = vshll.u32 %v6597_v1, %v421_v31 }
  0xb8   : > { %v433_v10 = vshll.u32 %v8274_v8, %v421_v31  ;;  %v436_v14 = vshll.u32 %v6599_v11, %v421_v31  ;;  %vm439_vm14 = vcmp.lt.s32.totalorder %v420_v30, 1  ;;  %vm440_vm15 = vcmp.lt.s32.totalorder %v420_v30, 2 }
  0xb9   : > { %v425_v15 = vshrl.u32 %v8272_v62, %v422_v55  ;;  %v428_v32 = vshrl.u32 %v6597_v1, %v422_v55  ;;  %v431_v34 = vshrl.u32 %v8274_v8, %v422_v55  ;;  %v423_v35 = vshrl.u32 %v8276_v56, %v422_v55 }
  0xba   : > { %v434_v36 = vshrl.u32 %v6599_v11, %v422_v55  ;;  %v437_v38 = vshrl.u32 %v8278_v37, %v422_v55  ;;  %v319_v42 = vsub.s32 32, %v318_v61  ;;  %vm441_vm12 = vcmp.lt.s32.totalorder %v420_v30, 3 }
  0xbb   : > { %v426_v39 = vor.u32 %v425_v15, %v424_v57  ;;  %v429_v40 = vor.u32 %v428_v32, %v427_v63  ;;  %v432_v41 = vor.u32 %v431_v34, %v430_v2  ;;  %vm442_vm13 = vcmp.lt.s32.totalorder %v420_v30, 4 }
  0xbc   : > { %v435_v44 = vor.u32 %v434_v36, %v433_v10  ;;  %v438_v31 = vor.u32 %v437_v38, %v436_v14  ;;  %v321_v55 = vshll.u32 %v8276_v56, %v318_v61  ;;  %v322_v2 = vshrl.u32 %v8272_v62, %v319_v42 }
  0xbd   : > { %v443_v45 = vsel %vm439_vm14, %v423_v35, %v426_v39  ;;  %v444_v0 = vsel %vm442_vm13, %v432_v41, 2102212464  ;;  %v447_v9 = vsel %vm439_vm14, %v426_v39, %v429_v40  ;;  %v451_v7 = vsel %vm439_vm14, %v429_v40, %v432_v41 }
  0xbe   : > { %v445_v53 = vsel %vm441_vm12, %v429_v40, %v444_v0  ;;  %v448_v49 = vsel %vm442_vm13, %v435_v44, 920167782  ;;  %v452_v43 = vsel %vm442_vm13, %v438_v31, 1326507024  ;;  %v324_v10 = vshll.u32 %v8272_v62, %v318_v61 }
  0xbf   : > { %v449_v57 = vsel %vm441_vm12, %v432_v41, %v448_v49  ;;  %v453_v63 = vsel %vm441_vm12, %v435_v44, %v452_v43  ;;  %v446_v14 = vsel %vm440_vm15, %v443_v45, %v445_v53  ;;  %v325_v34 = vshrl.u32 %v6597_v1, %v319_v42 }
  0xc0   : > { %v450_v15 = vsel %vm440_vm15, %v447_v9, %v449_v57  ;;  %v454_v32 = vsel %vm440_vm15, %v451_v7, %v453_v63  ;;  %v323_v43 = vor.u32 %v322_v2, %v321_v55  ;;  %v327_v39 = vshll.u32 %v6597_v1, %v318_v61 }
  0xc1   : > { %v6874_v0 = vmul.u32.u64.low %v6843_v50, %v454_v32  ;;  %v6875_v35 = vmul.u32.u64.high %v6843_v50, %v454_v32, %v6874_v0  ;;  %v6878_v36 = vmul.u32.u64.low %v6843_v50, %v450_v15  ;;  %v6879_v49 = vmul.u32.u64.high %v6843_v50, %v450_v15, %v6878_v36 }
  0xc2   : > { %v326_v38 = vor.u32 %v325_v34, %v324_v10  ;;  %v328_v53 = vshrl.u32 %v8274_v8, %v319_v42  ;;  %v320_v9 = vshrl.u32 %v8276_v56, %v319_v42  ;;  %v330_v7 = vshll.u32 %v8274_v8, %v318_v61 }
  0xc3   : > { %v331_v30 = vshrl.u32 %v6599_v11, %v319_v42  ;;  %v334_v40 = vshrl.u32 %v8278_v37, %v319_v42  ;;  %v462_v41 = vmul.u32 %v6843_v50, %v446_v14  ;;  %v333_v31 = vshll.u32 %v6599_v11, %v318_v61 }
  0xc4   : > { %v329_v44 = vor.u32 %v328_v53, %v327_v39  ;;  %vm336_vm14 = vcmp.lt.s32.totalorder %v6851_v60, 1  ;;  %vm464_vm15 = vc.u32 %v6875_v35, %v6878_v36  ;;  %v465_v45 = vadd.s32 1, %v6879_v49 }
  0xc5   : > { %v332_v55 = vor.u32 %v331_v30, %v330_v7  ;;  %vm337_vm12 = vcmp.lt.s32.totalorder %v6851_v60, 2  ;;  %v335_v57 = vor.u32 %v334_v40, %v333_v31  ;;  %vm338_vm13 = vcmp.lt.s32.totalorder %v6851_v60, 3 }
  0xc6   : > { %vm339_vm8 = vcmp.lt.s32.totalorder %v6851_v60, 4  ;;  %v344_v42 = vsel %vm336_vm14, %v323_v43, %v326_v38  ;;  %v466_v50 = vsel %vm464_vm15, %v465_v45, %v6879_v49  ;;  %v348_v2 = vsel %vm336_vm14, %v326_v38, %v329_v44 }
  0xc7   : > { %v341_v63 = vsel %vm339_vm8, %v329_v44, 2102212464  ;;  %v345_v61 = vsel %vm339_vm8, %v332_v55, 920167782  ;;  %v467_v10 = vadd.s32 %v466_v50, %v462_v41  ;;  %v340_v14 = vsel %vm336_vm14, %v320_v9, %v323_v43 }
  0xc8   : > { %v346_v15 = vsel %vm338_vm13, %v329_v44, %v345_v61  ;;  %v349_v32 = vsel %vm339_vm8, %v335_v57, 1326507024  ;;  %v342_v34 = vsel %vm338_vm13, %v326_v38, %v341_v63  ;;  %v8329_v41 = vrot.slane %v6813_v59, %v6795_v46 }
  0xc9   : > { %v347_v0 = vsel %vm337_vm12, %v344_v42, %v346_v15  ;;  %v350_v39 = vsel %vm338_vm13, %v332_v55, %v349_v32  ;;  %v468_v53 = vadd.s32 536870912, %v467_v10  ;;  %v343_v38 = vsel %vm337_vm12, %v340_v14, %v342_v34 }
  0xca   : > { %v351_v7 = vsel %vm337_vm12, %v348_v2, %v350_v39  ;;  %v6904_v49 = vmul.u32.u64.low %v6845_v51, %v347_v0  ;;  %v6905_v30 = vmul.u32.u64.high %v6845_v51, %v347_v0, %v6904_v49  ;;  %v8330_v44 = vrot.slane %v6811_v58, %v6806_v52 }
  0xcb   : > { %v6908_v40 = vmul.u32.u64.low %v6845_v51, %v351_v7  ;;  %v6909_v43 = vmul.u32.u64.high %v6845_v51, %v351_v7, %v6908_v40  ;;  %v469_v9 = vshrl.u32 %v468_v53, 30  ;;  %v625_v45 = vsel %vm624_vm9, %v6848_v54, 0 }
  0xcc   : > { %v6920_v31 = vsel %vm8284_vm11, %v8330_v44, %v8329_v41  ;;  %v362_v57 = vadd.s32 1, %v6905_v30  ;;  %v8331_v42 = vand.u32 2147483647, %v6832_v13  ;;  %v359_v60 = vmul.u32 %v6845_v51, %v343_v38 }
  0xcd   : > { %v470_v55 = vshll.u32 %v469_v9, 30  ;;  %vm361_vm8 = vc.u32 %v6909_v43, %v6904_v49  ;;  %v513_v59 = vand.u32 2139095040, %v6920_v31  ;;  %v627_v61 = vand.u32 31, %v625_v45 }
  0xce   : > { %v620_v50 = vand.u32 8388607, %v8331_v42  ;;  %v363_v58 = vsel %vm361_vm8, %v362_v57, %v6905_v30  ;;  %v493_v2 = vsub.s32 4, %v469_v9  ;;  %vm8285_vm9 = vcmp.lt.s32.totalorder %v6822_v3, 0 }
  0xcf   : > { %v471_v63 = vsub.s32 %v467_v10, %v470_v55  ;;  %v364_v14 = vadd.s32 %v363_v58, %v359_v60  ;;  %v514_v34 = vshrl.u32 %v513_v59, 23  ;;  %v628_v39 = vsub.s32 32, %v627_v61 }
  0xd0   : > { %v621_v54 = vor.u32 8388608, %v620_v50  ;;  %v8332_v51 = vand.u32 2147483647, %v6822_v3  ;;  %v494_v10 = vsel %vm8285_vm9, %v493_v2, %v469_v9  ;;  %v463_v40 = vadd.s32 %v6878_v36, %v6875_v35 }
  0xd1   : > { %v473_v15 = vsub.s32 0, %v471_v63  ;;  %v365_v32 = vadd.s32 536870912, %v364_v14  ;;  %v6944_v41 = vshrl.u32 %v625_v45, 5  ;;  %v6949_v55 = vadd.s32 %v6904_v49, %v6909_v43 }
  0xd2   : > { %vm6933_vm14 = vcmp.le.f32.partialorder %v8332_v51, 0.7853982  ;;  %v6946_v44 = vshll.u32 %v621_v54, 8  ;;  %v630_v42 = vshll.u32 %v8276_v56, %v627_v61  ;;  %v6161_v9 = vadd.s32 4294967169, %v514_v34 }
  0xd3   : > { %v6158_v0 = vmin.u32 %v473_v15, %v471_v63  ;;  %v6939_v7 = vshrl.u32 %v365_v32, 30  ;;  %v6955_v60 = vsel %vm6933_vm14, 0, %v494_v10  ;;  %v633_v35 = vshll.u32 %v8272_v62, %v627_v61 }
  0xd4   : > { %v640_v36 = vshrl.u32 %v6599_v11, %v628_v39  ;;  %v631_v59 = vshrl.u32 %v8272_v62, %v628_v39  ;;  %v634_v49 = vshrl.u32 %v6597_v1, %v628_v39  ;;  %v637_v43 = vshrl.u32 %v8274_v8, %v628_v39 }
  0xd5   : > { %v475_v38 = vclz %v6158_v0  ;;  %v367_v57 = vshll.u32 %v6939_v7, 30  ;;  %v629_v58 = vshrl.u32 %v8276_v56, %v628_v39  ;;  %v639_v2 = vshll.u32 %v8274_v8, %v627_v61 }
  0xd6   : > { %v643_v15 = vshrl.u32 %v8278_v37, %v628_v39  ;;  %v6968_v32 = vadd.s32 3, %v6955_v60  ;;  %v636_v34 = vshll.u32 %v6597_v1, %v627_v61  ;;  %v632_v30 = vor.u32 %v631_v59, %v630_v42 }
  0xd7   : > { %v6159_v50 = vadd.s32 4294967294, %v475_v38  ;;  %v6959_v45 = vsub.s32 %v364_v14, %v367_v57  ;;  %v641_v10 = vor.u32 %v640_v36, %v639_v2  ;;  %v642_v38 = vshll.u32 %v6599_v11, %v627_v61 }
  0xd8   : > { %v635_v62 = vor.u32 %v634_v49, %v633_v35  ;;  %v638_v8 = vor.u32 %v637_v43, %v636_v34  ;;  %vm306_vm12 = vcmp.lt.s32.totalorder %v6825_v6, 0  ;;  %v390_v12 = vsub.s32 4, %v6939_v7 }
  0xd9   : > { %vm6160_vm15 = vcmp.lt.s32.totalorder %v6159_v50, 0  ;;  %v370_v14 = vsub.s32 0, %v6959_v45  ;;  %v644_v37 = vor.u32 %v643_v15, %v642_v38  ;;  %vm645_vm13 = vcmp.lt.s32.totalorder %v6944_v41, 1 }
  0xda   : > { %v478_v54 = vsel %vm6160_vm15, 0, %v6159_v50  ;;  %vm648_vm8 = vcmp.lt.s32.totalorder %v6944_v41, 4  ;;  %vm646_vm15 = vcmp.lt.s32.totalorder %v6944_v41, 2  ;;  %vm647_vm10 = vcmp.lt.s32.totalorder %v6944_v41, 3 }
  0xdb   : > { %v479_v0 = vsub.s32 32, %v478_v54  ;;  %v483_v51 = vsub.s32 4294967266, %v478_v54  ;;  %v6154_v57 = vmin.u32 %v370_v14, %v6959_v45  ;;  %v480_v56 = vshll.u32 %v471_v63, %v478_v54 }
  0xdc   : > { %v654_v42 = vsel %vm648_vm8, %v641_v10, 920167782  ;;  %v653_v63 = vsel %vm645_vm13, %v632_v30, %v635_v62  ;;  %v8335_v49 = vand.u32 2147483647, %v6825_v6  ;;  %v649_v54 = vsel %vm645_vm13, %v629_v58, %v632_v30 }
  0xdd   : > { %v481_v39 = vshrl.u32 %v463_v40, %v479_v0  ;;  %v484_v50 = vadd.s32 127, %v483_v51  ;;  %v372_v5 = vclz %v6154_v57  ;;  %v657_v40 = vsel %vm645_vm13, %v635_v62, %v638_v8 }
  0xde   : > { %vm6986_vm11 = vcmp.le.f32.partialorder %v8335_v49, 0.7853982  ;;  %v655_v2 = vsel %vm647_vm10, %v638_v8, %v654_v42 }
  0xdf   : > { %v482_v36 = vor.u32 %v481_v39, %v480_v56  ;;  %v485_v61 = vshll.u32 %v484_v50, 23  ;;  %v6155_v35 = vadd.s32 4294967294, %v372_v5  ;;  %v650_v56 = vsel %vm648_vm8, %v638_v8, 2102212464 }
  0xe0   : > { %v658_v5 = vsel %vm648_vm8, %v644_v37, 1326507024  ;;  %v656_v51 = vsel %vm646_vm15, %v653_v63, %v655_v2  ;;  %v651_v8 = vsel %vm647_vm10, %v635_v62, %v650_v56  ;;  %v520_v37 = vadd.s32 1, %v6161_v9 }
  0xe1   : > { %v486_v59 = vor.u32 4788187, %v485_v61  ;;  %v489_v15 = vcvt.s32.f32 %v482_v36  ;;  %vm6156_vm9 = vcmp.lt.s32.totalorder %v6155_v35, 0  ;;  %v659_v14 = vsel %vm647_vm10, %v641_v10, %v658_v5 }
  0xe2   : > { %v375_v0 = vsel %vm6156_vm9, 0, %v6155_v35  ;;  %v660_v38 = vsel %vm646_vm15, %v657_v40, %v659_v14  ;;  %v7009_v42 = vmul.u32.u64.low %v6946_v44, %v656_v51  ;;  %v7010_v35 = vmul.u32.u64.high %v6946_v44, %v656_v51, %v7009_v42 }
  0xe3   : > { %v487_v34 = vand.u32 2147483647, %v486_v59  ;;  %v376_v57 = vsub.s32 32, %v375_v0  ;;  %v380_v39 = vsub.s32 4294967266, %v375_v0  ;;  %v377_v30 = vshll.u32 %v6959_v45, %v375_v0 }
  0xe4   : > { %v7004_v58 = vmul.u32.u64.low %v6946_v44, %v660_v38  ;;  %v7005_v10 = vmul.u32.u64.high %v6946_v44, %v660_v38, %v7004_v58  ;;  %v7014_v40 = vand.u32 3, %v6955_v60  ;;  %v391_v62 = vsel %vm306_vm12, %v390_v12, %v6939_v7 }
  0xe5   : > { %v490_v50 = vmul.f32 %v489_v15, %v487_v34  ;;  %v378_v36 = vshrl.u32 %v6949_v55, %v376_v57  ;;  %v381_v61 = vadd.s32 127, %v380_v39  ;;  %vm521_vm10 = vcmp.gt.s32.totalorder %v520_v37, 0 }
  0xe6   : > { %v652_v55 = vsel %vm646_vm15, %v649_v54, %v651_v8  ;;  %v522_v59 = vsel %vm521_vm10, %v520_v37, 0  ;;  %vm8338_vm9 = vcmp.lt.s32.totalorder %v6822_v3, 0  ;;  %v7024_v56 = vand.u32 3, %v6968_v32 }
  0xe7   : > { %v491_v63 = vxor.u32 2147483648, %v490_v50  ;;  %v379_v9 = vor.u32 %v378_v36, %v377_v30  ;;  %v382_v45 = vshll.u32 %v381_v61, 23  ;;  %vm670_vm13 = vc.u32 %v7005_v10, %v7009_v42 }
  0xe8   : > { %v7028_v60 = vshrl.u32 %v522_v59, 5  ;;  %v7035_v41 = vsel %vm6986_vm11, 0, %v391_v62  ;;  %v671_v2 = vadd.s32 1, %v7010_v35  ;;  %v668_v32 = vmul.u32 %v6946_v44, %v652_v55 }
  0xe9   : > { %v492_v49 = vsel %vm8338_vm9, %v491_v63, %v490_v50  ;;  %v383_v7 = vor.u32 4788187, %v382_v45  ;;  %v386_v5 = vcvt.s32.f32 %v379_v9  ;;  %v524_v15 = vand.u32 31, %v522_v59 }
  0xea   : > { %v495_v12 = vsel %vm6933_vm14, %v6822_v3, %v492_v49  ;;  %v672_v14 = vsel %vm670_vm13, %v671_v2, %v7010_v35  ;;  %vm542_vm8 = vcmp.lt.s32.totalorder %v7028_v60, 1  ;;  %v8339_v0 = vmov 683565275  }
  0xeb   : > { %6461 = vcosq.f32 %v495_v12  ;;  %v384_v54 = vand.u32 2147483647, %v383_v7  ;;  %v673_v53 = vadd.s32 %v672_v14, %v668_v32  ;;  %v525_v34 = vsub.s32 32, %v524_v15 }
  0xec   : > { %6463 = vsinq.f32 %v495_v12  ;;  %v527_v51 = vshll.u32 %v8339_v0, %v524_v15  ;;  %vm8288_vm14 = vcmp.lt.s32.totalorder %v7028_v60, 3  ;;  %v8340_v57 = vmov 2475754826  }
  0xed   : > { %v387_v38 = vmul.f32 %v386_v5, %v384_v54  ;;  %v530_v39 = vshll.u32 %v8340_v57, %v524_v15  ;;  %v533_v8 = vshll.u32 %v6597_v1, %v524_v15  ;;  %v8341_v37 = vmov 2102212464  }
  0xee   : > { %v536_v44 = vshll.u32 %v8341_v37, %v524_v15  ;;  %v674_v50 = vadd.s32 536870912, %v673_v53  ;;  %v528_v30 = vshrl.u32 %v8340_v57, %v525_v34  ;;  %v531_v58 = vshrl.u32 %v6597_v1, %v525_v34 }
  0xef   : > { %v7050_v36 = vshll.u32 %v6599_v11, %v524_v15  ;;  %vm502_vm10 = vcmp.eq.s32.totalorder %v7014_v40, 0  ;;  %v388_v61 = vxor.u32 2147483648, %v387_v38  ;;  %v534_v35 = vshrl.u32 %v8341_v37, %v525_v34 }
  0xf0   : > { %v537_v63 = vshrl.u32 %v6599_v11, %v525_v34  ;;  %v8342_v62 = vmov 1326507024   ;;  %vm501_vm9 = vcmp.lt.s32.totalorder %v7014_v40, 2  ;;  %v7058_v45 = vshrl.u32 %v674_v50, 30 }
  0xf1   : > { %v540_v9 = vshrl.u32 %v8342_v62, %v525_v34  ;;  %v526_v1 = vshrl.u32 %v8339_v0, %v525_v34  ;;  %v529_v55 = vor.u32 %v528_v30, %v527_v51  ;;  %v532_v59 = vor.u32 %v531_v58, %v530_v39 }
  0xf2   : > { %v389_v49 = vsel %vm306_vm12, %v388_v61, %v387_v38  ;;  %v535_v12 = vor.u32 %v534_v35, %v533_v8  ;;  %v538_v7 = vor.u32 %v537_v63, %v536_v44  ;;  %v676_v5 = vshll.u32 %v7058_v45, 30 }
  0xf3   : > { %v541_v11 = vor.u32 %v540_v9, %v7050_v36  ;;  %v392_v2 = vsel %vm6986_vm11, %v6825_v6, %v389_v49  ;;  %vm8286_vm13 = vcmp.lt.s32.totalorder %v7028_v60, 4  ;;  %v546_v32 = vsel %vm542_vm8, %v526_v1, %v529_v55 }
  0xf4   : > { %6465 = vcosq.f32 %v392_v2  ;;  %v547_v15 = vsel %vm8286_vm13, %v535_v12, 2102212464  ;;  %v550_v54 = vsel %vm542_vm8, %v529_v55, %v532_v59  ;;  %v551_v14 = vsel %vm8286_vm13, %v538_v7, 920167782 }
  0xf5   : > { %v6462_v34 = vpop.eup %6461  ;;  %6467 = vsinq.f32 %v392_v2  ;;  %v7078_v43 = vsub.s32 %v673_v53, %v676_v5  ;;  %vm8287_vm11 = vcmp.lt.s32.totalorder %v7028_v60, 2  ;;  %v548_v0 = vsel %vm8288_vm14, %v532_v59, %v547_v15 }
  0xf6   : > { %v6464_v51 = vpop.eup %6463  ;;  %v506_v38 = vxor.u32 2147483648, %v6462_v34  ;;  %v809_v57 = vadd.s32 3, %v7035_v41  ;;  %v7086_v39 = vsel %vm8287_vm11, %v546_v32, %v548_v0  ;;  %v552_v8 = vsel %vm8288_vm14, %v535_v12, %v551_v14 }
  0xf7   : > { %v503_v37 = vxor.u32 2147483648, %v6464_v51  ;;  %vm916_vm12 = vcmp.eq.s32.totalorder %v7024_v56, 0  ;;  %vm919_vm13 = vcmp.eq.s32.totalorder %v7024_v56, 2  ;;  %v679_v53 = vsub.s32 0, %v7078_v43 }
  0xf8   : > { %vm8343_vm15 = vcmp.eq.s32.totalorder %v7014_v40, 2  ;;  %v921_v50 = vsel %vm919_vm13, %v506_v38, %v6464_v51  ;;  %v7097_v30 = vsel %vm8287_vm11, %v550_v54, %v552_v8  ;;  %v554_v58 = vsel %vm542_vm8, %v532_v59, %v535_v12 }
  0xf9   : > { %v507_v44 = vsel %vm8343_vm15, %v506_v38, %v6464_v51  ;;  %v504_v36 = vsel %vm502_vm10, %v6462_v34, %v503_v37  ;;  %v918_v61 = vsel %vm916_vm12, %v6462_v34, %v503_v37  ;;  %v397_v35 = vand.u32 3, %v7035_v41 }
  0xfa   : > { %v6166_v63 = vmin.u32 %v679_v53, %v7078_v43  ;;  %v508_v62 = vsel %vm501_vm9, %v504_v36, %v507_v44  ;;  %vm8344_vm15 = vcmp.lt.s32.totalorder %v7024_v56, 2  ;;  %v810_v1 = vand.u32 3, %v809_v57 }
  0xfb   : > { %v922_v9 = vsel %vm8344_vm15, %v918_v61, %v921_v50  ;;  %v8345_v55 = vand.u32 2147483647, %v6920_v31  ;;  %vm8346_vm8 = vweird.f32 %v6822_v3  ;;  %vm8289_vm13 = vcmask 1041408  }
  0xfc   : > { %v7113_v59 = vsel %vm8346_vm8, nan, %v508_v62  ;;  %vm8347_vm10 = vmmov %vm8346_vm8  ;;  %v681_v41 = vclz %v6166_v63  ;;  %vm399_vm15 = vcmp.eq.s32.totalorder %v397_v35, 0  ;;  %vm402_vm11 = vcmp.eq.s32.totalorder %v397_v35, 2 }
  0xfd   : > { %v517_v49 = vand.u32 8388607, %v8345_v55  ;;  %v7117_v12 = vsel %vm8347_vm10, nan, %v922_v9  ;;  %6469 = vrcp.f32 %v7113_v59  ;;  %vm8348_vm8 = vcmask 1040384  }
  0xfe   : > { %v1137_v2 = vrot.slane %v7117_v12, 7  ;;  %v6167_v40 = vadd.s32 4294967294, %v681_v41  ;;  %v6466_v56 = vpop.eup %6465  ;;  %vm8349_vm10 = vcmp.lt.s32.totalorder %v7028_v60, 4  ;;  %vm8350_vm12 = vcmp.lt.s32.totalorder %v7028_v60, 3 }
  0xff   : > { %v518_v3 = vor.u32 8388608, %v517_v49  ;;  %v555_v32 = vsel %vm8349_vm10, %v541_v11, 1326507024  ;;  %v6468_v15 = vpop.eup %6467  ;;  %v403_v14 = vxor.u32 2147483648, %v6466_v56  ;;  %vm8351_vm14 = vcmp.lt.s32.totalorder %v7028_v60, 2 }
 0x100   : > { %v7124_v5 = vsel %vm8348_vm8, %v7113_v59, %v1137_v2  ;;  %vm6168_vm9 = vcmp.lt.s32.totalorder %v6167_v40, 0  ;;  %v556_v34 = vsel %vm8350_vm12, %v538_v7, %v555_v32  ;;  %v400_v0 = vxor.u32 2147483648, %v6468_v15 }
 0x101   : > { %v7130_v54 = vsel %vm8289_vm13, %v7124_v5, 0.0  ;;  %vm815_vm8 = vcmp.eq.s32.totalorder %v810_v1, 2  ;;  %v684_v51 = vsel %vm6168_vm9, 0, %v6167_v40  ;;  %v557_v11 = vsel %vm8351_vm14, %v554_v58, %v556_v34 }
 0x102   : > { %1155 = vrot.lane.b32.xlu1 %v7130_v54, %s6601_s27  ;;  %v404_v38 = vsel %vm402_vm11, %v403_v14, %v6468_v15  ;;  %v817_v57 = vsel %vm815_vm8, %v403_v14, %v6468_v15  ;;  %v669_v8 = vadd.s32 %v7009_v42, %v7005_v10  ;;  %v685_v37 = vsub.s32 32, %v684_v51 }
 0x103   : > { %v401_v53 = vsel %vm399_vm15, %v6466_v56, %v400_v0  ;;  %vm811_vm12 = vcmp.lt.s32.totalorder %v810_v1, 2  ;;  %vm8352_vm10 = vcmp.eq.s32.totalorder %v810_v1, 0  ;;  %v689_v44 = vsub.s32 4294967266, %v684_v51 }
 0x104   : > { %v814_v7 = vsel %vm8352_vm10, %v6466_v56, %v400_v0  ;;  %vm8353_vm13 = vcmp.lt.s32.totalorder %v397_v35, 2  ;;  %v687_v61 = vshrl.u32 %v669_v8, %v685_v37  ;;  %v558_v63 = vshll.u32 %v518_v3, 8 }
 0x105   : > { %v405_v50 = vsel %vm8353_vm13, %v401_v53, %v404_v38  ;;  %v818_v36 = vsel %vm811_vm12, %v814_v7, %v817_v57  ;;  %vm8354_vm14 = vweird.f32 %v6825_v6  ;;  %v686_v10 = vshll.u32 %v7078_v43, %v684_v51 }
 0x106   : > { %v7146_v60 = vsel %vm8354_vm14, nan, %v405_v50  ;;  %vm8355_vm11 = vmmov %vm8354_vm14  ;;  %v690_v42 = vadd.s32 127, %v689_v44  ;;  %v7155_v55 = vmul.u32.u64.low %v558_v63, %v557_v11  ;;  %v7156_v49 = vmul.u32.u64.high %v558_v63, %v557_v11, %v7155_v55 }
 0x107   : > { %v7150_v58 = vsel %vm8355_vm11, nan, %v818_v36  ;;  %6471 = vrcp.f32 %v7146_v60  ;;  %v6470_v35 = vpop.eup %6469  ;;  %v688_v9 = vor.u32 %v687_v61, %v686_v10  ;;  %vm8356_vm13 = vcmask 1040384  }
 0x108   : > { %v1136_v62 = vrot.slane %v7150_v58, 7  ;;  %v691_v1 = vshll.u32 %v690_v42, 23  ;;  %v7159_v41 = vmul.f32 %v6470_v35, %v7117_v12  ;;  %vm8357_vm9 = vcmask 1041408  }
 0x109   : > { %v7172_v40 = vmul.u32.u64.low %v558_v63, %v7097_v30  ;;  %v7173_v56 = vmul.u32.u64.high %v558_v63, %v7097_v30, %v7172_v40  ;;  %v695_v32 = vcvt.s32.f32 %v688_v9  ;;  %v699_v34 = vsub.s32 4, %v7058_v45 }
 0x10a   : > { %v7163_v6 = vsel %vm8356_vm13, %v7146_v60, %v1136_v62  ;;  %v692_v2 = vor.u32 4788187, %v691_v1  ;;  %v565_v11 = vmul.u32 %v558_v63, %v7086_v39  ;;  %v8358_v57 = vand.u32 2147483647, %v6832_v13 }
 0x10b   : > { %v7167_v43 = vsel %vm8357_vm9, %v7163_v6, 0.0  ;;  %v566_v15 = vadd.s32 %v7172_v40, %v7156_v49  ;;  %vm567_vm15 = vc.u32 %v7156_v49, %v7172_v40  ;;  %v568_v0 = vadd.s32 1, %v7173_v56 }
 0x10c   : > { %1153 = vrot.lane.b32.xlu0 %v7167_v43, %s6601_s27  ;;  %v693_v3 = vand.u32 2147483647, %v692_v2  ;;  %vm614_vm8 = vcmp.le.f32.partialorder %v8358_v57, 0.7853982  ;;  %vm615_vm12 = vcmp.lt.s32.totalorder %v6832_v13, 0 }
 0x10d   : > { %v569_v30 = vsel %vm567_vm15, %v568_v0, %v7173_v56  ;;  %v700_v53 = vsel %vm615_vm12, %v699_v34, %v7058_v45 }
 0x10e   : > { %v696_v14 = vmul.f32 %v695_v32, %v693_v3  ;;  %v570_v7 = vadd.s32 %v569_v30, %v565_v11  ;;  %v702_v39 = vsel %vm614_vm8, 0, %v700_v53 }
 0x10f   : > { %v1121_v61 = vadd.s32 3, %v702_v39  ;;  %v706_v42 = vand.u32 3, %v702_v39 }
 0x110   : > { %v697_v51 = vxor.u32 2147483648, %v696_v14  ;;  %v571_v50 = vadd.s32 536870912, %v570_v7 }
 0x111   : > { %v6472_v38 = vpop.eup %6471  ;;  %v1122_v62 = vand.u32 3, %v1121_v61  ;;  %vm707_vm10 = vcmp.lt.s32.totalorder %v706_v42, 2  ;;  %vm711_vm14 = vcmp.eq.s32.totalorder %v706_v42, 2  ;;  %vm708_vm13 = vcmp.eq.s32.totalorder %v706_v42, 0 }
 0x112   : > { %v7185_v8 = vmul.f32 %v6472_v38, %v7150_v58  ;;  %v698_v37 = vsel %vm615_vm12, %v697_v51, %v696_v14  ;;  %v572_v36 = vshrl.u32 %v571_v50, 30 }
 0x113   : > { %v701_v44 = vsel %vm614_vm8, %v6832_v13, %v698_v37  ;;  %vm1127_vm11 = vcmp.eq.s32.totalorder %v1122_v62, 2  ;;  %vm1124_vm9 = vcmp.eq.s32.totalorder %v1122_v62, 0  ;;  %vm1123_vm15 = vcmp.lt.s32.totalorder %v1122_v62, 2 }
 0x114   : > { %6473 = vcosq.f32 %v701_v44  ;;  %v573_v63 = vshll.u32 %v572_v36, 30  ;;  %vm705_vm8 = vweird.f32 %v6832_v13 }
 0x115   : > { %6475 = vsinq.f32 %v701_v44 }
 0x116   : > { %v574_v10 = vsub.s32 %v570_v7, %v573_v63 }
 0x118   : > { %v576_v35 = vsub.s32 0, %v574_v10 }
 0x11a   : > { %v6162_v1 = vmin.u32 %v576_v35, %v574_v10 }
 0x11c   : > { %v578_v2 = vclz %v6162_v1 }
 0x11e   : > { %v6474_v9 = vpop.eup %6473  ;;  %v6163_v14 = vadd.s32 4294967294, %v578_v2 }
 0x11f   : > { %v6476_v55 = vpop.eup %6475  ;;  %v712_v49 = vxor.u32 2147483648, %v6474_v9 }
 0x120   : > { %v709_v45 = vxor.u32 2147483648, %v6476_v55  ;;  %vm6164_vm12 = vcmp.lt.s32.totalorder %v6163_v14, 0 }
 0x121   : > { %v713_v40 = vsel %vm711_vm14, %v712_v49, %v6476_v55  ;;  %v1129_v56 = vsel %vm1127_vm11, %v712_v49, %v6476_v55  ;;  %v581_v57 = vsel %vm6164_vm12, 0, %v6163_v14  ;;  %vm8359_vm14 = vcmask 1040384  }
 0x122   : > { %v710_v3 = vsel %vm708_vm13, %v6474_v9, %v709_v45  ;;  %v1126_v32 = vsel %vm1124_vm9, %v6474_v9, %v709_v45  ;;  %v582_v37 = vsub.s32 32, %v581_v57  ;;  %vm8360_vm11 = vcmask 1041408  }
 0x123   : > { %v714_v34 = vsel %vm707_vm10, %v710_v3, %v713_v40  ;;  %v1130_v0 = vsel %vm1123_vm15, %v1126_v32, %v1129_v56  ;;  %v586_v53 = vsub.s32 4294967266, %v581_v57  ;;  %v583_v7 = vshll.u32 %v574_v10, %v581_v57 }
 0x124   : > { %v7190_v51 = vsel %vm705_vm8, nan, %v714_v34  ;;  %v7192_v11 = vsel %vm705_vm8, nan, %v1130_v0  ;;  %v584_v44 = vshrl.u32 %v566_v15, %v582_v37  ;;  %v596_v10 = vsub.s32 4, %v572_v36 }
 0x125   : > { %v1139_v38 = vrot.slane %v7192_v11, 7  ;;  %6477 = vrcp.f32 %v7190_v51  ;;  %v587_v50 = vadd.s32 127, %v586_v53  ;;  %vm512_vm10 = vcmp.lt.s32.totalorder %v6920_v31, 0 }
 0x126   : > { %v585_v39 = vor.u32 %v584_v44, %v583_v7  ;;  %v8361_v55 = vand.u32 2147483647, %v6920_v31  ;;  %v597_v45 = vsel %vm512_vm10, %v596_v10, %v572_v36 }
 0x127   : > { %v7198_v30 = vsel %vm8359_vm14, %v7190_v51, %v1139_v38  ;;  %v588_v61 = vshll.u32 %v587_v50, 23 }
 0x128   : > { %v7202_v13 = vsel %vm8360_vm11, %v7198_v30, 0.0  ;;  %v592_v9 = vcvt.s32.f32 %v585_v39  ;;  %vm511_vm13 = vcmp.le.f32.partialorder %v8361_v55, 0.7853982 }
 0x129   : > { %1159 = vrot.lane.b32.xlu1 %v7202_v13, %s6601_s27  ;;  %v589_v63 = vor.u32 4788187, %v588_v61  ;;  %v599_v40 = vsel %vm511_vm13, 0, %v597_v45 }
 0x12a   : > { %v1017_v56 = vadd.s32 3, %v599_v40  ;;  %v603_v3 = vand.u32 3, %v599_v40  ;;  %v8292_v40 = vmov 0.0  }
 0x12b   : > { %v590_v35 = vand.u32 2147483647, %v589_v63  ;;  %1297 = vmatprep.mubr.f32.mxu0 %v8292_v40  ;;  %1368 = vmatprep.mubr.f32.mxu1 %v8292_v40 }
 0x12c   : > { %v1018_v32 = vand.u32 3, %v1017_v56  ;;  %vm608_vm9 = vcmp.eq.s32.totalorder %v603_v3, 2  ;;  %vm605_vm8 = vcmp.eq.s32.totalorder %v603_v3, 0  ;;  %vm604_vm14 = vcmp.lt.s32.totalorder %v603_v3, 2 }
 0x12d   : > { %1168 = vrot.lane.b32.xlu1 %v7130_v54, %s6602_s28  ;;  %v593_v1 = vmul.f32 %v592_v9, %v590_v35 }
 0x12e   : > { %vm1023_vm15 = vcmp.eq.s32.totalorder %v1018_v32, 2  ;;  %vm1020_vm12 = vcmp.eq.s32.totalorder %v1018_v32, 0  ;;  %vm1019_vm11 = vcmp.lt.s32.totalorder %v1018_v32, 2 }
 0x12f   : > { %v6478_v42 = vpop.eup %6477  ;;  %v594_v15 = vxor.u32 2147483648, %v593_v1 }
 0x130   : > { %v7209_v62 = vmul.f32 %v6478_v42, %v7192_v11 }
 0x131   : > { %1172 = vrot.lane.b32.xlu1 %v7202_v13, %s6602_s28  ;;  %v595_v49 = vsel %vm512_vm10, %v594_v15, %v593_v1  ;;  %vm602_vm10 = vweird.f32 %v6920_v31 }
 0x132   : > { %v598_v2 = vsel %vm511_vm13, %v6920_v31, %v595_v49  ;;  %vm8362_vm13 = vcmask 1040384  }
 0x133   : > { %6479 = vcosq.f32 %v598_v2 }
 0x134   : > { %6481 = vsinq.f32 %v598_v2 }
 0x135   : > { %1185 = vrot.lane.b32.xlu1 %v7130_v54, %s6593_s21 }
 0x139   : > { %1189 = vrot.lane.b32.xlu1 %v7202_v13, %s6593_s21 }
 0x13d   : > { %1197 = vrot.lane.b32.xlu1 %v7130_v54, %s6594_s22  ;;  %v6480_v14 = vpop.eup %6479 }
 0x13e   : > { %v6482_v34 = vpop.eup %6481  ;;  %v609_v36 = vxor.u32 2147483648, %v6480_v14 }
 0x13f   : > { %v606_v0 = vxor.u32 2147483648, %v6482_v34 }
 0x140   : > { %v610_v38 = vsel %vm608_vm9, %v609_v36, %v6482_v34  ;;  %v1025_v57 = vsel %vm1023_vm15, %v609_v36, %v6482_v34  ;;  %vm8363_vm9 = vcmask 1041408   ;;  %vm8290_vm15 = vcmp.lt.s32.totalorder %v8327_v4, 113 }
 0x141   : > { %1201 = vrot.lane.b32.xlu1 %v7202_v13, %s6594_s22  ;;  %v607_v37 = vsel %vm605_vm8, %v6480_v14, %v606_v0  ;;  %v1022_v53 = vsel %vm1020_vm12, %v6480_v14, %v606_v0  ;;  %vm1161_vm8 = vcmp.lt.s32.totalorder %v8327_v4, 1  ;;  %vm8364_vm12 = vcmp.lt.s32.totalorder %v8327_v4, 127 }
 0x142   : > { %v611_v7 = vsel %vm604_vm14, %v607_v37, %v610_v38  ;;  %v1026_v44 = vsel %vm1019_vm11, %v1022_v53, %v1025_v57  ;;  %vm8365_vm14 = vcmp.lt.s32.totalorder %v8327_v4, 15 }
 0x143   : > { %v7226_v50 = vsel %vm602_vm10, nan, %v611_v7  ;;  %v7228_v39 = vsel %vm602_vm10, nan, %v1026_v44  ;;  %vm8366_vm11 = vmmov %vm8365_vm14 }
 0x144   : > { %v1138_v61 = vrot.slane %v7228_v39, 7  ;;  %6483 = vrcp.f32 %v7226_v50  ;;  %vm8367_vm10 = vmmov %vm8364_vm12 }
 0x146   : > { %v7234_v63 = vsel %vm8362_vm13, %v7226_v50, %v1138_v61  ;;  %vm8368_vm13 = vmmov %vm8367_vm10 }
 0x147   : > { %v7238_v42 = vsel %vm8363_vm9, %v7234_v63, 0.0  ;;  %vm8369_vm9 = vmmov %vm8366_vm11 }
 0x148   : > { %1157 = vrot.lane.b32.xlu0 %v7238_v42, %s6601_s27 }
 0x14c   : > { %1166 = vrot.lane.b32.xlu0 %v7167_v43, %s6602_s28 }
 0x14e   : > { %v6484_v31 = vpop.eup %6483 }
 0x14f   : > { %v7245_v35 = vmul.f32 %v6484_v31, %v7228_v39 }
 0x150   : > { %1170 = vrot.lane.b32.xlu0 %v7238_v42, %s6602_s28 }
 0x154   : > { %1183 = vrot.lane.b32.xlu0 %v7167_v43, %s6593_s21 }
 0x158   : > { %1187 = vrot.lane.b32.xlu0 %v7238_v42, %s6593_s21 }
 0x15c   : > { %1195 = vrot.lane.b32.xlu0 %v7167_v43, %s6594_s22 }
 0x160   : > { %1199 = vrot.lane.b32.xlu0 %v7238_v42, %s6594_s22 }
 0x174   : > { %v1156_v9 = vpop.permute.xlu1 %1155 }
 0x17e   : > { %v1154_v15 = vpop.permute.xlu0 %1153 }
 0x17f   : > { %v1164_v36 = vsel %vm1161_vm8, %v1154_v15, %v1156_v9 }
 0x19b   : > { %v1160_v1 = vpop.permute.xlu1 %1159 }
 0x19c   : > { %v1165_v56 = vsel %vm1161_vm8, %v1160_v1, %v1154_v15 }
 0x19f   : > { %v1169_v10 = vpop.permute.xlu1 %1168 }
 0x1a3   : > { %v1173_v55 = vpop.permute.xlu1 %1172 }
 0x1a7   : > { %v1186_v45 = vpop.permute.xlu1 %1185 }
 0x1ab   : > { %v1190_v14 = vpop.permute.xlu1 %1189 }
 0x1af   : > { %v1198_v61 = vpop.permute.xlu1 %1197 }
 0x1b3   : > { %v1202_v15 = vpop.permute.xlu1 %1201 }
 0x1ba   : > { %v1158_v49 = vpop.permute.xlu0 %1157 }
 0x1bb   : > { %v1163_v38 = vsel %vm1161_vm8, %v1156_v9, %v1158_v49  ;;  %v1162_v31 = vsel %vm1161_vm8, %v1158_v49, %v1160_v1 }
 0x1be   : > { %v1167_v2 = vpop.permute.xlu0 %1166 }
 0x1bf   : > { %v1177_v3 = vsel %vm8290_vm15, %v1167_v2, %v1169_v10  ;;  %v1178_v7 = vsel %vm8290_vm15, %v1173_v55, %v1167_v2 }
 0x1c0   : > { %v7267_v32 = vsel %vm6657_vm1, %v1177_v3, %v1165_v56  ;;  %v7297_v9 = vsel %vm6683_vm7, %v1178_v7, %v1162_v31 }
 0x1c1   : > { %1216 = vrot.lane.b32.xlu0 %v7267_v32, %s6604_s29 }
 0x1c2   : > { %v1171_v34 = vpop.permute.xlu0 %1170 }
 0x1c3   : > { %v1176_v0 = vsel %vm8290_vm15, %v1169_v10, %v1171_v34  ;;  %v1175_v57 = vsel %vm8290_vm15, %v1171_v34, %v1173_v55 }
 0x1c4   : > { %v7281_v37 = vsel %vm6675_vm5, %v1176_v0, %v1164_v36  ;;  %v7285_v53 = vsel %vm6679_vm6, %v1175_v57, %v1163_v38 }
 0x1c5   : > { %1218 = vrot.lane.b32.xlu1 %v7281_v37, %s6604_s29  ;;  %1220 = vrot.lane.b32.xlu0 %v7285_v53, %s6604_s29 }
 0x1c6   : > { %v1184_v44 = vpop.permute.xlu0 %1183 }
 0x1c7   : > { %v1193_v1 = vsel %vm8364_vm12, %v1184_v44, %v1186_v45  ;;  %vm8370_vm12 = vmmov %vm8369_vm9 }
 0x1c9   : > { %1222 = vrot.lane.b32.xlu1 %v7297_v9, %s6604_s29  ;;  %1379 = vrot.lane.b32.xlu0 %v7167_v43, %s6604_s29 }
 0x1ca   : > { %v1188_v10 = vpop.permute.xlu0 %1187 }
 0x1cb   : > { %v1192_v34 = vsel %vm8367_vm10, %v1186_v45, %v1188_v10  ;;  %v1191_v36 = vsel %vm8368_vm13, %v1188_v10, %v1190_v14  ;;  %vm8372_vm13 = vcmask 1041408  }
 0x1cd   : > { %1381 = vrot.lane.b32.xlu1 %v7130_v54, %s6604_s29  ;;  %1383 = vrot.lane.b32.xlu0 %v7238_v42, %s6604_s29 }
 0x1ce   : > { %v1196_v55 = vpop.permute.xlu0 %1195 }
 0x1cf   : > { %v1206_v49 = vsel %vm8365_vm14, %v1202_v15, %v1196_v55  ;;  %v1205_v56 = vsel %vm8366_vm11, %v1196_v55, %v1198_v61  ;;  %vm8371_vm14 = vmmov %vm8367_vm10  ;;  %vm1224_vm11 = vcmp.lt.s32.totalorder %v8327_v4, 32  ;;  %vm1229_vm10 = vcmask 64512  }
 0x1d0   : > { %v7313_v2 = vsel %vm6653_vm0, %v1206_v49, %v1193_v1  ;;  %v7329_v38 = vsel %vm6663_vm2, %v1205_v56, %v1192_v34  ;;  %v1194_v7 = vsel %vm8371_vm14, %v1190_v14, %v1184_v44 }
 0x1d1   : > { %1385 = vrot.lane.b32.xlu1 %v7202_v13, %s6604_s29  ;;  %1540 = vrot.lane.b32.xlu0 %v7313_v2, %s6604_s29 }
 0x1d2   : > { %v1200_v3 = vpop.permute.xlu0 %1199 }
 0x1d3   : > { %v1204_v0 = vsel %vm8369_vm9, %v1198_v61, %v1200_v3  ;;  %v1203_v45 = vsel %vm8370_vm12, %v1200_v3, %v1202_v15  ;;  %v122_v15 = vld [vmem:[%s7385_s12] sm:$0xff]  ;;  %vm8373_vm9 = vmmov %vm8372_vm13 }
 0x1d4   : > { %v7333_v57 = vsel %vm6667_vm3, %v1204_v0, %v1191_v36  ;;  %v7345_v61 = vsel %vm6671_vm4, %v1203_v45, %v1194_v7  ;;  %v123_v0 = vld [vmem:[%s7385_s12 + $0x8] sm:$0xff]  ;;  %vm8374_vm12 = vmmov %vm8373_vm9 }
 0x1d5   : > { %1542 = vrot.lane.b32.xlu1 %v7329_v38, %s6604_s29  ;;  %1544 = vrot.lane.b32.xlu0 %v7333_v57, %s6604_s29  ;;  %vm8375_vm14 = vmmov %vm8373_vm9 }
 0x1d9   : > { %1546 = vrot.lane.b32.xlu1 %v7345_v61, %s6604_s29  ;;  %2148 = vrot.lane.b32.xlu0 %v7267_v32, %s6592_s20 }
 0x1dd   : > { %2150 = vrot.lane.b32.xlu1 %v7281_v37, %s6592_s20  ;;  %2152 = vrot.lane.b32.xlu0 %v7285_v53, %s6592_s20 }
 0x1e1   : > { %2154 = vrot.lane.b32.xlu1 %v7297_v9, %s6592_s20  ;;  %2309 = vrot.lane.b32.xlu0 %v7167_v43, %s6592_s20  ;;  %v151_v43 = vld [vmem:[%s7377_s8] sm:$0xff] }
 0x1e5   : > { %2311 = vrot.lane.b32.xlu1 %v7130_v54, %s6592_s20  ;;  %2313 = vrot.lane.b32.xlu0 %v7238_v42, %s6592_s20  ;;  %v6605_v54 = vmov 0  }
 0x1e6   : > { %6459 = vset.pattern.permute.xlu0 %v6605_v54  ;;  %6460 = vset.pattern.permute.xlu1 %v6605_v54 }
 0x1e9   : > { %2315 = vrot.lane.b32.xlu1 %v7202_v13, %s6592_s20  ;;  %2470 = vrot.lane.b32.xlu0 %v7313_v2, %s6592_s20 }
 0x1ed   : > { %2472 = vrot.lane.b32.xlu1 %v7329_v38, %s6592_s20  ;;  %2474 = vrot.lane.b32.xlu0 %v7333_v57, %s6592_s20 }
 0x1f1   : > { %2476 = vrot.lane.b32.xlu1 %v7345_v61, %s6592_s20  ;;  %1213 = vperm.xlu0 %6459, %v151_v43  }
 0x233   : > { %v1217_v13 = vpop.permute.xlu0 %1216 }
 0x237   : > { %v1219_v42 = vpop.permute.xlu1 %1218  ;;  %v1221_v14 = vpop.permute.xlu0 %1220 }
 0x238   : > { %v1227_v44 = vsel %vm1224_vm11, %v1217_v13, %v1219_v42  ;;  %v1226_v49 = vsel %vm1224_vm11, %v1219_v42, %v1221_v14 }
 0x239   : > { %1233 = vmatprep.subr.mxu0 %v1227_v44 }
 0x23b   : > { %v1223_v31 = vpop.permute.xlu1 %1222  ;;  %v1380_v10 = vpop.permute.xlu0 %1379 }
 0x23c   : > { %v1228_v55 = vsel %vm1224_vm11, %v1223_v31, %v1217_v13  ;;  %v1225_v1 = vsel %vm1224_vm11, %v1221_v14, %v1223_v31 }
 0x23d   : > { %1234 = vmatpush1.msra.mxu0 %v1228_v55  ;;  %1304 = vmatprep.subr.mxu1 %v1225_v1 }
 0x23e   : > { %6185 = vmatmul.mubr.msk.f32.vlgmr.msra.gmra.mrb[0].mxu0 %vm1229_vm10, %v122_v15  ;;  %1305 = vmatpush1.msra.mxu1 %v1226_v49 }
 0x23f   : > { %v1382_v56 = vpop.permute.xlu1 %1381  ;;  %6186 = vmatmul.mubr.msk.f32.vlgmr.msra.gmra.mrb[0].mxu1 %vm1229_vm10, %v122_v15  ;;  %v1384_v3 = vpop.permute.xlu0 %1383  ;;  %1458 = vmatprep.mubr.f32.mxu0 %v8292_v40 }
 0x240   : > { %v1389_v34 = vsel %vm1224_vm11, %v1380_v10, %v1382_v56  ;;  %1529 = vmatprep.mubr.f32.mxu1 %v8292_v40  ;;  %v1388_v43 = vsel %vm1224_vm11, %v1382_v56, %v1384_v3  ;;  %v125_v56 = vld [vmem:[%s7385_s12 + $0x18] sm:$0xff] }
 0x241   : > { %1394 = vmatprep.subr.mxu0 %v1389_v34 }
 0x243   : > { %v1386_v36 = vpop.permute.xlu1 %1385  ;;  %v1541_v45 = vpop.permute.xlu0 %1540 }
 0x244   : > { %v1390_v7 = vsel %vm1224_vm11, %v1386_v36, %v1380_v10  ;;  %v1387_v54 = vsel %vm1224_vm11, %v1384_v3, %v1386_v36  ;;  %v124_v10 = vld [vmem:[%s7385_s12 + $0x10] sm:$0xff] }
 0x245   : > { %1395 = vmatpush1.msra.mxu0 %v1390_v7  ;;  %1465 = vmatprep.subr.mxu1 %v1387_v54 }
 0x246   : > { %6187 = vmatmul.mubr.msk.f32.vlgmr.msra.gmra.mrb[0].mxu0 %vm1229_vm10, %v123_v0  ;;  %1466 = vmatpush1.msra.mxu1 %v1388_v43 }
 0x247   : > { %v1543_v13 = vpop.permute.xlu1 %1542  ;;  %6188 = vmatmul.mubr.msk.f32.vlgmr.msra.gmra.mrb[0].mxu1 %vm1229_vm10, %v123_v0  ;;  %1619 = vmatprep.mubr.f32.mxu0 %v8292_v40  ;;  %v1545_v14 = vpop.permute.xlu0 %1544 }
 0x248   : > { %v1550_v42 = vsel %vm1224_vm11, %v1541_v45, %v1543_v13  ;;  %1690 = vmatprep.mubr.f32.mxu1 %v8292_v40  ;;  %v1549_v31 = vsel %vm1224_vm11, %v1543_v13, %v1545_v14 }
 0x249   : > { %1555 = vmatprep.subr.mxu0 %v1550_v42 }
 0x24b   : > { %v1547_v44 = vpop.permute.xlu1 %1546  ;;  %v2149_v1 = vpop.permute.xlu0 %2148 }
 0x24c   : > { %v1551_v15 = vsel %vm1224_vm11, %v1547_v44, %v1541_v45  ;;  %v1548_v55 = vsel %vm1224_vm11, %v1545_v14, %v1547_v44  ;;  %v128_v45 = vld [vmem:[%s7385_s12 + $0x30] sm:$0xff]  ;;  %v129_v44 = vld [vmem:[%s7385_s12 + $0x38] sm:$0xff] }
 0x24d   : > { %1556 = vmatpush1.msra.mxu0 %v1551_v15  ;;  %1626 = vmatprep.subr.mxu1 %v1548_v55  ;;  %v130_v15 = vld [vmem:[%s7385_s12 + $0x40] sm:$0xff] }
 0x24e   : > { %6189 = vmatmul.mubr.msk.f32.vlgmr.msra.gmra.mrb[0].mxu0 %vm1229_vm10, %v124_v10  ;;  %1627 = vmatpush1.msra.mxu1 %v1549_v31 }
 0x24f   : > { %1704 = vmatprep.subr.mxu0 %v7281_v37  ;;  %v2151_v49 = vpop.permute.xlu1 %2150  ;;  %6190 = vmatmul.mubr.msk.f32.vlgmr.msra.gmra.mrb[0].mxu1 %vm1229_vm10, %v124_v10  ;;  %v2153_v37 = vpop.permute.xlu0 %2152 }
 0x250   : > { %1705 = vmatpush1.msra.mxu0 %v7267_v32  ;;  %1775 = vmatprep.subr.mxu1 %v7297_v9  ;;  %v126_v32 = vld [vmem:[%s7385_s12 + $0x20] sm:$0xff] }
 0x251   : > { %1776 = vmatpush1.msra.mxu1 %v7285_v53  ;;  %6193 = vmatprep.subr.msk.mxu0 %vm8372_vm13, %v7124_v5  ;;  %vm8376_vm13 = vcmp.lt.s32.totalorder %v8327_v4, 96 }
 0x252   : > { %6196 = vmatprep.subr.msk.mxu1 %vm8373_vm9, %v7198_v30  ;;  %1768 = vmatprep.mubr.f32.mxu0 %v8292_v40  ;;  %vm8377_vm9 = vmmov %vm8376_vm13 }
 0x253   : > { %1839 = vmatprep.mubr.f32.mxu1 %v8292_v40  ;;  %v2155_v3 = vpop.permute.xlu1 %2154  ;;  %v2310_v5 = vpop.permute.xlu0 %2309 }
 0x254   : > { %v2159_v53 = vsel %vm8377_vm9, %v2155_v3, %v2149_v1 }
 0x256   : > { %6191 = vmatmul.mubr.msk.f32.vlgmr.msra.gmra.mrb[0].mxu0 %vm1229_vm10, %v125_v56 }
 0x257   : > { %6194 = vmatpush1.msk.msra.mxu0 %vm8374_vm12, %v7163_v6  ;;  %6192 = vmatmul.mubr.msk.f32.vlgmr.msra.gmra.mrb[0].mxu1 %vm1229_vm10, %v125_v56  ;;  %v2312_v30 = vpop.permute.xlu1 %2311  ;;  %v2157_v6 = vsel %vm8376_vm13, %v2151_v49, %v2153_v37  ;;  %vm8378_vm12 = vmmov %vm8377_vm9 }
 0x258   : > { %6197 = vmatpush1.msk.msra.mxu1 %vm8375_vm14, %v7234_v63  ;;  %2002 = vmatprep.subr.mxu0 %v7329_v38  ;;  %v2314_v63 = vpop.permute.xlu0 %2313  ;;  %v2158_v38 = vsel %vm8378_vm12, %v2149_v1, %v2151_v49  ;;  %vm8379_vm14 = vmmov %vm8377_vm9 }
 0x259   : > { %2073 = vmatprep.subr.mxu1 %v7345_v61  ;;  %1917 = vmatprep.mubr.f32.mxu0 %v8292_v40  ;;  %vm8380_vm13 = vmmov %vm8377_vm9 }
 0x25a   : > { %1988 = vmatprep.mubr.f32.mxu1 %v8292_v40  ;;  %v2318_v36 = vsel %vm8380_vm13, %v2312_v30, %v2314_v63  ;;  %vm8381_vm12 = vmmov %vm8377_vm9 }
 0x25b   : > { %v2316_v9 = vpop.permute.xlu1 %2315  ;;  %v2319_v43 = vsel %vm8381_vm12, %v2310_v5, %v2312_v30  ;;  %vm8383_vm13 = vmmov %vm8377_vm9 }
 0x25c   : > { %v2471_v61 = vpop.permute.xlu0 %2470  ;;  %v2320_v0 = vsel %vm8377_vm9, %v2316_v9, %v2310_v5  ;;  %vm8384_vm12 = vmmov %vm8377_vm9 }
 0x25e   : > { %6195 = vmatmul.mubr.msk.f32.vlgmr.msra.gmra.mrb[0].mxu0 %vm1229_vm10, %v126_v32 }
 0x25f   : > { %2003 = vmatpush1.msra.mxu0 %v7313_v2  ;;  %6198 = vmatmul.mubr.msk.f32.vlgmr.msra.gmra.mrb[0].mxu1 %vm1229_vm10, %v126_v32  ;;  %v127_v2 = vld [vmem:[%s7385_s12 + $0x28] sm:$0xff]  ;;  %v2473_v34 = vpop.permute.xlu1 %2472 }
 0x260   : > { %2074 = vmatpush1.msra.mxu1 %v7333_v57  ;;  %2163 = vmatprep.subr.mxu0 %v2157_v6  ;;  %v2156_v57 = vsel %vm8379_vm14, %v2153_v37, %v2155_v3  ;;  %v2475_v7 = vpop.permute.xlu0 %2474  ;;  %vm8382_vm14 = vmmov %vm8377_vm9  ;;  %v2480_v31 = vsel %vm8384_vm12, %v2471_v61, %v2473_v34 }
 0x261   : > { %2234 = vmatprep.subr.mxu1 %v2159_v53  ;;  %2066 = vmatprep.mubr.f32.mxu0 %v8292_v40  ;;  %v2317_v13 = vsel %vm8382_vm14, %v2314_v63, %v2316_v9  ;;  %v2479_v42 = vsel %vm8383_vm13, %v2473_v34, %v2475_v7  ;;  %vm8385_vm14 = vmmov %vm8377_vm9 }
 0x262   : > { %2137 = vmatprep.mubr.f32.mxu1 %v8292_v40 }
 0x263   : > { %v2477_v54 = vpop.permute.xlu1 %2476 }
 0x264   : > { %v2481_v14 = vsel %vm8377_vm9, %v2477_v54, %v2471_v61  ;;  %v2478_v10 = vsel %vm8385_vm14, %v2475_v7, %v2477_v54 }
 0x266   : > { %6199 = vmatmul.mubr.msk.f32.vlgmr.msra.gmra.mrb[0].mxu0 %vm1229_vm10, %v127_v2 }
 0x267   : > { %2164 = vmatpush1.msra.mxu0 %v2158_v38  ;;  %6200 = vmatmul.mubr.msk.f32.vlgmr.msra.gmra.mrb[0].mxu1 %vm1229_vm10, %v127_v2 }
 0x268   : > { %2235 = vmatpush1.msra.mxu1 %v2156_v57  ;;  %2324 = vmatprep.subr.mxu0 %v2318_v36 }
 0x269   : > { %2395 = vmatprep.subr.mxu1 %v2320_v0  ;;  %2227 = vmatprep.mubr.f32.mxu0 %v8292_v40 }
 0x26a   : > { %2298 = vmatprep.mubr.f32.mxu1 %v8292_v40 }
 0x26e   : > { %6201 = vmatmul.mubr.msk.f32.vlgmr.msra.gmra.mrb[0].mxu0 %vm1229_vm10, %v128_v45 }
 0x26f   : > { %2325 = vmatpush1.msra.mxu0 %v2319_v43  ;;  %6202 = vmatmul.mubr.msk.f32.vlgmr.msra.gmra.mrb[0].mxu1 %vm1229_vm10, %v128_v45 }
 0x270   : > { %2396 = vmatpush1.msra.mxu1 %v2317_v13  ;;  %2485 = vmatprep.subr.mxu0 %v2479_v42  ;;  %v1214_v55 = vpop.permute.xlu0 %1213 }
 0x271   : > { %2556 = vmatprep.subr.mxu1 %v2481_v14  ;;  %2388 = vmatprep.mubr.f32.mxu0 %v8292_v40 }
 0x272   : > { %2459 = vmatprep.mubr.f32.mxu1 %v8292_v40 }
 0x276   : > { %6203 = vmatmul.mubr.msk.f32.vlgmr.msra.gmra.mrb[0].mxu0 %vm1229_vm10, %v129_v44 }
 0x277   : > { %2486 = vmatpush1.msra.mxu0 %v2480_v31  ;;  %6204 = vmatmul.mubr.msk.f32.vlgmr.msra.gmra.mrb[0].mxu1 %vm1229_vm10, %v129_v44 }
 0x278   : > { %2557 = vmatpush1.msra.mxu1 %v2478_v10  ;;  %2549 = vmatprep.mubr.f32.mxu0 %v8292_v40 }
 0x279   : > { %2620 = vmatprep.mubr.f32.mxu1 %v8292_v40 }
 0x27e   : > { %6205 = vmatmul.mubr.msk.f32.vlgmr.msra.gmra.mrb[0].mxu0 %vm1229_vm10, %v130_v15 }
 0x27f   : > { %6206 = vmatmul.mubr.msk.f32.vlgmr.msra.gmra.mrb[0].mxu1 %vm1229_vm10, %v130_v15  ;;  %2783 = vmatprep.mubr.f32.mxu0 %v8292_v40 }
 0x280   : > { %2854 = vmatprep.mubr.f32.mxu1 %v8292_v40 }
 0x351   : > { %v2551_v1 = vpop.f32.mrb[0].mxu0 }
 0x352   : > { %v6262_v49 = vadd.f32 %v2551_v1, %v1214_v55  ;;  %v2553_v56 = vpop.f32.mrb[1].mxu0  ;;  %v2622_v37 = vpop.f32.mrb[0].mxu1 }
 0x353   : > { %v6263_v3 = vadd.f32 %v2553_v56, %v1214_v55  ;;  %v6264_v5 = vadd.f32 %v2622_v37, %v1214_v55  ;;  %v2624_v30 = vpop.f32.mrb[1].mxu1 }
 0x354   : > { %vm2631_vm13 = vcmp.gt.f32.partialorder %v6262_v49, 0.0  ;;  %v2635_v32 = vmul.f32 0.01, %v6262_v49  ;;  %v6265_v9 = vadd.f32 %v2624_v30, %v1214_v55 }
 0x355   : > { %vm2633_vm9 = vcmp.gt.f32.partialorder %v6264_v5, 0.0  ;;  %v2637_v6 = vmul.f32 0.01, %v6264_v5  ;;  %v2636_v53 = vmul.f32 0.01, %v6263_v3  ;;  %vm2632_vm12 = vcmp.gt.f32.partialorder %v6263_v3, 0.0 }
 0x356   : > { %v7496_v63 = vsel %vm2631_vm13, %v6262_v49, %v2635_v32  ;;  %v2638_v61 = vmul.f32 0.01, %v6265_v9  ;;  %vm2634_vm14 = vcmp.gt.f32.partialorder %v6265_v9, 0.0  ;;  %vm8386_vm13 = vcmp.lt.s32.totalorder %v8327_v4, 127 }
 0x357   : > { %v7498_v2 = vsel %vm2633_vm9, %v6264_v5, %v2637_v6  ;;  %2643 = vrot.lane.b32.xlu1 %v7496_v63, %s6601_s27  ;;  %v7504_v38 = vsel %vm2632_vm12, %v6263_v3, %v2636_v53  ;;  %vm8387_vm9 = vcmp.lt.s32.totalorder %v8327_v4, 15  ;;  %vm8388_vm12 = vmmov %vm8386_vm13 }
 0x358   : > { %2647 = vrot.lane.b32.xlu0 %v7498_v2, %s6601_s27  ;;  %v7510_v57 = vsel %vm2634_vm14, %v6265_v9, %v2638_v61  ;;  %vm8389_vm14 = vmmov %vm8388_vm12 }
 0x35b   : > { %2645 = vrot.lane.b32.xlu1 %v7504_v38, %s6601_s27 }
 0x35c   : > { %2655 = vrot.lane.b32.xlu0 %v7496_v63, %s6602_s28 }
 0x35f   : > { %2649 = vrot.lane.b32.xlu1 %v7510_v57, %s6601_s27 }
 0x360   : > { %2659 = vrot.lane.b32.xlu0 %v7498_v2, %s6602_s28 }
 0x363   : > { %2657 = vrot.lane.b32.xlu1 %v7504_v38, %s6602_s28 }
 0x364   : > { %2671 = vrot.lane.b32.xlu0 %v7496_v63, %s6593_s21 }
 0x367   : > { %2661 = vrot.lane.b32.xlu1 %v7510_v57, %s6602_s28 }
 0x368   : > { %2675 = vrot.lane.b32.xlu0 %v7498_v2, %s6593_s21 }
 0x36b   : > { %2673 = vrot.lane.b32.xlu1 %v7504_v38, %s6593_s21 }
 0x36c   : > { %2683 = vrot.lane.b32.xlu0 %v7496_v63, %s6594_s22 }
 0x36f   : > { %2677 = vrot.lane.b32.xlu1 %v7510_v57, %s6593_s21 }
 0x370   : > { %2687 = vrot.lane.b32.xlu0 %v7498_v2, %s6594_s22 }
 0x373   : > { %2685 = vrot.lane.b32.xlu1 %v7504_v38, %s6594_s22 }
 0x377   : > { %2689 = vrot.lane.b32.xlu1 %v7510_v57, %s6594_s22 }
 0x3c9   : > { %v2644_v34 = vpop.permute.xlu1 %2643 }
 0x3ca   : > { %v2648_v36 = vpop.permute.xlu0 %2647 }
 0x3cd   : > { %v2646_v0 = vpop.permute.xlu1 %2645 }
 0x3ce   : > { %v2656_v45 = vpop.permute.xlu0 %2655  ;;  %v2653_v13 = vsel %vm1161_vm8, %v2644_v34, %v2646_v0  ;;  %v2652_v1 = vsel %vm1161_vm8, %v2646_v0, %v2648_v36 }
 0x3d1   : > { %v2650_v7 = vpop.permute.xlu1 %2649 }
 0x3d2   : > { %v2660_v54 = vpop.permute.xlu0 %2659  ;;  %v2654_v42 = vsel %vm1161_vm8, %v2650_v7, %v2644_v34  ;;  %v2651_v49 = vsel %vm1161_vm8, %v2648_v36, %v2650_v7 }
 0x3d5   : > { %v2658_v43 = vpop.permute.xlu1 %2657 }
 0x3d6   : > { %v2664_v14 = vsel %vm8290_vm15, %v2658_v43, %v2660_v54  ;;  %v2665_v44 = vsel %vm8290_vm15, %v2656_v45, %v2658_v43  ;;  %v2672_v31 = vpop.permute.xlu0 %2671 }
 0x3d7   : > { %v7546_v10 = vsel %vm6657_vm1, %v2665_v44, %v2654_v42  ;;  %v7550_v15 = vsel %vm6675_vm5, %v2664_v14, %v2653_v13 }
 0x3d8   : > { %2704 = vrot.lane.b32.xlu0 %v7546_v10, %s6604_s29  ;;  %2706 = vrot.lane.b32.xlu1 %v7550_v15, %s6604_s29 }
 0x3d9   : > { %v2662_v55 = vpop.permute.xlu1 %2661 }
 0x3da   : > { %v2663_v56 = vsel %vm8290_vm15, %v2660_v54, %v2662_v55  ;;  %v2666_v37 = vsel %vm8290_vm15, %v2662_v55, %v2656_v45  ;;  %v2676_v30 = vpop.permute.xlu0 %2675  ;;  %vm8391_vm15 = vmmov %vm8387_vm9 }
 0x3db   : > { %v7566_v3 = vsel %vm6683_vm7, %v2666_v37, %v2651_v49  ;;  %v7570_v5 = vsel %vm6679_vm6, %v2663_v56, %v2652_v1  ;;  %v152_v1 = vld [vmem:[%s7377_s8 + $0x8] sm:$0xff] }
 0x3dc   : > { %2710 = vrot.lane.b32.xlu1 %v7566_v3, %s6604_s29  ;;  %2708 = vrot.lane.b32.xlu0 %v7570_v5, %s6604_s29 }
 0x3dd   : > { %v2674_v32 = vpop.permute.xlu1 %2673 }
 0x3de   : > { %v2684_v53 = vpop.permute.xlu0 %2683  ;;  %v2680_v61 = vsel %vm8386_vm13, %v2674_v32, %v2676_v30  ;;  %v2681_v7 = vsel %vm8388_vm12, %v2672_v31, %v2674_v32  ;;  %vm8390_vm13 = vmmov %vm8387_vm9 }
 0x3e0   : > { %2867 = vrot.lane.b32.xlu1 %v7504_v38, %s6604_s29  ;;  %2865 = vrot.lane.b32.xlu0 %v7496_v63, %s6604_s29 }
 0x3e1   : > { %v2678_v6 = vpop.permute.xlu1 %2677 }
 0x3e2   : > { %v2688_v0 = vpop.permute.xlu0 %2687  ;;  %v2682_v54 = vsel %vm8389_vm14, %v2678_v6, %v2672_v31  ;;  %v2679_v31 = vsel %vm8388_vm12, %v2676_v30, %v2678_v6  ;;  %v131_v6 = vld [vmem:[%s7385_s12 + $0x48] sm:$0xff] }
 0x3e4   : > { %2871 = vrot.lane.b32.xlu1 %v7510_v57, %s6604_s29  ;;  %2869 = vrot.lane.b32.xlu0 %v7498_v2, %s6604_s29 }
 0x3e5   : > { %v2686_v9 = vpop.permute.xlu1 %2685 }
 0x3e6   : > { %v2693_v34 = vsel %vm8387_vm9, %v2684_v53, %v2686_v9  ;;  %v2692_v44 = vsel %vm8391_vm15, %v2686_v9, %v2688_v0  ;;  %vm8392_vm15 = vcmp.lt.s32.totalorder %v8327_v4, 96 }
 0x3e7   : > { %v7590_v36 = vsel %vm6663_vm2, %v2693_v34, %v2680_v61  ;;  %v7620_v55 = vsel %vm6667_vm3, %v2692_v44, %v2679_v31  ;;  %vm8393_vm14 = vmmov %vm8392_vm15 }
 0x3e8   : > { %3028 = vrot.lane.b32.xlu1 %v7590_v36, %s6604_s29 }
 0x3e9   : > { %v2690_v45 = vpop.permute.xlu1 %2689 }
 0x3ea   : > { %v2691_v43 = vsel %vm8390_vm13, %v2688_v0, %v2690_v45  ;;  %v2694_v13 = vsel %vm8387_vm9, %v2690_v45, %v2684_v53  ;;  %vm8394_vm13 = vmmov %vm8393_vm14 }
 0x3eb   : > { %v7604_v42 = vsel %vm6653_vm0, %v2694_v13, %v2681_v7  ;;  %v7608_v14 = vsel %vm6671_vm4, %v2691_v43, %v2682_v54  ;;  %v132_v43 = vld [vmem:[%s7385_s12 + $0x50] sm:$0xff]  ;;  %vm8395_vm9 = vmmov %vm8394_vm13 }
 0x3ec   : > { %3026 = vrot.lane.b32.xlu0 %v7604_v42, %s6604_s29  ;;  %3032 = vrot.lane.b32.xlu1 %v7608_v14, %s6604_s29  ;;  %vm8396_vm12 = vmmov %vm8395_vm9 }
 0x3f0   : > { %3030 = vrot.lane.b32.xlu0 %v7620_v55, %s6604_s29  ;;  %3636 = vrot.lane.b32.xlu1 %v7550_v15, %s6592_s20 }
 0x3f4   : > { %3634 = vrot.lane.b32.xlu0 %v7546_v10, %s6592_s20  ;;  %3640 = vrot.lane.b32.xlu1 %v7566_v3, %s6592_s20 }
 0x3f8   : > { %3638 = vrot.lane.b32.xlu0 %v7570_v5, %s6592_s20  ;;  %3797 = vrot.lane.b32.xlu1 %v7504_v38, %s6592_s20 }
 0x3fc   : > { %3795 = vrot.lane.b32.xlu0 %v7496_v63, %s6592_s20  ;;  %3801 = vrot.lane.b32.xlu1 %v7510_v57, %s6592_s20 }
 0x400   : > { %3799 = vrot.lane.b32.xlu0 %v7498_v2, %s6592_s20  ;;  %3958 = vrot.lane.b32.xlu1 %v7590_v36, %s6592_s20 }
 0x404   : > { %3956 = vrot.lane.b32.xlu0 %v7604_v42, %s6592_s20  ;;  %3962 = vrot.lane.b32.xlu1 %v7608_v14, %s6592_s20 }
 0x408   : > { %3960 = vrot.lane.b32.xlu0 %v7620_v55, %s6592_s20 }
 0x40c   : > { %2701 = vperm.xlu0 %6459, %v152_v1  }
 0x44a   : > { %v2705_v49 = vpop.permute.xlu0 %2704  ;;  %v2707_v56 = vpop.permute.xlu1 %2706 }
 0x44b   : > { %v2714_v37 = vsel %vm1224_vm11, %v2705_v49, %v2707_v56 }
 0x44c   : > { %2719 = vmatprep.subr.mxu0 %v2714_v37 }
 0x44e   : > { %v2709_v30 = vpop.permute.xlu0 %2708  ;;  %v2711_v32 = vpop.permute.xlu1 %2710 }
 0x44f   : > { %v2713_v53 = vsel %vm1224_vm11, %v2707_v56, %v2709_v30  ;;  %v2715_v9 = vsel %vm1224_vm11, %v2711_v32, %v2705_v49  ;;  %v2712_v61 = vsel %vm1224_vm11, %v2709_v30, %v2711_v32  ;;  %v133_v32 = vld [vmem:[%s7385_s12 + $0x58] sm:$0xff] }
 0x450   : > { %2720 = vmatpush1.msra.mxu0 %v2715_v9  ;;  %2790 = vmatprep.subr.mxu1 %v2712_v61 }
 0x451   : > { %2791 = vmatpush1.msra.mxu1 %v2713_v53  ;;  %6207 = vmatmul.mubr.msk.f32.vlgmr.msra.gmra.mrb[2].mxu0 %vm1229_vm10, %v131_v6 }
 0x452   : > { %v2866_v34 = vpop.permute.xlu0 %2865  ;;  %v2868_v0 = vpop.permute.xlu1 %2867  ;;  %6208 = vmatmul.mubr.msk.f32.vlgmr.msra.gmra.mrb[2].mxu1 %vm1229_vm10, %v131_v6  ;;  %2944 = vmatprep.mubr.f32.mxu0 %v8292_v40 }
 0x453   : > { %v2875_v45 = vsel %vm1224_vm11, %v2866_v34, %v2868_v0  ;;  %3015 = vmatprep.mubr.f32.mxu1 %v8292_v40 }
 0x454   : > { %2880 = vmatprep.subr.mxu0 %v2875_v45 }
 0x456   : > { %v2870_v7 = vpop.permute.xlu0 %2869  ;;  %v2872_v54 = vpop.permute.xlu1 %2871 }
 0x457   : > { %v2874_v13 = vsel %vm1224_vm11, %v2868_v0, %v2870_v7  ;;  %v2876_v44 = vsel %vm1224_vm11, %v2872_v54, %v2866_v34  ;;  %v2873_v31 = vsel %vm1224_vm11, %v2870_v7, %v2872_v54 }
 0x458   : > { %2881 = vmatpush1.msra.mxu0 %v2876_v44  ;;  %2951 = vmatprep.subr.mxu1 %v2873_v31 }
 0x459   : > { %2952 = vmatpush1.msra.mxu1 %v2874_v13  ;;  %6209 = vmatmul.mubr.msk.f32.vlgmr.msra.gmra.mrb[2].mxu0 %vm1229_vm10, %v132_v43  ;;  %v137_v13 = vld [vmem:[%s7385_s12 + $0x78] sm:$0xff] }
 0x45a   : > { %v3029_v1 = vpop.permute.xlu1 %3028  ;;  %6210 = vmatmul.mubr.msk.f32.vlgmr.msra.gmra.mrb[2].mxu1 %vm1229_vm10, %v132_v43  ;;  %3105 = vmatprep.mubr.f32.mxu0 %v8292_v40 }
 0x45b   : > { %3176 = vmatprep.mubr.f32.mxu1 %v8292_v40 }
 0x45e   : > { %v3027_v49 = vpop.permute.xlu0 %3026  ;;  %v3033_v56 = vpop.permute.xlu1 %3032 }
 0x45f   : > { %v3037_v37 = vsel %vm1224_vm11, %v3033_v56, %v3027_v49  ;;  %v3036_v30 = vsel %vm1224_vm11, %v3027_v49, %v3029_v1 }
 0x460   : > { %3041 = vmatprep.subr.mxu0 %v3036_v30  ;;  %v138_v30 = vld [vmem:[%s7385_s12 + $0x80] sm:$0xff] }
 0x461   : > { %3042 = vmatpush1.msra.mxu0 %v3037_v37 }
 0x462   : > { %v3031_v6 = vpop.permute.xlu0 %3030  ;;  %6211 = vmatmul.mubr.msk.f32.vlgmr.msra.gmra.mrb[2].mxu0 %vm1229_vm10, %v133_v32  ;;  %3190 = vmatprep.subr.mxu0 %v7550_v15  ;;  %v3637_v61 = vpop.permute.xlu1 %3636  ;;  %v134_v15 = vld [vmem:[%s7385_s12 + $0x60] sm:$0xff] }
 0x463   : > { %v3035_v53 = vsel %vm1224_vm11, %v3029_v1, %v3031_v6  ;;  %3191 = vmatpush1.msra.mxu0 %v7546_v10  ;;  %v3034_v9 = vsel %vm1224_vm11, %v3031_v6, %v3033_v56  ;;  %3254 = vmatprep.mubr.f32.mxu0 %v8292_v40 }
 0x464   : > { %3112 = vmatprep.subr.mxu1 %v3034_v9  ;;  %3339 = vmatprep.subr.mxu0 %v7504_v38 }
 0x465   : > { %3113 = vmatpush1.msra.mxu1 %v3035_v53  ;;  %v139_v53 = vld [vmem:[%s7385_s12 + $0x88] sm:$0xff] }
 0x466   : > { %v3635_v34 = vpop.permute.xlu0 %3634  ;;  %6212 = vmatmul.mubr.msk.f32.vlgmr.msra.gmra.mrb[2].mxu1 %vm1229_vm10, %v133_v32  ;;  %3261 = vmatprep.subr.mxu1 %v7566_v3  ;;  %v3641_v38 = vpop.permute.xlu1 %3640  ;;  %v135_v3 = vld [vmem:[%s7385_s12 + $0x68] sm:$0xff] }
 0x467   : > { %3262 = vmatpush1.msra.mxu1 %v7570_v5  ;;  %3325 = vmatprep.mubr.f32.mxu1 %v8292_v40 }
 0x468   : > { %3410 = vmatprep.subr.mxu1 %v7510_v57 }
 0x46a   : > { %v3639_v10 = vpop.permute.xlu0 %3638  ;;  %6213 = vmatmul.mubr.msk.f32.vlgmr.msra.gmra.mrb[2].mxu0 %vm1229_vm10, %v134_v15  ;;  %v3798_v57 = vpop.permute.xlu1 %3797 }
 0x46b   : > { %3340 = vmatpush1.msra.mxu0 %v7496_v63  ;;  %3403 = vmatprep.mubr.f32.mxu0 %v8292_v40  ;;  %v3643_v63 = vsel %vm8392_vm15, %v3637_v61, %v3639_v10  ;;  %vm8397_vm15 = vmmov %vm8395_vm9 }
 0x46c   : > { %3488 = vmatprep.subr.mxu0 %v7590_v36  ;;  %v136_v36 = vld [vmem:[%s7385_s12 + $0x70] sm:$0xff] }
 0x46e   : > { %v3796_v0 = vpop.permute.xlu0 %3795  ;;  %6214 = vmatmul.mubr.msk.f32.vlgmr.msra.gmra.mrb[2].mxu1 %vm1229_vm10, %v134_v15 }
 0x46f   : > { %3411 = vmatpush1.msra.mxu1 %v7498_v2  ;;  %3474 = vmatprep.mubr.f32.mxu1 %v8292_v40  ;;  %v3645_v2 = vsel %vm8393_vm14, %v3641_v38, %v3635_v34  ;;  %vm8398_vm14 = vmmov %vm8395_vm9 }
 0x470   : > { %3559 = vmatprep.subr.mxu1 %v7608_v14  ;;  %v3802_v14 = vpop.permute.xlu1 %3801  ;;  %v3805_v31 = vsel %vm8398_vm14, %v3796_v0, %v3798_v57  ;;  %vm8402_vm14 = vmmov %vm8395_vm9 }
 0x471   : > { %v3806_v43 = vsel %vm8397_vm15, %v3802_v14, %v3796_v0  ;;  %vm8401_vm15 = vmmov %vm8395_vm9 }
 0x472   : > { %6215 = vmatmul.mubr.msk.f32.vlgmr.msra.gmra.mrb[2].mxu0 %vm1229_vm10, %v135_v3  ;;  %v3800_v5 = vpop.permute.xlu0 %3799 }
 0x473   : > { %3489 = vmatpush1.msra.mxu0 %v7604_v42  ;;  %3552 = vmatprep.mubr.f32.mxu0 %v8292_v40  ;;  %v3644_v42 = vsel %vm8394_vm13, %v3635_v34, %v3637_v61  ;;  %v3804_v7 = vsel %vm8395_vm9, %v3798_v57, %v3800_v5  ;;  %vm8399_vm13 = vmmov %vm8395_vm9  ;;  %v3803_v56 = vsel %vm8395_vm9, %v3800_v5, %v3802_v14 }
 0x474   : > { %3649 = vmatprep.subr.mxu0 %v3643_v63  ;;  %v3959_v54 = vpop.permute.xlu1 %3958 }
 0x476   : > { %6216 = vmatmul.mubr.msk.f32.vlgmr.msra.gmra.mrb[2].mxu1 %vm1229_vm10, %v135_v3  ;;  %v3957_v45 = vpop.permute.xlu0 %3956 }
 0x477   : > { %3560 = vmatpush1.msra.mxu1 %v7620_v55  ;;  %3623 = vmatprep.mubr.f32.mxu1 %v8292_v40  ;;  %v3642_v55 = vsel %vm8396_vm12, %v3639_v10, %v3641_v38  ;;  %vm8400_vm12 = vmmov %vm8395_vm9  ;;  %v3966_v32 = vsel %vm8401_vm15, %v3957_v45, %v3959_v54 }
 0x478   : > { %3720 = vmatprep.subr.mxu1 %v3645_v2  ;;  %v3963_v49 = vpop.permute.xlu1 %3962 }
 0x479   : > { %v3967_v37 = vsel %vm8400_vm12, %v3963_v49, %v3957_v45 }
 0x47a   : > { %6217 = vmatmul.mubr.msk.f32.vlgmr.msra.gmra.mrb[2].mxu0 %vm1229_vm10, %v136_v36  ;;  %v3961_v44 = vpop.permute.xlu0 %3960 }
 0x47b   : > { %3650 = vmatpush1.msra.mxu0 %v3644_v42  ;;  %3713 = vmatprep.mubr.f32.mxu0 %v8292_v40  ;;  %v3965_v1 = vsel %vm8399_vm13, %v3959_v54, %v3961_v44  ;;  %v3964_v6 = vsel %vm8402_vm14, %v3961_v44, %v3963_v49  ;;  %vm8403_vm14 = vcmp.lt.s32.totalorder %v8327_v4, 113 }
 0x47c   : > { %3810 = vmatprep.subr.mxu0 %v3804_v7 }
 0x47e   : > { %6218 = vmatmul.mubr.msk.f32.vlgmr.msra.gmra.mrb[2].mxu1 %vm1229_vm10, %v136_v36 }
 0x47f   : > { %3721 = vmatpush1.msra.mxu1 %v3642_v55  ;;  %3784 = vmatprep.mubr.f32.mxu1 %v8292_v40 }
 0x480   : > { %3881 = vmatprep.subr.mxu1 %v3806_v43 }
 0x482   : > { %6219 = vmatmul.mubr.msk.f32.vlgmr.msra.gmra.mrb[2].mxu0 %vm1229_vm10, %v137_v13 }
 0x483   : > { %3811 = vmatpush1.msra.mxu0 %v3805_v31  ;;  %3874 = vmatprep.mubr.f32.mxu0 %v8292_v40 }
 0x484   : > { %3971 = vmatprep.subr.mxu0 %v3965_v1 }
 0x486   : > { %6220 = vmatmul.mubr.msk.f32.vlgmr.msra.gmra.mrb[2].mxu1 %vm1229_vm10, %v137_v13 }
 0x487   : > { %3882 = vmatpush1.msra.mxu1 %v3803_v56  ;;  %3945 = vmatprep.mubr.f32.mxu1 %v8292_v40 }
 0x488   : > { %4042 = vmatprep.subr.mxu1 %v3967_v37 }
 0x48a   : > { %6221 = vmatmul.mubr.msk.f32.vlgmr.msra.gmra.mrb[2].mxu0 %vm1229_vm10, %v138_v30 }
 0x48b   : > { %3972 = vmatpush1.msra.mxu0 %v3966_v32  ;;  %4035 = vmatprep.mubr.f32.mxu0 %v8292_v40  ;;  %v2702_v9 = vpop.permute.xlu0 %2701 }
 0x48e   : > { %6222 = vmatmul.mubr.msk.f32.vlgmr.msra.gmra.mrb[2].mxu1 %vm1229_vm10, %v138_v30 }
 0x48f   : > { %4043 = vmatpush1.msra.mxu1 %v3964_v6  ;;  %4106 = vmatprep.mubr.f32.mxu1 %v8292_v40 }
 0x492   : > { %6223 = vmatmul.mubr.msk.f32.vlgmr.msra.gmra.mrb[2].mxu0 %vm1229_vm10, %v139_v53 }
 0x493   : > { %4269 = vmatprep.mubr.f32.mxu0 %v8292_v40 }
 0x496   : > { %6224 = vmatmul.mubr.msk.f32.vlgmr.msra.gmra.mrb[2].mxu1 %vm1229_vm10, %v139_v53 }
 0x497   : > { %4340 = vmatprep.mubr.f32.mxu1 %v8292_v40 }
 0x565   : > { %v4037_v61 = vpop.f32.mrb[2].mxu0 }
 0x566   : > { %v6266_v34 = vadd.f32 %v4037_v61, %v2702_v9  ;;  %v4039_v15 = vpop.f32.mrb[3].mxu0 }
 0x567   : > { %v6267_v10 = vadd.f32 %v4039_v15, %v2702_v9 }
 0x568   : > { %vm4117_vm13 = vcmp.gt.f32.partialorder %v6266_v34, 0.0  ;;  %v4121_v38 = vmul.f32 0.01, %v6266_v34 }
 0x569   : > { %vm4118_vm9 = vcmp.gt.f32.partialorder %v6267_v10, 0.0  ;;  %v4122_v0 = vmul.f32 0.01, %v6267_v10  ;;  %v4108_v3 = vpop.f32.mrb[2].mxu1 }
 0x56a   : > { %v7754_v57 = vsel %vm4117_vm13, %v6266_v34, %v4121_v38  ;;  %v6268_v63 = vadd.f32 %v4108_v3, %v2702_v9  ;;  %v4110_v5 = vpop.f32.mrb[3].mxu1  ;;  %vm8404_vm13 = vmmov %vm8403_vm14 }
 0x56b   : > { %v7756_v2 = vsel %vm4118_vm9, %v6267_v10, %v4122_v0  ;;  %v6269_v36 = vadd.f32 %v4110_v5, %v2702_v9  ;;  %4129 = vrot.lane.b32.xlu1 %v7754_v57, %s6601_s27  ;;  %vm8405_vm9 = vmmov %vm8404_vm13 }
 0x56c   : > { %vm4119_vm12 = vcmp.gt.f32.partialorder %v6268_v63, 0.0  ;;  %v4123_v14 = vmul.f32 0.01, %v6268_v63  ;;  %4131 = vrot.lane.b32.xlu0 %v7756_v2, %s6601_s27 }
 0x56d   : > { %vm4120_vm15 = vcmp.gt.f32.partialorder %v6269_v36, 0.0  ;;  %v4124_v42 = vmul.f32 0.01, %v6269_v36 }
 0x56e   : > { %v7762_v45 = vsel %vm4119_vm12, %v6268_v63, %v4123_v14  ;;  %vm8406_vm12 = vmmov %vm8405_vm9 }
 0x56f   : > { %v7764_v7 = vsel %vm4120_vm15, %v6269_v36, %v4124_v42  ;;  %4133 = vrot.lane.b32.xlu1 %v7762_v45, %s6601_s27  ;;  %vm8408_vm15 = vcmp.lt.s32.totalorder %v8327_v4, 127 }
 0x570   : > { %4135 = vrot.lane.b32.xlu0 %v7764_v7, %s6601_s27 }
 0x573   : > { %4141 = vrot.lane.b32.xlu1 %v7754_v57, %s6602_s28 }
 0x574   : > { %4143 = vrot.lane.b32.xlu0 %v7756_v2, %s6602_s28 }
 0x577   : > { %4145 = vrot.lane.b32.xlu1 %v7762_v45, %s6602_s28 }
 0x578   : > { %4147 = vrot.lane.b32.xlu0 %v7764_v7, %s6602_s28 }
 0x57b   : > { %4157 = vrot.lane.b32.xlu1 %v7754_v57, %s6593_s21 }
 0x57c   : > { %4159 = vrot.lane.b32.xlu0 %v7756_v2, %s6593_s21 }
 0x57f   : > { %4161 = vrot.lane.b32.xlu1 %v7762_v45, %s6593_s21 }
 0x580   : > { %4163 = vrot.lane.b32.xlu0 %v7764_v7, %s6593_s21 }
 0x583   : > { %4169 = vrot.lane.b32.xlu1 %v7754_v57, %s6594_s22 }
 0x584   : > { %4171 = vrot.lane.b32.xlu0 %v7756_v2, %s6594_s22 }
 0x587   : > { %4173 = vrot.lane.b32.xlu1 %v7762_v45, %s6594_s22 }
 0x588   : > { %4175 = vrot.lane.b32.xlu0 %v7764_v7, %s6594_s22 }
 0x5dd   : > { %v4130_v55 = vpop.permute.xlu1 %4129 }
 0x5de   : > { %v4132_v54 = vpop.permute.xlu0 %4131 }
 0x5df   : > { %v4139_v30 = vsel %vm1161_vm8, %v4130_v55, %v4132_v54 }
 0x5e1   : > { %v4134_v43 = vpop.permute.xlu1 %4133 }
 0x5e2   : > { %v4136_v13 = vpop.permute.xlu0 %4135  ;;  %v4138_v53 = vsel %vm1161_vm8, %v4132_v54, %v4134_v43 }
 0x5e3   : > { %v4140_v1 = vsel %vm1161_vm8, %v4136_v13, %v4130_v55  ;;  %v4137_v38 = vsel %vm1161_vm8, %v4134_v43, %v4136_v13  ;;  %vm8407_vm8 = vcmp.lt.s32.totalorder %v8327_v4, 15 }
 0x5e5   : > { %v4142_v44 = vpop.permute.xlu1 %4141 }
 0x5e6   : > { %v4144_v31 = vpop.permute.xlu0 %4143 }
 0x5e7   : > { %v4151_v49 = vsel %vm8403_vm14, %v4142_v44, %v4144_v31  ;;  %vm8409_vm14 = vmmov %vm8408_vm15 }
 0x5e8   : > { %v7800_v56 = vsel %vm6657_vm1, %v4151_v49, %v4140_v1 }
 0x5e9   : > { %4190 = vrot.lane.b32.xlu1 %v7800_v56, %s6604_s29  ;;  %v4146_v37 = vpop.permute.xlu1 %4145 }
 0x5ea   : > { %v4150_v32 = vsel %vm8404_vm13, %v4144_v31, %v4146_v37  ;;  %v4148_v6 = vpop.permute.xlu0 %4147  ;;  %vm8410_vm13 = vmmov %vm8407_vm8 }
 0x5eb   : > { %v7812_v9 = vsel %vm6675_vm5, %v4150_v32, %v4139_v30  ;;  %v4149_v61 = vsel %vm8405_vm9, %v4146_v37, %v4148_v6  ;;  %v4152_v34 = vsel %vm8406_vm12, %v4148_v6, %v4142_v44  ;;  %vm8411_vm9 = vmmov %vm8407_vm8 }
 0x5ec   : > { %v7820_v15 = vsel %vm6679_vm6, %v4149_v61, %v4138_v53  ;;  %4192 = vrot.lane.b32.xlu0 %v7812_v9, %s6604_s29  ;;  %v7830_v3 = vsel %vm6683_vm7, %v4152_v34, %v4137_v38  ;;  %vm8412_vm12 = vmmov %vm8407_vm8  ;;  %v153_v61 = vld [vmem:[%s7377_s8 + $0x10] sm:$0xff] }
 0x5ed   : > { %4194 = vrot.lane.b32.xlu1 %v7820_v15, %s6604_s29  ;;  %v4158_v10 = vpop.permute.xlu1 %4157 }
 0x5ee   : > { %v4160_v0 = vpop.permute.xlu0 %4159 }
 0x5ef   : > { %v4167_v13 = vsel %vm8409_vm14, %v4158_v10, %v4160_v0 }
 0x5f0   : > { %4196 = vrot.lane.b32.xlu0 %v7830_v3, %s6604_s29 }
 0x5f1   : > { %4351 = vrot.lane.b32.xlu1 %v7754_v57, %s6604_s29  ;;  %v4162_v63 = vpop.permute.xlu1 %4161 }
 0x5f2   : > { %v4164_v5 = vpop.permute.xlu0 %4163  ;;  %v4166_v54 = vsel %vm8408_vm15, %v4160_v0, %v4162_v63 }
 0x5f4   : > { %4353 = vrot.lane.b32.xlu0 %v7756_v2, %s6604_s29 }
 0x5f5   : > { %4355 = vrot.lane.b32.xlu1 %v7762_v45, %s6604_s29  ;;  %v4170_v36 = vpop.permute.xlu1 %4169 }
 0x5f6   : > { %v4172_v14 = vpop.permute.xlu0 %4171 }
 0x5f7   : > { %v4179_v42 = vsel %vm8407_vm8, %v4170_v36, %v4172_v14  ;;  %vm8413_vm8 = vmmov %vm8409_vm14 }
 0x5f8   : > { %4357 = vrot.lane.b32.xlu0 %v7764_v7, %s6604_s29  ;;  %v7850_v44 = vsel %vm6663_vm2, %v4179_v42, %v4166_v54  ;;  %v4168_v30 = vsel %vm8413_vm8, %v4164_v5, %v4158_v10  ;;  %vm8414_vm15 = vmmov %vm8413_vm8 }
 0x5f9   : > { %v4174_v55 = vpop.permute.xlu1 %4173  ;;  %v4165_v32 = vsel %vm8414_vm15, %v4162_v63, %v4164_v5  ;;  %v140_v5 = vld [vmem:[%s7385_s12 + $0x90] sm:$0xff] }
 0x5fa   : > { %v4176_v43 = vpop.permute.xlu0 %4175  ;;  %v4178_v37 = vsel %vm8412_vm12, %v4172_v14, %v4174_v55 }
 0x5fb   : > { %v4180_v31 = vsel %vm8410_vm13, %v4176_v43, %v4170_v36  ;;  %v4177_v1 = vsel %vm8411_vm9, %v4174_v55, %v4176_v43  ;;  %v7876_v53 = vsel %vm6667_vm3, %v4178_v37, %v4165_v32 }
 0x5fc   : > { %v7858_v49 = vsel %vm6653_vm0, %v4180_v31, %v4167_v13  ;;  %4514 = vrot.lane.b32.xlu0 %v7850_v44, %s6604_s29  ;;  %v7872_v6 = vsel %vm6671_vm4, %v4177_v1, %v4168_v30  ;;  %v141_v1 = vld [vmem:[%s7385_s12 + $0x98] sm:$0xff]  ;;  %vm6111_vm0 = vcmp.lt.s32.totalorder (%p105_p0), %v8452_v21, 512 }
 0x5fd   : > { %4512 = vrot.lane.b32.xlu1 %v7858_v49, %s6604_s29 }
 0x600   : > { %4518 = vrot.lane.b32.xlu0 %v7872_v6, %s6604_s29 }
 0x601   : > { %4516 = vrot.lane.b32.xlu1 %v7876_v53, %s6604_s29 }
 0x604   : > { %5122 = vrot.lane.b32.xlu0 %v7812_v9, %s6592_s20 }
 0x605   : > { %5120 = vrot.lane.b32.xlu1 %v7800_v56, %s6592_s20 }
 0x608   : > { %5126 = vrot.lane.b32.xlu0 %v7830_v3, %s6592_s20 }
 0x609   : > { %5124 = vrot.lane.b32.xlu1 %v7820_v15, %s6592_s20 }
 0x60c   : > { %5283 = vrot.lane.b32.xlu0 %v7756_v2, %s6592_s20 }
 0x60d   : > { %5281 = vrot.lane.b32.xlu1 %v7754_v57, %s6592_s20 }
 0x610   : > { %5287 = vrot.lane.b32.xlu0 %v7764_v7, %s6592_s20 }
 0x611   : > { %5285 = vrot.lane.b32.xlu1 %v7762_v45, %s6592_s20 }
 0x614   : > { %5444 = vrot.lane.b32.xlu0 %v7850_v44, %s6592_s20 }
 0x615   : > { %5442 = vrot.lane.b32.xlu1 %v7858_v49, %s6592_s20 }
 0x618   : > { %5448 = vrot.lane.b32.xlu0 %v7872_v6, %s6592_s20 }
 0x619   : > { %5446 = vrot.lane.b32.xlu1 %v7876_v53, %s6592_s20 }
 0x61d   : > { %4187 = vperm.xlu1 %6460, %v153_v61  }
 0x65b   : > { %v4191_v34 = vpop.permute.xlu1 %4190 }
 0x65e   : > { %v4193_v10 = vpop.permute.xlu0 %4192 }
 0x65f   : > { %v4195_v38 = vpop.permute.xlu1 %4194  ;;  %v4200_v0 = vsel %vm1224_vm11, %v4191_v34, %v4193_v10 }
 0x660   : > { %4205 = vmatprep.subr.mxu0 %v4200_v0  ;;  %v4199_v55 = vsel %vm1224_vm11, %v4193_v10, %v4195_v38  ;;  %v142_v0 = vld [vmem:[%s7385_s12 + $0xa0] sm:$0xff] }
 0x662   : > { %v4197_v63 = vpop.permute.xlu0 %4196 }
 0x663   : > { %v4201_v36 = vsel %vm1224_vm11, %v4197_v63, %v4191_v34  ;;  %v4352_v14 = vpop.permute.xlu1 %4351  ;;  %v4198_v42 = vsel %vm1224_vm11, %v4195_v38, %v4197_v63 }
 0x664   : > { %4206 = vmatpush1.msra.mxu0 %v4201_v36  ;;  %4276 = vmatprep.subr.mxu1 %v4198_v42 }
 0x665   : > { %6225 = vmatmul.mubr.msk.f32.vlgmr.msra.gmra.mrb[4].mxu0 %vm1229_vm10, %v140_v5  ;;  %4277 = vmatpush1.msra.mxu1 %v4199_v55 }
 0x666   : > { %v4354_v54 = vpop.permute.xlu0 %4353  ;;  %6226 = vmatmul.mubr.msk.f32.vlgmr.msra.gmra.mrb[4].mxu1 %vm1229_vm10, %v140_v5  ;;  %4430 = vmatprep.mubr.f32.mxu0 %v8292_v40 }
 0x667   : > { %v4361_v43 = vsel %vm1224_vm11, %v4352_v14, %v4354_v54  ;;  %4501 = vmatprep.mubr.f32.mxu1 %v8292_v40  ;;  %v4356_v13 = vpop.permute.xlu1 %4355 }
 0x668   : > { %4366 = vmatprep.subr.mxu0 %v4361_v43  ;;  %v4360_v32 = vsel %vm1224_vm11, %v4354_v54, %v4356_v13  ;;  %v143_v54 = vld [vmem:[%s7385_s12 + $0xa8] sm:$0xff] }
 0x66a   : > { %v4358_v31 = vpop.permute.xlu0 %4357 }
 0x66b   : > { %v4362_v37 = vsel %vm1224_vm11, %v4358_v31, %v4352_v14  ;;  %v4359_v30 = vsel %vm1224_vm11, %v4356_v13, %v4358_v31 }
 0x66c   : > { %4367 = vmatpush1.msra.mxu0 %v4362_v37  ;;  %4437 = vmatprep.subr.mxu1 %v4359_v30  ;;  %v146_v37 = vld [vmem:[%s7385_s12 + $0xc0] sm:$0xff] }
 0x66d   : > { %6227 = vmatmul.mubr.msk.f32.vlgmr.msra.gmra.mrb[4].mxu0 %vm1229_vm10, %v141_v1  ;;  %4438 = vmatpush1.msra.mxu1 %v4360_v32 }
 0x66e   : > { %v4515_v61 = vpop.permute.xlu0 %4514  ;;  %6228 = vmatmul.mubr.msk.f32.vlgmr.msra.gmra.mrb[4].mxu1 %vm1229_vm10, %v141_v1  ;;  %4591 = vmatprep.mubr.f32.mxu0 %v8292_v40 }
 0x66f   : > { %v4513_v34 = vpop.permute.xlu1 %4512  ;;  %4662 = vmatprep.mubr.f32.mxu1 %v8292_v40 }
 0x670   : > { %v4522_v10 = vsel %vm1224_vm11, %v4513_v34, %v4515_v61 }
 0x671   : > { %4527 = vmatprep.subr.mxu0 %v4522_v10 }
 0x672   : > { %v4519_v38 = vpop.permute.xlu0 %4518 }
 0x673   : > { %v4523_v63 = vsel %vm1224_vm11, %v4519_v38, %v4513_v34  ;;  %v4517_v5 = vpop.permute.xlu1 %4516 }
 0x674   : > { %v4521_v36 = vsel %vm1224_vm11, %v4515_v61, %v4517_v5  ;;  %4528 = vmatpush1.msra.mxu0 %v4523_v63  ;;  %v4520_v14 = vsel %vm1224_vm11, %v4517_v5, %v4519_v38  ;;  %vm8415_vm11 = vcmp.lt.s32.totalorder %v8327_v4, 96 }
 0x675   : > { %6229 = vmatmul.mubr.msk.f32.vlgmr.msra.gmra.mrb[4].mxu0 %vm1229_vm10, %v142_v0  ;;  %4598 = vmatprep.subr.mxu1 %v4520_v14  ;;  %vm8416_vm14 = vmmov %vm8415_vm11 }
 0x676   : > { %4676 = vmatprep.subr.mxu0 %v7812_v9  ;;  %4599 = vmatpush1.msra.mxu1 %v4521_v36  ;;  %v5123_v42 = vpop.permute.xlu0 %5122  ;;  %vm8417_vm13 = vmmov %vm8415_vm11  ;;  %v148_v36 = vld [vmem:[%s7385_s12 + $0xd0] sm:$0xff] }
 0x677   : > { %4677 = vmatpush1.msra.mxu0 %v7800_v56  ;;  %6230 = vmatmul.mubr.msk.f32.vlgmr.msra.gmra.mrb[4].mxu1 %vm1229_vm10, %v142_v0  ;;  %v5121_v55 = vpop.permute.xlu1 %5120  ;;  %vm8418_vm9 = vmmov %vm8415_vm11  ;;  %v147_v0 = vld [vmem:[%s7385_s12 + $0xc8] sm:$0xff] }
 0x678   : > { %4747 = vmatprep.subr.mxu1 %v7830_v3  ;;  %4825 = vmatprep.subr.mxu0 %v7756_v2  ;;  %vm8419_vm12 = vmmov %vm8418_vm9 }
 0x679   : > { %4748 = vmatpush1.msra.mxu1 %v7820_v15  ;;  %4740 = vmatprep.mubr.f32.mxu0 %v8292_v40  ;;  %vm8420_vm8 = vmmov %vm8418_vm9 }
 0x67a   : > { %4896 = vmatprep.subr.mxu1 %v7764_v7  ;;  %4811 = vmatprep.mubr.f32.mxu1 %v8292_v40  ;;  %v5127_v43 = vpop.permute.xlu0 %5126  ;;  %v144_v7 = vld [vmem:[%s7385_s12 + $0xb0] sm:$0xff]  ;;  %vm8421_vm15 = vmmov %vm8420_vm8 }
 0x67b   : > { %v5125_v9 = vpop.permute.xlu1 %5124 }
 0x67d   : > { %6231 = vmatmul.mubr.msk.f32.vlgmr.msra.gmra.mrb[4].mxu0 %vm1229_vm10, %v143_v54 }
 0x67e   : > { %4826 = vmatpush1.msra.mxu0 %v7754_v57  ;;  %4889 = vmatprep.mubr.f32.mxu0 %v8292_v40  ;;  %v5284_v56 = vpop.permute.xlu0 %5283  ;;  %v5129_v57 = vsel %vm8415_vm11, %v5123_v42, %v5125_v9  ;;  %vm8422_vm11 = vmmov %vm8420_vm8 }
 0x67f   : > { %4974 = vmatprep.subr.mxu0 %v7850_v44  ;;  %6232 = vmatmul.mubr.msk.f32.vlgmr.msra.gmra.mrb[4].mxu1 %vm1229_vm10, %v143_v54  ;;  %v5282_v2 = vpop.permute.xlu1 %5281  ;;  %v145_v44 = vld [vmem:[%s7385_s12 + $0xb8] sm:$0xff] }
 0x680   : > { %4897 = vmatpush1.msra.mxu1 %v7762_v45  ;;  %4960 = vmatprep.mubr.f32.mxu1 %v8292_v40  ;;  %v5131_v45 = vsel %vm8416_vm14, %v5127_v43, %v5121_v55  ;;  %v5291_v32 = vsel %vm8421_vm15, %v5282_v2, %v5284_v56  ;;  %vm8423_vm14 = vmmov %vm8420_vm8 }
 0x681   : > { %5045 = vmatprep.subr.mxu1 %v7872_v6 }
 0x682   : > { %v5288_v3 = vpop.permute.xlu0 %5287 }
 0x683   : > { %v5286_v15 = vpop.permute.xlu1 %5285  ;;  %v5292_v1 = vsel %vm8420_vm8, %v5288_v3, %v5282_v2 }
 0x684   : > { %v5290_v13 = vsel %vm8418_vm9, %v5284_v56, %v5286_v15  ;;  %v5289_v10 = vsel %vm8423_vm14, %v5286_v15, %v5288_v3  ;;  %vm8425_vm9 = vmmov %vm8420_vm8 }
 0x685   : > { %6233 = vmatmul.mubr.msk.f32.vlgmr.msra.gmra.mrb[4].mxu0 %vm1229_vm10, %v144_v7 }
 0x686   : > { %4975 = vmatpush1.msra.mxu0 %v7858_v49  ;;  %5038 = vmatprep.mubr.f32.mxu0 %v8292_v40  ;;  %v5130_v49 = vsel %vm8417_vm13, %v5121_v55, %v5123_v42  ;;  %v5445_v31 = vpop.permute.xlu0 %5444  ;;  %vm8424_vm13 = vmmov %vm8420_vm8 }
 0x687   : > { %5135 = vmatprep.subr.mxu0 %v5129_v57  ;;  %6234 = vmatmul.mubr.msk.f32.vlgmr.msra.gmra.mrb[4].mxu1 %vm1229_vm10, %v144_v7  ;;  %v5443_v6 = vpop.permute.xlu1 %5442 }
 0x688   : > { %5046 = vmatpush1.msra.mxu1 %v7876_v53  ;;  %5109 = vmatprep.mubr.f32.mxu1 %v8292_v40  ;;  %v5128_v53 = vsel %vm8419_vm12, %v5125_v9, %v5127_v43  ;;  %v5452_v63 = vsel %vm8425_vm9, %v5443_v6, %v5445_v31  ;;  %vm8426_vm12 = vmmov %vm8420_vm8 }
 0x689   : > { %5206 = vmatprep.subr.mxu1 %v5131_v45 }
 0x68a   : > { %v5449_v61 = vpop.permute.xlu0 %5448 }
 0x68b   : > { %v5447_v30 = vpop.permute.xlu1 %5446  ;;  %v5453_v38 = vsel %vm8424_vm13, %v5449_v61, %v5443_v6  ;;  %v5619_v6 = vmul.f32 %v7150_v58, %v7150_v58  ;;  %v5736_v58 = vrot.slane %v7159_v41, %v6806_v52 }
 0x68c   : > { %v5451_v34 = vsel %vm8422_vm11, %v5445_v31, %v5447_v30  ;;  %v5450_v5 = vsel %vm8426_vm12, %v5447_v30, %v5449_v61  ;;  %v5622_v31 = vmul.f32 %v7192_v11, %v7192_v11  ;;  %vm8427_vm12 = vcmask 1041408  }
 0x68d   : > { %6235 = vmatmul.mubr.msk.f32.vlgmr.msra.gmra.mrb[4].mxu0 %vm1229_vm10, %v145_v44 }
 0x68e   : > { %5136 = vmatpush1.msra.mxu0 %v5130_v49  ;;  %5199 = vmatprep.mubr.f32.mxu0 %v8292_v40  ;;  %v5658_v11 = vrot.slane %v5622_v31, %v6806_v52 }
 0x68f   : > { %5296 = vmatprep.subr.mxu0 %v5290_v13  ;;  %6236 = vmatmul.mubr.msk.f32.vlgmr.msra.gmra.mrb[4].mxu1 %vm1229_vm10, %v145_v44  ;;  %v5620_v13 = vmul.f32 %v7117_v12, %v7117_v12 }
 0x690   : > { %5207 = vmatpush1.msra.mxu1 %v5128_v53  ;;  %5270 = vmatprep.mubr.f32.mxu1 %v8292_v40  ;;  %v5621_v53 = vmul.f32 %v7228_v39, %v7228_v39 }
 0x691   : > { %5367 = vmatprep.subr.mxu1 %v5292_v1  ;;  %v5646_v1 = vrot.slane %v5619_v6, %v6806_v52 }
 0x692   : > { %v5654_v12 = vrot.slane %v5621_v53, %v6806_v52 }
 0x695   : > { %6237 = vmatmul.mubr.msk.f32.vlgmr.msra.gmra.mrb[4].mxu0 %vm1229_vm10, %v146_v37 }
 0x696   : > { %5297 = vmatpush1.msra.mxu0 %v5291_v32  ;;  %5360 = vmatprep.mubr.f32.mxu0 %v8292_v40  ;;  %v5650_v32 = vrot.slane %v5620_v13, %v6806_v52 }
 0x697   : > { %5457 = vmatprep.subr.mxu0 %v5451_v34  ;;  %6238 = vmatmul.mubr.msk.f32.vlgmr.msra.gmra.mrb[4].mxu1 %vm1229_vm10, %v146_v37  ;;  %v5732_v37 = vrot.slane %v7185_v8, %v6806_v52 }
 0x698   : > { %5368 = vmatpush1.msra.mxu1 %v5289_v10  ;;  %5431 = vmatprep.mubr.f32.mxu1 %v8292_v40 }
 0x699   : > { %5528 = vmatprep.subr.mxu1 %v5453_v38 }
 0x69c   : > { %v4188_v14 = vpop.permute.xlu1 %4187 }
 0x69d   : > { %6239 = vmatmul.mubr.msk.f32.vlgmr.msra.gmra.mrb[4].mxu0 %vm1229_vm10, %v147_v0 }
 0x69e   : > { %5458 = vmatpush1.msra.mxu0 %v5452_v63  ;;  %5521 = vmatprep.mubr.f32.mxu0 %v8292_v40 }
 0x69f   : > { %6240 = vmatmul.mubr.msk.f32.vlgmr.msra.gmra.mrb[4].mxu1 %vm1229_vm10, %v147_v0 }
 0x6a0   : > { %5529 = vmatpush1.msra.mxu1 %v5450_v5  ;;  %5592 = vmatprep.mubr.f32.mxu1 %v8292_v40 }
 0x6a5   : > { %6241 = vmatmul.mubr.msk.f32.vlgmr.msra.gmra.mrb[4].mxu0 %vm1229_vm10, %v148_v36 }
 0x6a7   : > { %6242 = vmatmul.mubr.msk.f32.vlgmr.msra.gmra.mrb[4].mxu1 %vm1229_vm10, %v148_v36 }
 0x778   : > { %v5523_v42 = vpop.f32.mrb[4].mxu0 }
 0x779   : > { %v8010_v55 = vadd.f32 %v5523_v42, %v4188_v14  ;;  %v5525_v54 = vpop.f32.mrb[5].mxu0 }
 0x77a   : > { %v8012_v9 = vadd.f32 %v5525_v54, %v4188_v14  ;;  %v5594_v43 = vpop.f32.mrb[4].mxu1  ;;  %v5615_v54 = vmul.f32 %v7146_v60, %v7146_v60  ;;  %v5617_v60 = vmul.f32 %v7226_v50, %v7226_v50 }
 0x77b   : > { %v5603_v2 = vmul.f32 1.442695, %v8010_v55  ;;  %v8015_v7 = vadd.f32 %v5594_v43, %v4188_v14  ;;  %v5596_v56 = vpop.f32.mrb[5].mxu1  ;;  %v5740_v43 = vrot.slane %v7245_v35, %v6806_v52 }
 0x77c   : > { %v5605_v57 = vmul.f32 1.442695, %v8012_v9  ;;  %v8020_v45 = vadd.f32 %v5596_v56, %v4188_v14  ;;  %v5616_v14 = vmul.f32 %v7113_v59, %v7113_v59  ;;  %v5744_v56 = vrot.slane %v7209_v62, %v6806_v52 }
 0x77d   : > { %6485 = vpow2.f32 %v5603_v2  ;;  %v5607_v3 = vmul.f32 1.442695, %v8015_v7  ;;  %v5626_v62 = vrot.slane %v5615_v54, %v6806_v52 }
 0x77e   : > { %6487 = vpow2.f32 %v5605_v57  ;;  %v5609_v44 = vmul.f32 1.442695, %v8020_v45  ;;  %v5630_v53 = vrot.slane %v5616_v14, %v6806_v52 }
 0x77f   : > { %6489 = vpow2.f32 %v5607_v3  ;;  %v5618_v3 = vmul.f32 %v7190_v51, %v7190_v51 }
 0x780   : > { %6491 = vpow2.f32 %v5609_v44 }
 0x787   : > { %v6486_v30 = vpop.eup %6485 }
 0x788   : > { %v6488_v61 = vpop.eup %6487  ;;  %6493 = vrcp.f32 %v6486_v30  ;;  %v5659_v34 = vmul.f32 %v6486_v30, %v5646_v1  ;;  %v8041_v39 = vmul.f32 %v6486_v30, %v5732_v37  ;;  %v5634_v1 = vrot.slane %v5617_v60, %v6806_v52 }
 0x789   : > { %v6490_v10 = vpop.eup %6489  ;;  %6495 = vrcp.f32 %v6488_v61  ;;  %v5660_v38 = vmul.f32 %v6488_v61, %v5650_v32  ;;  %v8044_v0 = vmul.f32 %v6488_v61, %v5736_v58  ;;  %v5638_v30 = vrot.slane %v5618_v3, %v6806_v52 }
 0x78a   : > { %v6492_v8 = vpop.eup %6491  ;;  %v8047_v63 = vand.u32 2147483647, %v8041_v39  ;;  %6497 = vrcp.f32 %v6490_v10  ;;  %v5661_v41 = vmul.f32 %v6490_v10, %v5654_v12  ;;  %v8072_v35 = vmul.f32 %v6490_v10, %v5740_v43 }
 0x78b   : > { %v8050_v5 = vand.u32 2147483647, %v8044_v0  ;;  %6499 = vrcp.f32 %v6492_v8  ;;  %v5662_v36 = vmul.f32 %v6492_v8, %v5658_v11  ;;  %v8076_v44 = vmul.f32 %v6492_v8, %v5744_v56 }
 0x78c   : > { %vm5753_vm10 = vcmp.gt.f32.partialorder %v8047_v63, 2.4142137  ;;  %v5777_v42 = vadd.f32 1.0, %v8047_v63  ;;  %v8080_v6 = vand.u32 2147483647, %v8072_v35 }
 0x78d   : > { %vm8291_vm8 = vcmp.gt.f32.partialorder %v8050_v5, 2.4142137  ;;  %v5761_v2 = vsel %vm5753_vm10, %v8047_v63, 1.0  ;;  %v5778_v57 = vadd.f32 1.0, %v8050_v5  ;;  %v8084_v50 = vand.u32 2147483647, %v8076_v44 }
 0x78e   : > { %v5762_v59 = vsel %vm8291_vm8, %v8050_v5, 1.0  ;;  %6501 = vrcp.f32 %v5761_v2  ;;  %vm5755_vm15 = vcmp.gt.f32.partialorder %v8080_v6, 2.4142137  ;;  %v6248_v60 = vadd.f32 -1.0, %v8050_v5 }
 0x78f   : > { %6503 = vrcp.f32 %v5762_v59  ;;  %vm5756_vm11 = vcmp.gt.f32.partialorder %v8084_v50, 2.4142137  ;;  %v5763_v58 = vsel %vm5755_vm15, %v8080_v6, 1.0  ;;  %v5780_v2 = vadd.f32 1.0, %v8084_v50 }
 0x790   : > { %6505 = vrcp.f32 %v5777_v42  ;;  %v5764_v11 = vsel %vm5756_vm11, %v8084_v50, 1.0  ;;  %v5779_v42 = vadd.f32 1.0, %v8080_v6  ;;  %vm5757_vm14 = vcmp.gt.f32.partialorder %v8047_v63, 0.41421357 }
 0x791   : > { %6507 = vrcp.f32 %v5778_v57  ;;  %vm5758_vm13 = vcmp.gt.f32.partialorder %v8050_v5, 0.41421357  ;;  %vm5759_vm9 = vcmp.gt.f32.partialorder %v8080_v6, 0.41421357 }
 0x792   : > { %v6494_v13 = vpop.eup %6493  ;;  %6509 = vrcp.f32 %v5763_v58 }
 0x793   : > { %v6496_v31 = vpop.eup %6495  ;;  %v5639_v37 = vmul.f32 %v6494_v13, %v5626_v62  ;;  %6511 = vrcp.f32 %v5764_v11 }
 0x794   : > { %v6498_v51 = vpop.eup %6497  ;;  %v5640_v32 = vmul.f32 %v6496_v31, %v5630_v53 }
 0x795   : > { %v6500_v61 = vpop.eup %6499  ;;  %v5663_v12 = vadd.f32 %v5659_v34, %v5639_v37  ;;  %v5641_v10 = vmul.f32 %v6498_v51, %v5634_v1  ;;  %v6247_v34 = vadd.f32 -1.0, %v8047_v63 }
 0x796   : > { %v5664_v8 = vadd.f32 %v5660_v38, %v5640_v32  ;;  %v5642_v14 = vmul.f32 %v6500_v61, %v5638_v30  ;;  %v8115_v30 = vsel %vm5757_vm14, 0.7853982, %v8292_v40  ;;  %v8118_v32 = vsel %vm5758_vm13, 0.7853982, %v8292_v40 }
 0x797   : > { %6513 = vrcp.f32 %v5663_v12  ;;  %v5665_v52 = vadd.f32 %v5661_v41, %v5641_v10  ;;  %v6249_v10 = vadd.f32 -1.0, %v8080_v6 }
 0x798   : > { %v6502_v54 = vpop.eup %6501  ;;  %6515 = vrcp.f32 %v5664_v8  ;;  %v5666_v43 = vadd.f32 %v5662_v36, %v5642_v14 }
 0x799   : > { %v6504_v56 = vpop.eup %6503  ;;  %6517 = vrcp.f32 %v5665_v52  ;;  %v5769_v57 = vsub.f32 0.0, %v6502_v54  ;;  %v6250_v52 = vadd.f32 -1.0, %v8084_v50 }
 0x79a   : > { %v6506_v59 = vpop.eup %6505  ;;  %6519 = vrcp.f32 %v5666_v43  ;;  %v5770_v3 = vsub.f32 0.0, %v6504_v56 }
 0x79b   : > { %v6508_v38 = vpop.eup %6507  ;;  %v5785_v62 = vmul.f32 %v6506_v59, %v6247_v34  ;;  %6521 = vrcp.f32 %v5779_v42 }
 0x79c   : > { %v5786_v41 = vmul.f32 %v6508_v38, %v6248_v60  ;;  %6523 = vrcp.f32 %v5780_v2  ;;  %v6510_v31 = vpop.eup %6509 }
 0x79d   : > { %v5789_v36 = vsel %vm5757_vm14, %v5785_v62, %v8047_v63  ;;  %v6512_v51 = vpop.eup %6511  ;;  %vm8428_vm14 = vmmov %vm8427_vm12  ;;  %v5771_v56 = vsub.f32 0.0, %v6510_v31 }
 0x79e   : > { %v5790_v13 = vsel %vm5758_vm13, %v5786_v41, %v8050_v5  ;;  %v8106_v53 = vsel %vm5753_vm10, %v5769_v57, %v5789_v36  ;;  %vm8429_vm13 = vmmov %vm8427_vm12  ;;  %v5772_v38 = vsub.f32 0.0, %v6512_v51 }
 0x79f   : > { %v8110_v1 = vsel %vm8291_vm8, %v5770_v3, %v5790_v13  ;;  %v5805_v37 = vmul.f32 %v8106_v53, %v8106_v53  ;;  %vm5760_vm8 = vcmp.gt.f32.partialorder %v8084_v50, 0.41421357 }
 0x7a0   : > { %v5806_v58 = vmul.f32 %v8110_v1, %v8110_v1 }
 0x7a1   : > { %v6514_v61 = vpop.eup %6513  ;;  %v5809_v12 = vmul.f32 0.080537446, %v5805_v37 }
 0x7a2   : > { %v6516_v11 = vpop.eup %6515  ;;  %v5671_v8 = vsel %vm8427_vm12, %v6514_v61, 0.0  ;;  %v5810_v14 = vmul.f32 0.080537446, %v5806_v58 }
 0x7a3   : > { %v6518_v42 = vpop.eup %6517  ;;  %v5672_v54 = vrot.slane %v5671_v8, 4  ;;  %v5678_v43 = vsel %vm8428_vm14, %v6516_v11, 0.0  ;;  %v6251_v2 = vadd.f32 -0.13877685, %v5809_v12  ;;  %vm8430_vm14 = vcmp.gt.f32.partialorder %v8050_v5, 2.4142137 }
 0x7a4   : > { %v6520_v34 = vpop.eup %6519  ;;  %v5679_v59 = vrot.slane %v5678_v43, 4  ;;  %v6252_v57 = vadd.f32 -0.13877685, %v5810_v14  ;;  %v5685_v60 = vsel %vm8429_vm13, %v6518_v42, 0.0  ;;  %vm5849_vm13 = vcmp.lt.f32.partialorder %v8041_v39, 0.0 }
 0x7a5   : > { %v6522_v3 = vpop.eup %6521  ;;  %v5673_v62 = vadd.f32 %v5672_v54, %v5671_v8  ;;  %v5817_v41 = vmul.f32 %v6251_v2, %v5805_v37  ;;  %v5686_v36 = vrot.slane %v5685_v60, 4  ;;  %v5692_v13 = vsel %vm8427_vm12, %v6520_v34, 0.0 }
 0x7a6   : > { %v6524_v61 = vpop.eup %6523  ;;  %v5680_v49 = vadd.f32 %v5679_v59, %v5678_v43  ;;  %v5818_v15 = vmul.f32 %v6252_v57, %v5806_v58  ;;  %v5693_v40 = vrot.slane %v5692_v13, 4  ;;  %v5787_v4 = vmul.f32 %v6522_v3, %v6249_v10 }
 0x7a7   : > { %v5674_v11 = vrot.slane %v5673_v62, 2  ;;  %v5821_v12 = vadd.f32 0.19977711, %v5817_v41  ;;  %v5687_v31 = vadd.f32 %v5686_v36, %v5685_v60  ;;  %v5788_v16 = vmul.f32 %v6524_v61, %v6250_v52 }
 0x7a8   : > { %v5681_v17 = vrot.slane %v5680_v49, 2  ;;  %v5822_v14 = vadd.f32 0.19977711, %v5818_v15  ;;  %v5694_v20 = vadd.f32 %v5693_v40, %v5692_v13  ;;  %v5791_v51 = vsel %vm5759_vm9, %v5787_v4, %v8080_v6 }
 0x7a9   : > { %v5675_v8 = vadd.f32 %v5674_v11, %v5673_v62  ;;  %v5825_v42 = vmul.f32 %v5821_v12, %v5805_v37  ;;  %v5688_v54 = vrot.slane %v5687_v31, 2  ;;  %v5792_v43 = vsel %vm5760_vm8, %v5788_v16, %v8084_v50 }
 0x7aa   : > { %v5682_v2 = vadd.f32 %v5681_v17, %v5680_v49  ;;  %v5826_v10 = vmul.f32 %v5822_v14, %v5806_v58  ;;  %v5695_v34 = vrot.slane %v5694_v20, 2  ;;  %v8138_v52 = vsel %vm5755_vm15, %v5771_v56, %v5791_v51 }
 0x7ab   : > { %v5676_v15 = vrot.slane %v5675_v8, 1  ;;  %v6255_v40 = vadd.f32 -0.3333295, %v5825_v42  ;;  %v5689_v59 = vadd.f32 %v5688_v54, %v5687_v31  ;;  %v8142_v4 = vsel %vm5756_vm11, %v5772_v38, %v5792_v43 }
 0x7ac   : > { %v5683_v57 = vrot.slane %v5682_v2, 1  ;;  %v6256_v60 = vadd.f32 -0.3333295, %v5826_v10  ;;  %v5696_v3 = vadd.f32 %v5695_v34, %v5694_v20  ;;  %v5807_v16 = vmul.f32 %v8138_v52, %v8138_v52 }
 0x7ad   : > { %v5677_v17 = vadd.f32 %v5676_v15, %v5675_v8  ;;  %v5833_v49 = vmul.f32 %v6255_v40, %v5805_v37  ;;  %v5690_v62 = vrot.slane %v5689_v59, 1  ;;  %v5808_v56 = vmul.f32 %v8142_v4, %v8142_v4 }
 0x7ae   : > { %v5684_v41 = vadd.f32 %v5683_v57, %v5682_v2  ;;  %v5834_v36 = vmul.f32 %v6256_v60, %v5806_v58  ;;  %v5697_v13 = vrot.slane %v5696_v3, 1  ;;  %v5811_v61 = vmul.f32 0.080537446, %v5807_v16 }
 0x7af   : > { %6525 = vlog2.f32 %v5677_v17  ;;  %v5837_v38 = vmul.f32 %v5833_v49, %v8106_v53  ;;  %v5691_v11 = vadd.f32 %v5690_v62, %v5689_v59  ;;  %v5812_v12 = vmul.f32 0.080537446, %v5808_v56 }
 0x7b0   : > { %6527 = vlog2.f32 %v5684_v41  ;;  %v5838_v20 = vmul.f32 %v5834_v36, %v8110_v1  ;;  %v5698_v31 = vadd.f32 %v5697_v13, %v5696_v3  ;;  %v6253_v14 = vadd.f32 -0.13877685, %v5811_v61 }
 0x7b1   : > { %v5841_v37 = vadd.f32 %v5837_v38, %v8106_v53  ;;  %6529 = vlog2.f32 %v5691_v11  ;;  %v6254_v51 = vadd.f32 -0.13877685, %v5812_v12  ;;  %v5801_v58 = vsel %vm5753_vm10, 1.5707964, %v8115_v30 }
 0x7b2   : > { %v5842_v8 = vadd.f32 %v5838_v20, %v8110_v1  ;;  %6531 = vlog2.f32 %v5698_v31  ;;  %v5819_v42 = vmul.f32 %v6253_v14, %v5807_v16  ;;  %v5802_v54 = vsel %vm8430_vm14, 1.5707964, %v8118_v32 }
 0x7b3   : > { %v5845_v43 = vadd.f32 %v5841_v37, %v5801_v58  ;;  %v5820_v2 = vmul.f32 %v6254_v51, %v5808_v56  ;;  %vm5850_vm10 = vcmp.lt.f32.partialorder %v8044_v0, 0.0  ;;  %v8431_v41 = vmov 0.0  }
 0x7b4   : > { %v5846_v10 = vadd.f32 %v5842_v8, %v5802_v54  ;;  %v5823_v34 = vadd.f32 0.19977711, %v5819_v42  ;;  %v5799_v36 = vsel %vm5759_vm9, 0.7853982, %v8431_v41  ;;  %v5800_v0 = vsel %vm5760_vm8, 0.7853982, %v8431_v41  ;;  %vm8432_vm8 = vmmov %vm8427_vm12 }
 0x7b5   : > { %v5853_v15 = vsub.f32 0.0, %v5845_v43  ;;  %v5824_v53 = vadd.f32 0.19977711, %v5820_v2  ;;  %vm8433_vm9 = vmmov %vm8432_vm8 }
 0x7b6   : > { %v5854_v40 = vsub.f32 0.0, %v5846_v10  ;;  %v5827_v59 = vmul.f32 %v5823_v34, %v5807_v16  ;;  %vm8436_vm12 = vmmov %vm8432_vm8 }
 0x7b7   : > { %v5857_v63 = vsel %vm5849_vm13, %v5853_v15, %v5845_v43  ;;  %v5828_v1 = vmul.f32 %v5824_v53, %v5808_v56  ;;  %v5803_v43 = vsel %vm5755_vm15, 1.5707964, %v5799_v36  ;;  %vm5851_vm15 = vcmp.lt.f32.partialorder %v8072_v35, 0.0  ;;  %vm8437_vm14 = vmmov %vm8432_vm8 }
 0x7b8   : > { %v5858_v30 = vsel %vm5850_vm10, %v5854_v40, %v5846_v10  ;;  %v5861_v57 = vmul.f32 2.0, %v5857_v63  ;;  %v6257_v60 = vadd.f32 -0.3333295, %v5827_v59  ;;  %v5804_v40 = vsel %vm5756_vm11, 1.5707964, %v5800_v0  ;;  %v8175_v63 = vld [vmem:[%s6789_s26] sm:$0xff] }
 0x7b9   : > { %v6526_v3 = vpop.eup %6525  ;;  %v5862_v5 = vmul.f32 2.0, %v5858_v30  ;;  %v6258_v32 = vadd.f32 -0.3333295, %v5828_v1  ;;  %vm5852_vm11 = vcmp.lt.f32.partialorder %v8076_v44, 0.0  ;;  %vm8440_vm13 = vcmask 1040384  }
 0x7ba   : > { %v6528_v17 = vpop.eup %6527  ;;  %v5700_v49 = vmul.f32 0.6931472, %v6526_v3  ;;  %v5865_v62 = vmul.f32 0.15915494, %v5861_v57  ;;  %v5835_v39 = vmul.f32 %v6257_v60, %v5807_v16  ;;  %vm8441_vm10 = vmmov %vm8440_vm13 }
 0x7bb   : > { %v6530_v13 = vpop.eup %6529  ;;  %v5702_v61 = vmul.f32 0.6931472, %v6528_v17  ;;  %v5866_v38 = vmul.f32 0.15915494, %v5862_v5  ;;  %v5836_v11 = vmul.f32 %v6258_v32, %v5808_v56 }
 0x7bc   : > { %v6532_v12 = vpop.eup %6531  ;;  %v6243_v20 = vadd.f32 -0.6931472, %v5700_v49  ;;  %v5869_v31 = vfloor.f32 %v5865_v62  ;;  %v5704_v14 = vmul.f32 0.6931472, %v6530_v13  ;;  %v5839_v37 = vmul.f32 %v5835_v39, %v8138_v52 }
 0x7bd   : > { %v6244_v51 = vadd.f32 -0.6931472, %v5702_v61  ;;  %v5870_v58 = vfloor.f32 %v5866_v38  ;;  %v5706_v8 = vmul.f32 0.6931472, %v6532_v12  ;;  %v5840_v16 = vmul.f32 %v5836_v11, %v8142_v4 }
 0x7be   : > { %v5873_v42 = vmul.f32 6.2831855, %v5869_v31  ;;  %v6245_v54 = vadd.f32 -0.6931472, %v5704_v14  ;;  %v5843_v2 = vadd.f32 %v5839_v37, %v8138_v52 }
 0x7bf   : > { %v5715_v56 = vcombine.low %v6243_v20, %v6244_v51  ;;  %v5874_v10 = vmul.f32 6.2831855, %v5870_v58  ;;  %v6246_v34 = vadd.f32 -0.6931472, %v5706_v8  ;;  %v5844_v15 = vadd.f32 %v5840_v16, %v8142_v4 }
 0x7c0   : > { %v5877_v53 = vsub.f32 %v5861_v57, %v5873_v42  ;;  %v5847_v59 = vadd.f32 %v5843_v2, %v5803_v43  ;;  %v8185_v57 = vld [vmem:[%s6789_s26 + $0x8] sm:$0xff] }
 0x7c1   : > { %v5719_v1 = vmul.f32 %v8175_v63, %v5715_v56  ;;  %v5878_v30 = vsub.f32 %v5862_v5, %v5874_v10  ;;  %v5716_v6 = vcombine.low %v6245_v54, %v6246_v34  ;;  %v5848_v60 = vadd.f32 %v5844_v15, %v5804_v40 }
 0x7c2   : > { %v5881_v52 = vsel %vm8432_vm8, %v5877_v53, 0.0  ;;  %v5855_v3 = vsub.f32 0.0, %v5847_v59  ;;  %vm8442_vm8 = vmmov %vm8441_vm10 }
 0x7c3   : > { %v5882_v32 = vrot.slane %v5881_v52, 4  ;;  %v5888_v4 = vsel %vm8433_vm9, %v5878_v30, 0.0  ;;  %v8182_v29 = vadd.f32 %v6569_v29, %v5719_v1   ;;  %v5720_v17 = vmul.f32 %v8185_v57, %v5716_v6 }
 0x7c4   : > { %v5889_v49 = vrot.slane %v5888_v4, 4  ;;  %v5856_v62 = vsub.f32 0.0, %v5848_v60  ;;  %v5859_v5 = vsel %vm5851_vm15, %v5855_v3, %v5847_v59  ;;  %v8438_v59 = vcombine.low %v8010_v55, %v8012_v9  ;;  %vm8443_vm15 = vmmov %vm8442_vm8 }
 0x7c5   : > { %v8434_v50 = vmov %v8182_v29  ;;  %v5883_v41 = vadd.f32 %v5882_v32, %v5881_v52  ;;  %v5863_v36 = vmul.f32 2.0, %v5859_v5  ;;  %v8190_v28 = vadd.f32 %v6565_v28, %v5720_v17  }
 0x7c6   : > { %v5890_v39 = vadd.f32 %v5889_v49, %v5888_v4  ;;  %v5860_v13 = vsel %vm5852_vm11, %v5856_v62, %v5848_v60  ;;  %v6259_v1 = vrot.slane %v8438_v59, 10  ;;  %v6037_v59 = vcombine.low %v6585_v18, %v6581_v26 }
 0x7c7   : > { %v8435_v35 = vmov %v8190_v28  ;;  %v5884_v61 = vrot.slane %v5883_v41, 2  ;;  %v5864_v38 = vmul.f32 2.0, %v5860_v13  ;;  %v5867_v0 = vmul.f32 0.15915494, %v5863_v36 }
 0x7c8   : > { %v5891_v29 = vrot.slane %v5890_v39, 2 }
 0x7c9   : > { %v5885_v11 = vadd.f32 %v5884_v61, %v5883_v41  ;;  %v5868_v12 = vmul.f32 0.15915494, %v5864_v38  ;;  %v5871_v20 = vfloor.f32 %v5867_v0 }
 0x7ca   : > { %v5892_v31 = vadd.f32 %v5891_v29, %v5890_v39 }
 0x7cb   : > { %v5886_v14 = vrot.slane %v5885_v11, 1  ;;  %v5872_v37 = vfloor.f32 %v5868_v12  ;;  %v5875_v51 = vmul.f32 6.2831855, %v5871_v20  ;;  %v8439_v12 = vcombine.low %v8015_v7, %v8020_v45 }
 0x7cc   : > { %v5893_v58 = vrot.slane %v5892_v31, 1  ;;  %v5948_v45 = vsub.f32 1.0, %v8185_v57 }
 0x7cd   : > { %v5887_v8 = vadd.f32 %v5886_v14, %v5885_v11  ;;  %v5876_v44 = vmul.f32 6.2831855, %v5872_v37  ;;  %v5879_v16 = vsub.f32 %v5863_v36, %v5875_v51  ;;  %v5947_v36 = vsub.f32 1.0, %v8175_v63 }
 0x7ce   : > { %v5894_v42 = vadd.f32 %v5893_v58, %v5892_v31  ;;  %v6260_v20 = vrot.slane %v8439_v12, 10 }
 0x7cf   : > { %v5909_v54 = vmul.f32 0.5, %v5887_v8  ;;  %v5880_v28 = vsub.f32 %v5864_v38, %v5876_v44  ;;  %v5895_v43 = vsel %vm8436_vm12, %v5879_v16, 0.0  ;;  %v5949_v9 = vmul.f32 %v5947_v36, %v6791_v33 }
 0x7d0   : > { %v5910_v2 = vmul.f32 0.5, %v5894_v42  ;;  %v5896_v56 = vrot.slane %v5895_v43, 4 }
 0x7d1   : > { %v5902_v10 = vsel %vm8437_vm14, %v5880_v28, 0.0 }
 0x7d2   : > { %v5917_v34 = vcombine.low %v5909_v54, %v5910_v2  ;;  %v5897_v15 = vadd.f32 %v5896_v56, %v5895_v43  ;;  %v5903_v53 = vrot.slane %v5902_v10, 4 }
 0x7d4   : > { %v5921_v40 = vmul.f32 %v8175_v63, %v5917_v34  ;;  %v5898_v30 = vrot.slane %v5897_v15, 2  ;;  %v5904_v6 = vadd.f32 %v5903_v53, %v5902_v10 }
 0x7d6   : > { %v5935_v60 = vadd.f32 %v6259_v1, %v5921_v40  ;;  %v5899_v52 = vadd.f32 %v5898_v30, %v5897_v15  ;;  %v5905_v3 = vrot.slane %v5904_v6, 2  ;;  %v5950_v15 = vmul.f32 %v5948_v45, %v6800_v48 }
 0x7d8   : > { %v5937_v32 = vmul.f32 0.15915494, %v5935_v60  ;;  %v5900_v4 = vrot.slane %v5899_v52, 1  ;;  %v5906_v17 = vadd.f32 %v5905_v3, %v5904_v6 }
 0x7da   : > { %v5939_v49 = vfloor.f32 %v5937_v32  ;;  %v5901_v62 = vadd.f32 %v5900_v4, %v5899_v52  ;;  %v5907_v5 = vrot.slane %v5906_v17, 1  ;;  %v6039_v32 = vrot.slane %v6037_v59, 6 }
 0x7dc   : > { %v5941_v41 = vmul.f32 6.2831855, %v5939_v49  ;;  %v5908_v39 = vadd.f32 %v5907_v5, %v5906_v17  ;;  %v5911_v13 = vmul.f32 0.5, %v5901_v62 }
 0x7de   : > { %v5943_v61 = vsub.f32 %v5935_v60, %v5941_v41  ;;  %v5912_v38 = vmul.f32 0.5, %v5908_v39 }
 0x7e0   : > { %v5945_v55 = vmul.f32 %v8175_v63, %v5943_v61  ;;  %v5918_v0 = vcombine.low %v5911_v13, %v5912_v38 }
 0x7e2   : > { %v5951_v29 = vadd.f32 %v5949_v9, %v5945_v55  ;;  %v5922_v11 = vmul.f32 %v8185_v57, %v5918_v0 }
 0x7e4   : > { %v5953_v31 = vsub.f32 %v5951_v29, %v6791_v33  ;;  %v5936_v14 = vadd.f32 %v6260_v20, %v5922_v11 }
 0x7e6   : > { %v5955_v37 = vsub.f32 0.0, %v5953_v31  ;;  %v5938_v51 = vmul.f32 0.15915494, %v5936_v14  ;;  %v5962_v58 = vrot.slane %v5953_v31, %v6795_v46  ;;  %v5966_v8 = vrot.slane %v5953_v31, %v6798_v47 }
 0x7e8   : > { %v5984_v44 = vrot.slane %v5955_v37, %v6795_v46  ;;  %v5988_v16 = vrot.slane %v5955_v37, %v6798_v47  ;;  %v5940_v42 = vfloor.f32 %v5938_v51 }
 0x7ea   : > { %v6001_v54 = vsel %vm8440_vm13, %v5962_v58, %v5984_v44  ;;  %v6002_v28 = vsel %vm8441_vm10, %v5966_v8, %v5988_v16  ;;  %v5942_v7 = vmul.f32 6.2831855, %v5940_v42 }
 0x7eb   : > { %v6005_v33 = vadd.f32 %v6585_v18, %v6001_v54  ;;  %v6006_v43 = vadd.f32 %v6581_v26, %v6002_v28  ;;  %v6043_v18 = vmul.f32 %v6039_v32, %v5947_v36  ;;  %v8444_v28 = vmov %v8435_v35 }
 0x7ec   : > { %v5944_v2 = vsub.f32 %v5936_v14, %v5942_v7 }
 0x7ed   : > { %v6009_v56 = vmul.f32 0.15915494, %v6005_v33  ;;  %v6010_v10 = vmul.f32 0.15915494, %v6006_v43 }
 0x7ee   : > { %v5946_v34 = vmul.f32 %v8185_v57, %v5944_v2  ;;  %v8450_v2 = vld [vmem:[#allocation4_spill] sm:$0xff] (%p105_p0) }
 0x7ef   : > { %v6013_v53 = vfloor.f32 %v6009_v56  ;;  %v6014_v40 = vfloor.f32 %v6010_v10 }
 0x7f0   : > { %v5952_v1 = vadd.f32 %v5950_v15, %v5946_v34 }
 0x7f1   : > { %v6017_v30 = vmul.f32 6.2831855, %v6013_v53  ;;  %v6018_v6 = vmul.f32 6.2831855, %v6014_v40  ;;  %v8451_v53 = vld [vmem:[#allocation3_spill] sm:$0xff] (%p105_p0) }
 0x7f2   : > { %v5954_v60 = vsub.f32 %v5952_v1, %v6800_v48 }
 0x7f3   : > { %v6021_v52 = vsub.f32 %v6005_v33, %v6017_v30  ;;  %v6022_v3 = vsub.f32 %v6006_v43, %v6018_v6  ;;  %v6606_v33 = vmov (%p105_p0), 1966171168  }
 0x7f4   : > { %v5956_v4 = vsub.f32 0.0, %v5954_v60  ;;  %v5970_v49 = vrot.slane %v5954_v60, %v6795_v46  ;;  %v5974_v62 = vrot.slane %v5954_v60, %v6798_v47  ;;  %v6087_v43 = vunpack.c.l.s4 (%p105_p0), %v6606_v33 }
 0x7f5   : > { %v6029_v17 = vcombine.low %v6021_v52, %v6022_v3 }
 0x7f6   : > { %v5992_v5 = vrot.slane %v5956_v4, %v6795_v46  ;;  %v5996_v41 = vrot.slane %v5956_v4, %v6798_v47  ;;  %v6038_v46 = vcombine.low %v6577_v19, %v6573_v27  ;;  %v6088_v34 = vunpack.c.0.s8 (%p105_p0), %v6087_v43 }
 0x7f7   : > { %v6031_v39 = vrot.slane %v6029_v17, 6 }
 0x7f8   : > { %v6003_v26 = vsel %vm8442_vm8, %v5970_v49, %v5992_v5  ;;  %v6004_v13 = vsel %vm8443_vm15, %v5974_v62, %v5996_v41  ;;  %v6091_v40 = vsub.s32 (%p105_p0), %v6088_v34, %v8451_v53 }
 0x7f9   : > { %v6035_v48 = vmul.f32 %v8175_v63, %v6031_v39  ;;  %v6007_v61 = vadd.f32 %v6577_v19, %v6003_v26  ;;  %v6008_v38 = vadd.f32 %v6573_v27, %v6004_v13  ;;  %v6040_v63 = vrot.slane %v6038_v46, 6 }
 0x7fa   :  { %v6092_v59 = vrot.slane (%p105_p0), %v8434_v50, %v6091_v40  ;;  %v6099_v1 = vrot.slane (%p105_p0), %v8435_v35, %v6091_v40 }
 0x7fb   : > { %v6045_v55 = vadd.f32 %v6043_v18, %v6035_v48  ;;  %v6011_v9 = vmul.f32 0.15915494, %v6007_v61  ;;  %v6012_v0 = vmul.f32 0.15915494, %v6008_v38  ;;  %v6044_v8 = vmul.f32 %v6040_v63, %v5948_v45 }
 0x7fd   : > { %v6051_v29 = vcombine.high %v6045_v55, %v6045_v55  ;;  %v6053_v47 = vrot.slane %v6045_v55, 2   ;;  %v6015_v11 = vfloor.f32 %v6011_v9  ;;  %v6016_v36 = vfloor.f32 %v6012_v0 }
 0x7ff   : > { %v6054_v12 = vrot.slane %v6051_v29, 2   ;;  %v6019_v20 = vmul.f32 6.2831855, %v6015_v11  ;;  %v6020_v31 = vmul.f32 6.2831855, %v6016_v36  ;;  %v8445_v29 = vmov %v8434_v50 }
 0x800   : > { %v8449_v18 = vmov %v6053_v47 }
 0x801   : > { %v6023_v14 = vsub.f32 %v6007_v61, %v6019_v20  ;;  %v6024_v37 = vsub.f32 %v6008_v38, %v6020_v31  ;;  %v8448_v26 = vmov %v6054_v12 }
 0x803   : > { %v6030_v51 = vcombine.low %v6023_v14, %v6024_v37 }
 0x805   : > { %v6032_v58 = vrot.slane %v6030_v51, 6 }
 0x807   : > { %v6036_v44 = vmul.f32 %v8185_v57, %v6032_v58  ;;  %v6065_v57 = vcombine.low (%p105_p0), %v6053_v47, %v6054_v12 }
 0x809   : > { %v6046_v16 = vadd.f32 %v6044_v8, %v6036_v44  ;;  %107 = sbr.rel (!%p105_p0) target bundleno = 11 (0xb), region = 54  ;;  %v6073_v56 = vrot.slane (%p105_p0), %v6065_v57, %v8450_v2 }
 0x80b   : > { %v6052_v42 = vcombine.high %v6046_v16, %v6046_v16  ;;  %v6055_v54 = vrot.slane %v6046_v16, 2  }
 0x80d   : > { %v6056_v7 = vrot.slane %v6052_v42, 2   ;;  %v8447_v19 = vmov %v6055_v54 }
 0x80e   :  { %v6100_v19 = vcombine.low (%p105_p0), %v6092_v59, %v6099_v1 }
 0x80f   : > { %v8446_v27 = vmov %v6056_v7  ;;  %v6066_v45 = vcombine.low (%p105_p0), %v6055_v54, %v6056_v7 }
 0x810   :  { %v6107_v22 = vrot.slane %v6100_v19, %v6091_v40 }
 0x811   :  { %v6080_v10 = vrot.slane %v6066_v45, %v8450_v2 }
 0x812   :  { %6113 = vst.msk [vmem:[%s8266_s5] sm:$0xf] %vm6111_vm0, %v6107_v22 }
 0x813   :  { %v6081_v15 = vcombine.low %v6073_v56, %v6080_v10 }
 0x815   :  { %6083 = vst [vmem:[%s8265_s4] sm:$0xff] %v6081_v15 }

</bundles_post_ra>
